<compile_context>
chip_gen: v7x
topology: tpu7x:2x2x1
jax: 0.10.0
libtpu: 0.0.40
codegen_flags: <defaults>
</compile_context>

<pallas_src>
import numpy as np

import jax
import jax.numpy as jnp
from jax import lax
from jax.experimental import pallas as pl
from jax.experimental.pallas import tpu as pltpu

EPS = 1e-5                          # PyTorch BatchNorm1d default eps (train-mode stats)
C1, C2, C3, C4 = 80, 50, 25, 10     # channel widths of the 'small' generator
L1, L2, L3, L4 = 25, 50, 100, 200   # lengths after each GBlock


# ------------------------------- kernel -------------------------------------


def _fused_kernel(z_ref, g0_ref, be0_ref, qmat_ref, pmat_ref, mask_ref, wk2_ref, cb1_ref,
                  g1_ref, be1_ref, w1a_ref, w1b_ref, cb2_ref,
                  g2_ref, be2_ref, w2a_ref, w2b_ref, cb3_ref,
                  g3_ref, be3_ref, w3a_ref, w3b_ref, cb4_ref,
                  wf_ref,
                  out_ref,
                  h1, h2, h3, h4):
    # ---- GBlock 0: BatchNorm1d(1) -> ConvTranspose1d(1, C1, K1, s=2) -> tanh
    # Two-pass variance kept here (latent input is unbounded, only B*L0 elems).
    x0 = z_ref[...]                                            # (B, L0)
    mu = jnp.mean(x0, keepdims=True)
    var0 = jnp.mean((x0 - mu) ** 2, keepdims=True)
    xn0 = (x0 - mu) * lax.rsqrt(var0 + EPS) * g0_ref[...] + be0_ref[...]

    # "sandwich" conv-transpose:  rows of h1 are (b, t1) = b*L1 + t1.
    #   xr[(b,t), i]        = xn0[b, i]                (row replication, 0/1 qmat)
    #   xr2[(b,t), (k,i)]   = xn0[b, i]                (tap tiling, 0/1 pmat)
    #   xm = xr2 * mask,  mask[(b,t),(k,i)] = [t == 2i+k]
    #   h1[(b,t), c] = tanh(sum_{k,i} xm * W[0,c,k] + b1[c])
    xr = jnp.dot(qmat_ref[...], xn0, preferred_element_type=jnp.float32)   # (N1, L0)
    xr = jnp.dot(xr, pmat_ref[...], preferred_element_type=jnp.float32)    # (N1, K1*L0)
    xm = xr * mask_ref[...]
    h1[...] = jnp.tanh(
        jnp.dot(xm, wk2_ref[...], preferred_element_type=jnp.float32) + cb1_ref[...])

    # ---- GBlocks 1..3: BN(C) -> ConvTranspose1d(C, C', 2, s=2) -> tanh
    # Single-pass BN stats; affine + mean-subtract folded into weights/bias.
    # The two taps (t_out = 2i and 2i+1) are stacked vertically in hout.
    def ct_block(hin, g_ref, be_ref, wa_ref, wb_ref, cb_ref, hout):
        n_in = hin.shape[0]
        x = hin[...]                                           # (n_in, Cin)
        inv_n = 1.0 / float(n_in)
        mean = jnp.sum(x, axis=0, keepdims=True) * inv_n       # (1, Cin)
        msq = jnp.sum(x * x, axis=0, keepdims=True) * inv_n
        var = msq - mean * mean
        s = g_ref[...] * lax.rsqrt(var + EPS)                  # (1, Cin) scale
        off = be_ref[...] - mean * s                           # (1, Cin) offset
        xs = x * s                                             # single VPU pass
        cb = cb_ref[...]                                       # (1, Cout)
        wa = wa_ref[...]
        wb = wb_ref[...]
        ba = cb + jnp.dot(off, wa, preferred_element_type=jnp.float32)
        bb = cb + jnp.dot(off, wb, preferred_element_type=jnp.float32)
        hout[0:n_in, :] = jnp.tanh(
            jnp.dot(xs, wa, preferred_element_type=jnp.float32) + ba)
        hout[n_in:2 * n_in, :] = jnp.tanh(
            jnp.dot(xs, wb, preferred_element_type=jnp.float32) + bb)

    ct_block(h1, g1_ref, be1_ref, w1a_ref, w1b_ref, cb2_ref, h2)
    ct_block(h2, g2_ref, be2_ref, w2a_ref, w2b_ref, cb3_ref, h3)
    ct_block(h3, g3_ref, be3_ref, w3a_ref, w3b_ref, cb4_ref, h4)

    # ---- final Conv1d(C4 -> 1, 3, 'same'): per-tap channel contraction only.
    # taps[j, r] = sum_c wf[c, j] * h4[r, c]   -- lane-dense (3, N4) output.
    # The spatial un-scramble / tap shift-add / bias / tanh happen wrapper-side.
    taps = lax.dot_general(wf_ref[...], h4[...], (((1,), (1,)), ((), ())),
                           preferred_element_type=jnp.float32)
    out_ref[...] = taps


# ------------------------------ forward -------------------------------------


@jax.jit
def generator_forward(operands, bf, z):
    """Fused forward: z (B, latent_dim) -> output (B, 200)."""
    B, _ = z.shape
    n4 = B * L4
    vmem = pl.BlockSpec(memory_space=pltpu.MemorySpace.VMEM)
    taps = pl.pallas_call(
        _fused_kernel,
        out_shape=jax.ShapeDtypeStruct((3, n4), jnp.float32),
        in_specs=[vmem] * (1 + len(operands)),
        out_specs=vmem,
        scratch_shapes=[
            pltpu.VMEM((B * L1, C1), jnp.float32),
            pltpu.VMEM((B * L2, C2), jnp.float32),
            pltpu.VMEM((B * L3, C3), jnp.float32),
            pltpu.VMEM((B * L4, C4), jnp.float32),
        ],
    )(z, *operands)

    # Static un-scramble of the tap-stacked column order.
    # Column r4 = ((k3*2 + k2)*2 + k1)*B*L1 + b*L1 + t1 holds spatial position
    # t4 = 8*t1 + 4*k1 + 2*k2 + k3  (a fixed 3-bit digit reversal).
    taps = taps.reshape(3, 2, 2, 2, B, L1)                     # (j, k3, k2, k1, b, t1)
    taps = jnp.transpose(taps, (0, 4, 5, 3, 2, 1)).reshape(3, B, L4)  # (j, b, t4)
    # 'same' conv, kernel 3: out[b, t] = bf + sum_j taps[j, b, t + j - 1] (zero pad)
    y = taps[1]
    y = y + jnp.pad(taps[0][:, :-1], ((0, 0), (1, 0)))
    y = y + jnp.pad(taps[2][:, 1:], ((0, 0), (0, 1)))
    return jnp.tanh(y + bf)


# --------------------------- parameters -------------------------------------


def init_params(key, latent_dim):
    """PyTorch-style parameters of the 'small' generator."""
    stride = 2
    k1 = 25 - (latent_dim - 1) * stride
    assert k1 > 0, "pick latent_dim so the intended ConvTranspose path is used"
    specs = [(1, C1, k1), (C1, C2, 2), (C2, C3, 2), (C3, C4, 2)]
    blocks = []
    for cin, cout, k in specs:
        key, kw, kb = jax.random.split(key, 3)
        bound = 1.0 / float(np.sqrt(cin * k))
        blocks.append(dict(
            w=jax.random.uniform(kw, (cin, cout, k), jnp.float32, -bound, bound),
            b=jax.random.uniform(kb, (cout,), jnp.float32, -bound, bound),
            gamma=jnp.ones((cin,), jnp.float32),
            beta=jnp.zeros((cin,), jnp.float32),
        ))
    key, kw, kb = jax.random.split(key, 3)
    bound = 1.0 / float(np.sqrt(C4 * 3))
    cf_w = jax.random.uniform(kw, (1, C4, 3), jnp.float32, -bound, bound)
    cf_b = jax.random.uniform(kb, (1,), jnp.float32, -bound, bound)
    return dict(blocks=blocks, cf_w=cf_w, cf_b=cf_b)


def pack_params(params, batch):
    """One-time repack of the parameters into fused-kernel operands.

    Only small operands remain (~70 KB total at B=2): the 0/1 sandwich
    matrices for GBlock 0, per-tap weight slabs, BN affine rows, biases and
    the stacked final-conv taps.  Nothing scales with B^2 any more.
    """
    B = batch
    blocks = params["blocks"]

    # ---- GBlock 0 packing
    w1 = np.asarray(blocks[0]["w"], np.float32)                # (1, C1, K1)
    K1 = w1.shape[2]
    L0 = (25 - K1) // 2 + 1                                    # latent_dim
    N1 = B * L1
    KL = K1 * L0

    g0 = np.asarray(blocks[0]["gamma"], np.float32).reshape(1, 1)
    be0 = np.asarray(blocks[0]["beta"], np.float32).reshape(1, 1)
    cb1 = np.asarray(blocks[0]["b"], np.float32).reshape(1, C1)

    # qmat: replicate xn0 rows into (b, t1) row order
    qmat = np.zeros((N1, B), np.float32)
    rows = np.arange(N1)
    qmat[rows, rows // L1] = 1.0
    # pmat: tile the latent axis K1 times along the lane axis
    pmat = np.zeros((L0, KL), np.float32)
    for k in range(K1):
        pmat[np.arange(L0), k * L0 + np.arange(L0)] = 1.0
    # mask[(b,t), (k,i)] = 1 iff t == 2*i + k  (valid conv-transpose scatter)
    mask = np.zeros((N1, KL), np.float32)
    for t in range(L1):
        for i in range(L0):
            k = t - 2 * i
            if 0 <= k < K1:
                for b in range(B):
                    mask[b * L1 + t, k * L0 + i] = 1.0
    # wk2[(k,i), c] = W[0, c, k]
    wk2 = np.zeros((KL, C1), np.float32)
    for k in range(K1):
        wk2[k * L0:(k + 1) * L0, :] = w1[0, :, k][None, :]

    ops = [g0, be0, qmat, pmat, mask, wk2, cb1]

    # ---- GBlocks 1..3 packing: BN rows + per-tap weight matrices + bias rows
    for blk in blocks[1:]:
        w = np.asarray(blk["w"], np.float32)                   # (Cin, Cout, 2)
        cin = w.shape[0]
        ops += [np.asarray(blk["gamma"], np.float32).reshape(1, cin),
                np.asarray(blk["beta"], np.float32).reshape(1, cin),
                np.ascontiguousarray(w[:, :, 0]),              # tap k = 0
                np.ascontiguousarray(w[:, :, 1]),              # tap k = 1
                np.asarray(blk["b"], np.float32).reshape(1, -1)]

    # ---- final conv: stacked taps (3, C4); bias stays wrapper-side
    wf = np.asarray(params["cf_w"], np.float32)                # (1, C4, 3)
    ops.append(np.ascontiguousarray(wf[0].T))                  # (3, C4)
    bf = jnp.asarray(np.asarray(params["cf_b"], np.float32))   # (1,)

    return tuple(jnp.asarray(o) for o in ops), bf


# ----------------------- pure-JAX reference ---------------------------------


def reference_forward(params, z):
    """Pure-JAX mirror of the PyTorch module (training-mode BatchNorm)."""
    hp = jax.lax.Precision.HIGHEST
    x = z[:, None, :].astype(jnp.float32)                      # (B, C=1, L)
    for blk in params["blocks"]:
        mean = jnp.mean(x, axis=(0, 2), keepdims=True)
        var = jnp.mean((x - mean) ** 2, axis=(0, 2), keepdims=True)
        xn = (x - mean) * lax.rsqrt(var + EPS)
        xn = xn * blk["gamma"][None, :, None] + blk["beta"][None, :, None]
        w = blk["w"]                                           # (Cin, Cout, K)
        k_sz = w.shape[2]
        bsz, _, l_in = xn.shape
        l_out = (l_in - 1) * 2 + k_sz
        y = jnp.zeros((bsz, w.shape[1], l_out), jnp.float32)
        for k in range(k_sz):
            yk = jnp.einsum("bci,co->boi", xn, w[:, :, k], precision=hp)
            y = y.at[:, :, k:k + 2 * l_in:2].add(yk)
        x = jnp.tanh(y + blk["b"][None, :, None])
    wf, bf = params["cf_w"], params["cf_b"]                    # (1, C4, 3), (1,)
    l_out = x.shape[2]
    xp = jnp.pad(x, ((0, 0), (0, 0), (1, 1)))
    y = sum(jnp.einsum("bcl,c->bl", xp[:, :, j:j + l_out], wf[0, :, j], precision=hp)
            for j in range(3))
    return jnp.tanh(y + bf[0])


# ------------------------------- main ----------------------------------------

if __name__ == "__main__":
    B, LATENT = 2, 8    # K1 = 25 - (LATENT-1)*2 = 11 > 0 -> lengths 25/50/100/200
    key = jax.random.PRNGKey(0)
    k_params, k_z = jax.random.split(key)
    params = init_params(k_params, LATENT)
    operands, bf = pack_params(params, B)     # one-time prepare (per batch size)
    z = jax.random.normal(k_z, (B, LATENT), jnp.float32)

    out = jax.block_until_ready(generator_forward(operands, bf, z))

    assert out.shape == (B, L4), out.shape
    assert bool(jnp.all(jnp.isfinite(out)))
    ref = reference_forward(params, z)
    err = float(jnp.max(jnp.abs(out - ref)))
    # tolerance absorbs MXU-vs-XLA f32 matmul precision differences only
    assert err < 2e-2, f"max |kernel - reference| = {err}"
    print("KERNEL_OK")
</pallas_src>

<mosaic_0001>
module attributes {stable_mosaic.version = 11 : i64} {
  func.func @_fused_kernel(%arg0: memref<2x8xf32, #tpu.memory_space<vmem>>, %arg1: memref<1x1xf32, #tpu.memory_space<vmem>>, %arg2: memref<1x1xf32, #tpu.memory_space<vmem>>, %arg3: memref<50x2xf32, #tpu.memory_space<vmem>>, %arg4: memref<8x88xf32, #tpu.memory_space<vmem>>, %arg5: memref<50x88xf32, #tpu.memory_space<vmem>>, %arg6: memref<88x80xf32, #tpu.memory_space<vmem>>, %arg7: memref<1x80xf32, #tpu.memory_space<vmem>>, %arg8: memref<1x80xf32, #tpu.memory_space<vmem>>, %arg9: memref<1x80xf32, #tpu.memory_space<vmem>>, %arg10: memref<80x50xf32, #tpu.memory_space<vmem>>, %arg11: memref<80x50xf32, #tpu.memory_space<vmem>>, %arg12: memref<1x50xf32, #tpu.memory_space<vmem>>, %arg13: memref<1x50xf32, #tpu.memory_space<vmem>>, %arg14: memref<1x50xf32, #tpu.memory_space<vmem>>, %arg15: memref<50x25xf32, #tpu.memory_space<vmem>>, %arg16: memref<50x25xf32, #tpu.memory_space<vmem>>, %arg17: memref<1x25xf32, #tpu.memory_space<vmem>>, %arg18: memref<1x25xf32, #tpu.memory_space<vmem>>, %arg19: memref<1x25xf32, #tpu.memory_space<vmem>>, %arg20: memref<25x10xf32, #tpu.memory_space<vmem>>, %arg21: memref<25x10xf32, #tpu.memory_space<vmem>>, %arg22: memref<1x10xf32, #tpu.memory_space<vmem>>, %arg23: memref<3x10xf32, #tpu.memory_space<vmem>>, %arg24: memref<3x400xf32, #tpu.memory_space<vmem>>, %arg25: memref<50x80xf32, #tpu.memory_space<vmem>>, %arg26: memref<100x50xf32, #tpu.memory_space<vmem>>, %arg27: memref<200x25xf32, #tpu.memory_space<vmem>>, %arg28: memref<400x10xf32, #tpu.memory_space<vmem>>) attributes {dimension_semantics = [], scalar_prefetch = 0 : i64, scratch_operands = 4 : i64, tpu.core_type = #tpu.core_type<tc>} {
    %c0 = arith.constant 0 : index
    %c0_0 = arith.constant 0 : index
    %0 = vector.load %arg0[%c0, %c0_0] : memref<2x8xf32, #tpu.memory_space<vmem>>, vector<2x8xf32>
    %1 = vector.shape_cast %0 : vector<2x8xf32> to vector<1x2x8xf32>
    %cst = arith.constant dense<0.000000e+00> : vector<1xf32>
    %2 = vector.multi_reduction <add>, %1, %cst [1, 2] : vector<1x2x8xf32> to vector<1xf32>
    %3 = vector.shape_cast %2 : vector<1xf32> to vector<1x1x1xf32>
    %4 = vector.extract %3[0, 0, 0] : f32 from vector<1x1x1xf32>
    %5 = vector.broadcast %4 : f32 to vector<1x1xf32>
    %cst_1 = arith.constant 1.600000e+01 : f32
    %6 = vector.broadcast %cst_1 : f32 to vector<1x1xf32>
    %7 = arith.divf %5, %6 : vector<1x1xf32>
    %8 = vector.broadcast %7 : vector<1x1xf32> to vector<2x8xf32>
    %9 = arith.subf %0, %8 : vector<2x8xf32>
    %10 = arith.mulf %9, %9 : vector<2x8xf32>
    %11 = vector.shape_cast %10 : vector<2x8xf32> to vector<1x2x8xf32>
    %cst_2 = arith.constant dense<0.000000e+00> : vector<1xf32>
    %12 = vector.multi_reduction <add>, %11, %cst_2 [1, 2] : vector<1x2x8xf32> to vector<1xf32>
    %13 = vector.shape_cast %12 : vector<1xf32> to vector<1x1x1xf32>
    %14 = vector.extract %13[0, 0, 0] : f32 from vector<1x1x1xf32>
    %15 = vector.broadcast %14 : f32 to vector<1x1xf32>
    %cst_3 = arith.constant 1.600000e+01 : f32
    %16 = vector.broadcast %cst_3 : f32 to vector<1x1xf32>
    %17 = arith.divf %15, %16 : vector<1x1xf32>
    %18 = vector.broadcast %7 : vector<1x1xf32> to vector<2x8xf32>
    %19 = arith.subf %0, %18 : vector<2x8xf32>
    %cst_4 = arith.constant 9.99999974E-6 : f32
    %20 = vector.broadcast %cst_4 : f32 to vector<1x1xf32>
    %21 = arith.addf %17, %20 : vector<1x1xf32>
    %22 = math.rsqrt %21 : vector<1x1xf32>
    %23 = vector.broadcast %22 : vector<1x1xf32> to vector<2x8xf32>
    %24 = arith.mulf %19, %23 : vector<2x8xf32>
    %c0_5 = arith.constant 0 : index
    %c0_6 = arith.constant 0 : index
    %25 = vector.load %arg1[%c0_5, %c0_6] : memref<1x1xf32, #tpu.memory_space<vmem>>, vector<1x1xf32>
    %26 = vector.broadcast %25 : vector<1x1xf32> to vector<2x8xf32>
    %27 = arith.mulf %24, %26 : vector<2x8xf32>
    %c0_7 = arith.constant 0 : index
    %c0_8 = arith.constant 0 : index
    %28 = vector.load %arg2[%c0_7, %c0_8] : memref<1x1xf32, #tpu.memory_space<vmem>>, vector<1x1xf32>
    %29 = vector.broadcast %28 : vector<1x1xf32> to vector<2x8xf32>
    %30 = arith.addf %27, %29 : vector<2x8xf32>
    %c0_9 = arith.constant 0 : index
    %c0_10 = arith.constant 0 : index
    %31 = vector.load %arg3[%c0_9, %c0_10] : memref<50x2xf32, #tpu.memory_space<vmem>>, vector<50x2xf32>
    %cst_11 = arith.constant dense<0.000000e+00> : vector<50x8xf32>
    %32 = tpu.matmul %31, %30, %cst_11 {dimension_numbers = #tpu.dot_dimension_numbers<[1], [0], [0], [1], [0, 0, 1, 1], [], []>} : vector<50x2xf32>, vector<2x8xf32>, vector<50x8xf32> -> vector<50x8xf32>
    %c0_12 = arith.constant 0 : index
    %c0_13 = arith.constant 0 : index
    %33 = vector.load %arg4[%c0_12, %c0_13] : memref<8x88xf32, #tpu.memory_space<vmem>>, vector<8x88xf32>
    %cst_14 = arith.constant dense<0.000000e+00> : vector<50x88xf32>
    %34 = tpu.matmul %32, %33, %cst_14 {dimension_numbers = #tpu.dot_dimension_numbers<[1], [0], [0], [1], [0, 0, 1, 1], [], []>} : vector<50x8xf32>, vector<8x88xf32>, vector<50x88xf32> -> vector<50x88xf32>
    %c0_15 = arith.constant 0 : index
    %c0_16 = arith.constant 0 : index
    %35 = vector.load %arg5[%c0_15, %c0_16] : memref<50x88xf32, #tpu.memory_space<vmem>>, vector<50x88xf32>
    %36 = arith.mulf %34, %35 : vector<50x88xf32>
    %c0_17 = arith.constant 0 : index
    %c0_18 = arith.constant 0 : index
    %37 = vector.load %arg6[%c0_17, %c0_18] : memref<88x80xf32, #tpu.memory_space<vmem>>, vector<88x80xf32>
    %cst_19 = arith.constant dense<0.000000e+00> : vector<50x80xf32>
    %38 = tpu.matmul %36, %37, %cst_19 {dimension_numbers = #tpu.dot_dimension_numbers<[1], [0], [0], [1], [0, 0, 1, 1], [], []>} : vector<50x88xf32>, vector<88x80xf32>, vector<50x80xf32> -> vector<50x80xf32>
    %c0_20 = arith.constant 0 : index
    %c0_21 = arith.constant 0 : index
    %39 = vector.load %arg7[%c0_20, %c0_21] : memref<1x80xf32, #tpu.memory_space<vmem>>, vector<1x80xf32>
    %40 = vector.broadcast %39 : vector<1x80xf32> to vector<50x80xf32>
    %41 = arith.addf %38, %40 : vector<50x80xf32>
    %42 = math.tanh %41 : vector<50x80xf32>
    %c0_22 = arith.constant 0 : index
    %c0_23 = arith.constant 0 : index
    %43 = vector.load %arg25[%c0_22, %c0_23] : memref<50x80xf32, #tpu.memory_space<vmem>>, vector<50x80xf32>
    tpu.vector_store %arg25[%c0_22, %c0_23], %42 {strides = array<i32>} : memref<50x80xf32, #tpu.memory_space<vmem>>, vector<50x80xf32>,
    %c0_24 = arith.constant 0 : index
    %c0_25 = arith.constant 0 : index
    %44 = vector.load %arg25[%c0_24, %c0_25] : memref<50x80xf32, #tpu.memory_space<vmem>>, vector<50x80xf32>
    %cst_26 = arith.constant dense<0.000000e+00> : vector<80xf32>
    %45 = vector.multi_reduction <add>, %44, %cst_26 [0] : vector<50x80xf32> to vector<80xf32>
    %46 = vector.shape_cast %45 : vector<80xf32> to vector<1x80xf32>
    %cst_27 = arith.constant 2.000000e-02 : f32
    %47 = vector.broadcast %cst_27 : f32 to vector<1x80xf32>
    %48 = arith.mulf %46, %47 : vector<1x80xf32>
    %49 = arith.mulf %44, %44 : vector<50x80xf32>
    %cst_28 = arith.constant dense<0.000000e+00> : vector<80xf32>
    %50 = vector.multi_reduction <add>, %49, %cst_28 [0] : vector<50x80xf32> to vector<80xf32>
    %51 = vector.shape_cast %50 : vector<80xf32> to vector<1x80xf32>
    %cst_29 = arith.constant 2.000000e-02 : f32
    %52 = vector.broadcast %cst_29 : f32 to vector<1x80xf32>
    %53 = arith.mulf %51, %52 : vector<1x80xf32>
    %54 = arith.mulf %48, %48 : vector<1x80xf32>
    %55 = arith.subf %53, %54 : vector<1x80xf32>
    %c0_30 = arith.constant 0 : index
    %c0_31 = arith.constant 0 : index
    %56 = vector.load %arg8[%c0_30, %c0_31] : memref<1x80xf32, #tpu.memory_space<vmem>>, vector<1x80xf32>
    %cst_32 = arith.constant 9.99999974E-6 : f32
    %57 = vector.broadcast %cst_32 : f32 to vector<1x80xf32>
    %58 = arith.addf %55, %57 : vector<1x80xf32>
    %59 = math.rsqrt %58 : vector<1x80xf32>
    %60 = arith.mulf %56, %59 : vector<1x80xf32>
    %c0_33 = arith.constant 0 : index
    %c0_34 = arith.constant 0 : index
    %61 = vector.load %arg9[%c0_33, %c0_34] : memref<1x80xf32, #tpu.memory_space<vmem>>, vector<1x80xf32>
    %62 = arith.mulf %48, %60 : vector<1x80xf32>
    %63 = arith.subf %61, %62 : vector<1x80xf32>
    %64 = vector.broadcast %60 : vector<1x80xf32> to vector<50x80xf32>
    %65 = arith.mulf %44, %64 : vector<50x80xf32>
    %c0_35 = arith.constant 0 : index
    %c0_36 = arith.constant 0 : index
    %66 = vector.load %arg12[%c0_35, %c0_36] : memref<1x50xf32, #tpu.memory_space<vmem>>, vector<1x50xf32>
    %c0_37 = arith.constant 0 : index
    %c0_38 = arith.constant 0 : index
    %67 = vector.load %arg10[%c0_37, %c0_38] : memref<80x50xf32, #tpu.memory_space<vmem>>, vector<80x50xf32>
    %c0_39 = arith.constant 0 : index
    %c0_40 = arith.constant 0 : index
    %68 = vector.load %arg11[%c0_39, %c0_40] : memref<80x50xf32, #tpu.memory_space<vmem>>, vector<80x50xf32>
    %cst_41 = arith.constant dense<0.000000e+00> : vector<1x50xf32>
    %69 = tpu.matmul %63, %67, %cst_41 {dimension_numbers = #tpu.dot_dimension_numbers<[1], [0], [0], [1], [0, 0, 1, 1], [], []>} : vector<1x80xf32>, vector<80x50xf32>, vector<1x50xf32> -> vector<1x50xf32>
    %70 = arith.addf %66, %69 : vector<1x50xf32>
    %cst_42 = arith.constant dense<0.000000e+00> : vector<1x50xf32>
    %71 = tpu.matmul %63, %68, %cst_42 {dimension_numbers = #tpu.dot_dimension_numbers<[1], [0], [0], [1], [0, 0, 1, 1], [], []>} : vector<1x80xf32>, vector<80x50xf32>, vector<1x50xf32> -> vector<1x50xf32>
    %72 = arith.addf %66, %71 : vector<1x50xf32>
    %cst_43 = arith.constant dense<0.000000e+00> : vector<50x50xf32>
    %73 = tpu.matmul %65, %67, %cst_43 {dimension_numbers = #tpu.dot_dimension_numbers<[1], [0], [0], [1], [0, 0, 1, 1], [], []>} : vector<50x80xf32>, vector<80x50xf32>, vector<50x50xf32> -> vector<50x50xf32>
    %74 = vector.broadcast %70 : vector<1x50xf32> to vector<50x50xf32>
    %75 = arith.addf %73, %74 : vector<50x50xf32>
    %76 = math.tanh %75 : vector<50x50xf32>
    %c0_44 = arith.constant 0 : index
    %c0_45 = arith.constant 0 : index
    %77 = vector.load %arg26[%c0_44, %c0_45] : memref<100x50xf32, #tpu.memory_space<vmem>>, vector<50x50xf32>
    tpu.vector_store %arg26[%c0_44, %c0_45], %76 {strides = array<i32>} : memref<100x50xf32, #tpu.memory_space<vmem>>, vector<50x50xf32>,
    %cst_46 = arith.constant dense<0.000000e+00> : vector<50x50xf32>
    %78 = tpu.matmul %65, %68, %cst_46 {dimension_numbers = #tpu.dot_dimension_numbers<[1], [0], [0], [1], [0, 0, 1, 1], [], []>} : vector<50x80xf32>, vector<80x50xf32>, vector<50x50xf32> -> vector<50x50xf32>
    %79 = vector.broadcast %72 : vector<1x50xf32> to vector<50x50xf32>
    %80 = arith.addf %78, %79 : vector<50x50xf32>
    %81 = math.tanh %80 : vector<50x50xf32>
    %c50 = arith.constant 50 : index
    %c0_47 = arith.constant 0 : index
    %82 = vector.load %arg26[%c50, %c0_47] : memref<100x50xf32, #tpu.memory_space<vmem>>, vector<50x50xf32>
    tpu.vector_store %arg26[%c50, %c0_47], %81 {strides = array<i32>} : memref<100x50xf32, #tpu.memory_space<vmem>>, vector<50x50xf32>,
    %c0_48 = arith.constant 0 : index
    %c0_49 = arith.constant 0 : index
    %83 = vector.load %arg26[%c0_48, %c0_49] : memref<100x50xf32, #tpu.memory_space<vmem>>, vector<100x50xf32>
    %cst_50 = arith.constant dense<0.000000e+00> : vector<50xf32>
    %84 = vector.multi_reduction <add>, %83, %cst_50 [0] : vector<100x50xf32> to vector<50xf32>
    %85 = vector.shape_cast %84 : vector<50xf32> to vector<1x50xf32>
    %cst_51 = arith.constant 0.00999999977 : f32
    %86 = vector.broadcast %cst_51 : f32 to vector<1x50xf32>
    %87 = arith.mulf %85, %86 : vector<1x50xf32>
    %88 = arith.mulf %83, %83 : vector<100x50xf32>
    %cst_52 = arith.constant dense<0.000000e+00> : vector<50xf32>
    %89 = vector.multi_reduction <add>, %88, %cst_52 [0] : vector<100x50xf32> to vector<50xf32>
    %90 = vector.shape_cast %89 : vector<50xf32> to vector<1x50xf32>
    %cst_53 = arith.constant 0.00999999977 : f32
    %91 = vector.broadcast %cst_53 : f32 to vector<1x50xf32>
    %92 = arith.mulf %90, %91 : vector<1x50xf32>
    %93 = arith.mulf %87, %87 : vector<1x50xf32>
    %94 = arith.subf %92, %93 : vector<1x50xf32>
    %c0_54 = arith.constant 0 : index
    %c0_55 = arith.constant 0 : index
    %95 = vector.load %arg13[%c0_54, %c0_55] : memref<1x50xf32, #tpu.memory_space<vmem>>, vector<1x50xf32>
    %cst_56 = arith.constant 9.99999974E-6 : f32
    %96 = vector.broadcast %cst_56 : f32 to vector<1x50xf32>
    %97 = arith.addf %94, %96 : vector<1x50xf32>
    %98 = math.rsqrt %97 : vector<1x50xf32>
    %99 = arith.mulf %95, %98 : vector<1x50xf32>
    %c0_57 = arith.constant 0 : index
    %c0_58 = arith.constant 0 : index
    %100 = vector.load %arg14[%c0_57, %c0_58] : memref<1x50xf32, #tpu.memory_space<vmem>>, vector<1x50xf32>
    %101 = arith.mulf %87, %99 : vector<1x50xf32>
    %102 = arith.subf %100, %101 : vector<1x50xf32>
    %103 = vector.broadcast %99 : vector<1x50xf32> to vector<100x50xf32>
    %104 = arith.mulf %83, %103 : vector<100x50xf32>
    %c0_59 = arith.constant 0 : index
    %c0_60 = arith.constant 0 : index
    %105 = vector.load %arg17[%c0_59, %c0_60] : memref<1x25xf32, #tpu.memory_space<vmem>>, vector<1x25xf32>
    %c0_61 = arith.constant 0 : index
    %c0_62 = arith.constant 0 : index
    %106 = vector.load %arg15[%c0_61, %c0_62] : memref<50x25xf32, #tpu.memory_space<vmem>>, vector<50x25xf32>
    %c0_63 = arith.constant 0 : index
    %c0_64 = arith.constant 0 : index
    %107 = vector.load %arg16[%c0_63, %c0_64] : memref<50x25xf32, #tpu.memory_space<vmem>>, vector<50x25xf32>
    %cst_65 = arith.constant dense<0.000000e+00> : vector<1x25xf32>
    %108 = tpu.matmul %102, %106, %cst_65 {dimension_numbers = #tpu.dot_dimension_numbers<[1], [0], [0], [1], [0, 0, 1, 1], [], []>} : vector<1x50xf32>, vector<50x25xf32>, vector<1x25xf32> -> vector<1x25xf32>
    %109 = arith.addf %105, %108 : vector<1x25xf32>
    %cst_66 = arith.constant dense<0.000000e+00> : vector<1x25xf32>
    %110 = tpu.matmul %102, %107, %cst_66 {dimension_numbers = #tpu.dot_dimension_numbers<[1], [0], [0], [1], [0, 0, 1, 1], [], []>} : vector<1x50xf32>, vector<50x25xf32>, vector<1x25xf32> -> vector<1x25xf32>
    %111 = arith.addf %105, %110 : vector<1x25xf32>
    %cst_67 = arith.constant dense<0.000000e+00> : vector<100x25xf32>
    %112 = tpu.matmul %104, %106, %cst_67 {dimension_numbers = #tpu.dot_dimension_numbers<[1], [0], [0], [1], [0, 0, 1, 1], [], []>} : vector<100x50xf32>, vector<50x25xf32>, vector<100x25xf32> -> vector<100x25xf32>
    %113 = vector.broadcast %109 : vector<1x25xf32> to vector<100x25xf32>
    %114 = arith.addf %112, %113 : vector<100x25xf32>
    %115 = math.tanh %114 : vector<100x25xf32>
    %c0_68 = arith.constant 0 : index
    %c0_69 = arith.constant 0 : index
    %116 = vector.load %arg27[%c0_68, %c0_69] : memref<200x25xf32, #tpu.memory_space<vmem>>, vector<100x25xf32>
    tpu.vector_store %arg27[%c0_68, %c0_69], %115 {strides = array<i32>} : memref<200x25xf32, #tpu.memory_space<vmem>>, vector<100x25xf32>,
    %cst_70 = arith.constant dense<0.000000e+00> : vector<100x25xf32>
    %117 = tpu.matmul %104, %107, %cst_70 {dimension_numbers = #tpu.dot_dimension_numbers<[1], [0], [0], [1], [0, 0, 1, 1], [], []>} : vector<100x50xf32>, vector<50x25xf32>, vector<100x25xf32> -> vector<100x25xf32>
    %118 = vector.broadcast %111 : vector<1x25xf32> to vector<100x25xf32>
    %119 = arith.addf %117, %118 : vector<100x25xf32>
    %120 = math.tanh %119 : vector<100x25xf32>
    %c100 = arith.constant 100 : index
    %c0_71 = arith.constant 0 : index
    %121 = vector.load %arg27[%c100, %c0_71] : memref<200x25xf32, #tpu.memory_space<vmem>>, vector<100x25xf32>
    tpu.vector_store %arg27[%c100, %c0_71], %120 {strides = array<i32>} : memref<200x25xf32, #tpu.memory_space<vmem>>, vector<100x25xf32>,
    %c0_72 = arith.constant 0 : index
    %c0_73 = arith.constant 0 : index
    %122 = vector.load %arg27[%c0_72, %c0_73] : memref<200x25xf32, #tpu.memory_space<vmem>>, vector<200x25xf32>
    %cst_74 = arith.constant dense<0.000000e+00> : vector<25xf32>
    %123 = vector.multi_reduction <add>, %122, %cst_74 [0] : vector<200x25xf32> to vector<25xf32>
    %124 = vector.shape_cast %123 : vector<25xf32> to vector<1x25xf32>
    %cst_75 = arith.constant 5.000000e-03 : f32
    %125 = vector.broadcast %cst_75 : f32 to vector<1x25xf32>
    %126 = arith.mulf %124, %125 : vector<1x25xf32>
    %127 = arith.mulf %122, %122 : vector<200x25xf32>
    %cst_76 = arith.constant dense<0.000000e+00> : vector<25xf32>
    %128 = vector.multi_reduction <add>, %127, %cst_76 [0] : vector<200x25xf32> to vector<25xf32>
    %129 = vector.shape_cast %128 : vector<25xf32> to vector<1x25xf32>
    %cst_77 = arith.constant 5.000000e-03 : f32
    %130 = vector.broadcast %cst_77 : f32 to vector<1x25xf32>
    %131 = arith.mulf %129, %130 : vector<1x25xf32>
    %132 = arith.mulf %126, %126 : vector<1x25xf32>
    %133 = arith.subf %131, %132 : vector<1x25xf32>
    %c0_78 = arith.constant 0 : index
    %c0_79 = arith.constant 0 : index
    %134 = vector.load %arg18[%c0_78, %c0_79] : memref<1x25xf32, #tpu.memory_space<vmem>>, vector<1x25xf32>
    %cst_80 = arith.constant 9.99999974E-6 : f32
    %135 = vector.broadcast %cst_80 : f32 to vector<1x25xf32>
    %136 = arith.addf %133, %135 : vector<1x25xf32>
    %137 = math.rsqrt %136 : vector<1x25xf32>
    %138 = arith.mulf %134, %137 : vector<1x25xf32>
    %c0_81 = arith.constant 0 : index
    %c0_82 = arith.constant 0 : index
    %139 = vector.load %arg19[%c0_81, %c0_82] : memref<1x25xf32, #tpu.memory_space<vmem>>, vector<1x25xf32>
    %140 = arith.mulf %126, %138 : vector<1x25xf32>
    %141 = arith.subf %139, %140 : vector<1x25xf32>
    %142 = vector.broadcast %138 : vector<1x25xf32> to vector<200x25xf32>
    %143 = arith.mulf %122, %142 : vector<200x25xf32>
    %c0_83 = arith.constant 0 : index
    %c0_84 = arith.constant 0 : index
    %144 = vector.load %arg22[%c0_83, %c0_84] : memref<1x10xf32, #tpu.memory_space<vmem>>, vector<1x10xf32>
    %c0_85 = arith.constant 0 : index
    %c0_86 = arith.constant 0 : index
    %145 = vector.load %arg20[%c0_85, %c0_86] : memref<25x10xf32, #tpu.memory_space<vmem>>, vector<25x10xf32>
    %c0_87 = arith.constant 0 : index
    %c0_88 = arith.constant 0 : index
    %146 = vector.load %arg21[%c0_87, %c0_88] : memref<25x10xf32, #tpu.memory_space<vmem>>, vector<25x10xf32>
    %cst_89 = arith.constant dense<0.000000e+00> : vector<1x10xf32>
    %147 = tpu.matmul %141, %145, %cst_89 {dimension_numbers = #tpu.dot_dimension_numbers<[1], [0], [0], [1], [0, 0, 1, 1], [], []>} : vector<1x25xf32>, vector<25x10xf32>, vector<1x10xf32> -> vector<1x10xf32>
    %148 = arith.addf %144, %147 : vector<1x10xf32>
    %cst_90 = arith.constant dense<0.000000e+00> : vector<1x10xf32>
    %149 = tpu.matmul %141, %146, %cst_90 {dimension_numbers = #tpu.dot_dimension_numbers<[1], [0], [0], [1], [0, 0, 1, 1], [], []>} : vector<1x25xf32>, vector<25x10xf32>, vector<1x10xf32> -> vector<1x10xf32>
    %150 = arith.addf %144, %149 : vector<1x10xf32>
    %cst_91 = arith.constant dense<0.000000e+00> : vector<200x10xf32>
    %151 = tpu.matmul %143, %145, %cst_91 {dimension_numbers = #tpu.dot_dimension_numbers<[1], [0], [0], [1], [0, 0, 1, 1], [], []>} : vector<200x25xf32>, vector<25x10xf32>, vector<200x10xf32> -> vector<200x10xf32>
    %152 = vector.broadcast %148 : vector<1x10xf32> to vector<200x10xf32>
    %153 = arith.addf %151, %152 : vector<200x10xf32>
    %154 = math.tanh %153 : vector<200x10xf32>
    %c0_92 = arith.constant 0 : index
    %c0_93 = arith.constant 0 : index
    %155 = vector.load %arg28[%c0_92, %c0_93] : memref<400x10xf32, #tpu.memory_space<vmem>>, vector<200x10xf32>
    tpu.vector_store %arg28[%c0_92, %c0_93], %154 {strides = array<i32>} : memref<400x10xf32, #tpu.memory_space<vmem>>, vector<200x10xf32>,
    %cst_94 = arith.constant dense<0.000000e+00> : vector<200x10xf32>
    %156 = tpu.matmul %143, %146, %cst_94 {dimension_numbers = #tpu.dot_dimension_numbers<[1], [0], [0], [1], [0, 0, 1, 1], [], []>} : vector<200x25xf32>, vector<25x10xf32>, vector<200x10xf32> -> vector<200x10xf32>
    %157 = vector.broadcast %150 : vector<1x10xf32> to vector<200x10xf32>
    %158 = arith.addf %156, %157 : vector<200x10xf32>
    %159 = math.tanh %158 : vector<200x10xf32>
    %c200 = arith.constant 200 : index
    %c0_95 = arith.constant 0 : index
    %160 = vector.load %arg28[%c200, %c0_95] : memref<400x10xf32, #tpu.memory_space<vmem>>, vector<200x10xf32>
    tpu.vector_store %arg28[%c200, %c0_95], %159 {strides = array<i32>} : memref<400x10xf32, #tpu.memory_space<vmem>>, vector<200x10xf32>,
    %c0_96 = arith.constant 0 : index
    %c0_97 = arith.constant 0 : index
    %161 = vector.load %arg23[%c0_96, %c0_97] : memref<3x10xf32, #tpu.memory_space<vmem>>, vector<3x10xf32>
    %c0_98 = arith.constant 0 : index
    %c0_99 = arith.constant 0 : index
    %162 = vector.load %arg28[%c0_98, %c0_99] : memref<400x10xf32, #tpu.memory_space<vmem>>, vector<400x10xf32>
    %cst_100 = arith.constant dense<0.000000e+00> : vector<3x400xf32>
    %163 = tpu.matmul %161, %162, %cst_100 {dimension_numbers = #tpu.dot_dimension_numbers<[1], [1], [0], [0], [0, 0, 1, 0], [], []>} : vector<3x10xf32>, vector<400x10xf32>, vector<3x400xf32> -> vector<3x400xf32>
    %c0_101 = arith.constant 0 : index
    %c0_102 = arith.constant 0 : index
    %164 = vector.load %arg24[%c0_101, %c0_102] : memref<3x400xf32, #tpu.memory_space<vmem>>, vector<3x400xf32>
    tpu.vector_store %arg24[%c0_101, %c0_102], %163 {strides = array<i32>} : memref<3x400xf32, #tpu.memory_space<vmem>>, vector<3x400xf32>,
    return
  }
}

</mosaic_0001>

<bundles_post_ra>
// kernel: squeeze.4
= control target key start
LH: loop header
LB: loop body
LE: loop exit
PB: predicated region body
PF: predicated region fallthrough
CT: control target
= control target key end

     0   :  { %s517_s26 = smov 3  ;;  %s531_s2 = smov 3  ;;  %vm718_vm0 = vcmask 1043458   ;;  %vm503_vm1 = vcmask 1041409   ;;  %vm505_vm2 = vcmask 15360   ;;  %vm521_vm3 = vcmask 1048560   ;;  %s1955_s0 = inlined_call_operand.vmem [shape: f32[1,2,25,2,2,2], index: 0, kind: input, shape index: {}]   ;;  %s1956_s1 = inlined_call_operand.vmem [shape: f32[2,200], index: 1, kind: output, shape index: {}]  }
   0x1   :  { %v1329_v0 = vld [vmem:[%s1955_s0 + $0xa2] sm:$0x3]  ;;  %v1379_v1 = vld [vmem:[%s1955_s0 + $0x3e] sm:$0x3]  ;;  %v1330_v2 = vld [vmem:[%s1955_s0 + $0xa0] sm:$0x3] }
   0x2   :  { %98 = vst [vmem:[#allocation1 + $0x288] sm:$0x3] %v1329_v0  ;;  %348 = vst [vmem:[#allocation1 + $0xf8] sm:$0x3] %v1379_v1  ;;  %v1380_v3 = vld [vmem:[%s1955_s0 + $0x3c] sm:$0x3] }
   0x3   :  { %103 = vst [vmem:[#allocation1 + $0x280] sm:$0x3] %v1330_v2  ;;  %353 = vst [vmem:[#allocation1 + $0xf0] sm:$0x3] %v1380_v3  ;;  %v1331_v4 = vld [vmem:[%s1955_s0 + $0x9e] sm:$0x3] }
   0x4   :  { %v1381_v5 = vld [vmem:[%s1955_s0 + $0x3a] sm:$0x3]  ;;  %108 = vst [vmem:[#allocation1 + $0x278] sm:$0x3] %v1331_v4  ;;  %v1332_v6 = vld [vmem:[%s1955_s0 + $0x9c] sm:$0x3] }
   0x5   :  { %358 = vst [vmem:[#allocation1 + $0xe8] sm:$0x3] %v1381_v5  ;;  %v1382_v7 = vld [vmem:[%s1955_s0 + $0x38] sm:$0x3]  ;;  %113 = vst [vmem:[#allocation1 + $0x270] sm:$0x3] %v1332_v6 }
   0x6   :  { %363 = vst [vmem:[#allocation1 + $0xe0] sm:$0x3] %v1382_v7  ;;  %v1333_v8 = vld [vmem:[%s1955_s0 + $0x9a] sm:$0x3]  ;;  %v1383_v9 = vld [vmem:[%s1955_s0 + $0x36] sm:$0x3] }
   0x7   :  { %118 = vst [vmem:[#allocation1 + $0x268] sm:$0x3] %v1333_v8  ;;  %368 = vst [vmem:[#allocation1 + $0xd8] sm:$0x3] %v1383_v9  ;;  %v1334_v10 = vld [vmem:[%s1955_s0 + $0x98] sm:$0x3] }
   0x8   :  { %v1384_v11 = vld [vmem:[%s1955_s0 + $0x34] sm:$0x3]  ;;  %123 = vst [vmem:[#allocation1 + $0x260] sm:$0x3] %v1334_v10  ;;  %v1335_v12 = vld [vmem:[%s1955_s0 + $0x96] sm:$0x3] }
   0x9   :  { %373 = vst [vmem:[#allocation1 + $0xd0] sm:$0x3] %v1384_v11  ;;  %v1385_v13 = vld [vmem:[%s1955_s0 + $0x32] sm:$0x3]  ;;  %s524_s7 = smov 3  ;;  %s538_s12 = smov 3 }
   0xa   :  { %128 = vst [vmem:[#allocation1 + $0x258] sm:$0x3] %v1335_v12  ;;  %378 = vst [vmem:[#allocation1 + $0xc8] sm:$0x3] %v1385_v13  ;;  %v1336_v14 = vld [vmem:[%s1955_s0 + $0x94] sm:$0x3] }
   0xb   :  { %v1386_v15 = vld [vmem:[%s1955_s0 + $0x30] sm:$0x3]  ;;  %v518_v16 = vld [vmem:[#allocation1 + $0xf9] ss:$400 sm:%s517_s26]   ;;  %133 = vst [vmem:[#allocation1 + $0x250] sm:$0x3] %v1336_v14 }
   0xc   :  { %383 = vst [vmem:[#allocation1 + $0xc0] sm:$0x3] %v1386_v15  ;;  %s1474_s13 = smov 126   ;;  %v532_v17 = vld [vmem:[#allocation1 + $0xf1] ss:$400 sm:%s531_s2]   ;;  %s1475_s14 = smov 122  }
   0xd   :  { %519 = vrot.lane.b32.xlu0 %v518_v16, %s1474_s13  ;;  %533 = vrot.lane.b32.xlu1 %v532_v17, %s1475_s14  ;;  %v525_v18 = vld [vmem:[#allocation1 + $0xf8] ss:$400 sm:%s524_s7]   ;;  %v539_v19 = vld [vmem:[#allocation1 + $0xf0] ss:$400 sm:%s538_s12]   ;;  %s545_s15 = smov 3  ;;  %s552_s16 = smov 3 }
   0xe   :  { %s1476_s17 = smov 124   ;;  %s1477_s18 = smov 120   ;;  %v546_v20 = vld [vmem:[#allocation1 + $0xe9] ss:$400 sm:%s545_s15]   ;;  %v553_v21 = vld [vmem:[#allocation1 + $0xe8] ss:$400 sm:%s552_s16]  }
   0xf   :  { %s559_s19 = smov 3  ;;  %v1337_v22 = vld [vmem:[%s1955_s0 + $0x92] sm:$0x3]  ;;  %s566_s22 = smov 3  ;;  %v1387_v23 = vld [vmem:[%s1955_s0 + $0x2e] sm:$0x3] }
  0x10   :  { %138 = vst [vmem:[#allocation1 + $0x248] sm:$0x3] %v1337_v22  ;;  %s1478_s25 = smov 118   ;;  %s1601_s26 = smov 3  ;;  %388 = vst [vmem:[#allocation1 + $0xb8] sm:$0x3] %v1387_v23 }
  0x11   :  { %526 = vrot.lane.b32.xlu0 %v525_v18, %s1476_s17  ;;  %540 = vrot.lane.b32.xlu1 %v539_v19, %s1477_s18  ;;  %v1338_v24 = vld [vmem:[%s1955_s0 + $0x90] sm:$0x3]  ;;  %v1388_v25 = vld [vmem:[%s1955_s0 + $0x2c] sm:$0x3]  ;;  %s1479_s2 = smov 116   ;;  %s580_s11 = smov 3 }
  0x12   :  { %v560_v26 = vld [vmem:[#allocation1 + $0xe1] ss:$400 sm:%s559_s19]   ;;  %143 = vst [vmem:[#allocation1 + $0x240] sm:$0x3] %v1338_v24  ;;  %393 = vst [vmem:[#allocation1 + $0xb0] sm:$0x3] %v1388_v25 }
  0x13   :  { %v1339_v27 = vld [vmem:[%s1955_s0 + $0x8e] sm:$0x3]  ;;  %v1389_v28 = vld [vmem:[%s1955_s0 + $0x2a] sm:$0x3]  ;;  %v567_v29 = vld [vmem:[#allocation1 + $0xe0] ss:$400 sm:%s566_s22]  }
  0x14   :  { %148 = vst [vmem:[#allocation1 + $0x238] sm:$0x3] %v1339_v27  ;;  %398 = vst [vmem:[#allocation1 + $0xa8] sm:$0x3] %v1389_v28  ;;  %v1340_v30 = vld [vmem:[%s1955_s0 + $0x8c] sm:$0x3] }
  0x15   :  { %547 = vrot.lane.b32.xlu0 %v546_v20, %s1478_s25  ;;  %554 = vrot.lane.b32.xlu1 %v553_v21, %s1479_s2  ;;  %v1390_v31 = vld [vmem:[%s1955_s0 + $0x28] sm:$0x3]  ;;  %153 = vst [vmem:[#allocation1 + $0x230] sm:$0x3] %v1340_v30  ;;  %v1341_v32 = vld [vmem:[%s1955_s0 + $0x8a] sm:$0x3] }
  0x16   :  { %403 = vst [vmem:[#allocation1 + $0xa0] sm:$0x3] %v1390_v31  ;;  %v1391_v33 = vld [vmem:[%s1955_s0 + $0x26] sm:$0x3]  ;;  %s1480_s16 = smov 114   ;;  %s587_s17 = smov 3 }
  0x17   :  { %158 = vst [vmem:[#allocation1 + $0x228] sm:$0x3] %v1341_v32  ;;  %408 = vst [vmem:[#allocation1 + $0x98] sm:$0x3] %v1391_v33  ;;  %v1342_v34 = vld [vmem:[%s1955_s0 + $0x88] sm:$0x3] }
  0x18   :  { %v1392_v35 = vld [vmem:[%s1955_s0 + $0x24] sm:$0x3]  ;;  %s1481_s22 = smov 112   ;;  %v574_v36 = vld [vmem:[#allocation1 + $0xd9] ss:$400 sm:%s1601_s26]   ;;  %s594_s2 = smov 3 }
  0x19   :  { %561 = vrot.lane.b32.xlu0 %v560_v26, %s1480_s16  ;;  %568 = vrot.lane.b32.xlu1 %v567_v29, %s1481_s22  ;;  %163 = vst [vmem:[#allocation1 + $0x220] sm:$0x3] %v1342_v34  ;;  %413 = vst [vmem:[#allocation1 + $0x90] sm:$0x3] %v1392_v35  ;;  %v1311_v37 = vld [vmem:[%s1955_s0 + $0xc6] sm:$0x3] }
  0x1a   :  { %v1343_v38 = vld [vmem:[%s1955_s0 + $0x86] sm:$0x3]  ;;  %v581_v39 = vld [vmem:[#allocation1 + $0xd8] ss:$400 sm:%s580_s11]   ;;  %8 = vst [vmem:[#allocation1 + $0x318] sm:$0x3] %v1311_v37 }
  0x1b   :  { %168 = vst [vmem:[#allocation1 + $0x218] sm:$0x3] %v1343_v38  ;;  %v1361_v40 = vld [vmem:[%s1955_s0 + $0x62] sm:$0x3]  ;;  %s1482_s3 = smov 110   ;;  %s1483_s4 = smov 108  }
  0x1c   :  { %v1393_v41 = vld [vmem:[%s1955_s0 + $0x22] sm:$0x3]  ;;  %258 = vst [vmem:[#allocation1 + $0x188] sm:$0x3] %v1361_v40  ;;  %v588_v42 = vld [vmem:[#allocation1 + $0xd1] ss:$400 sm:%s587_s17]  }
  0x1d   :  { %418 = vst [vmem:[#allocation1 + $0x88] sm:$0x3] %v1393_v41  ;;  %575 = vrot.lane.b32.xlu0 %v574_v36, %s1482_s3  ;;  %582 = vrot.lane.b32.xlu1 %v581_v39, %s1483_s4  ;;  %s601_s5 = smov 3  ;;  %v595_v43 = vld [vmem:[#allocation1 + $0xd0] ss:$400 sm:%s594_s2]   ;;  %s608_s6 = smov 3 }
  0x1e   :  { %s1484_s7 = smov 106   ;;  %v602_v44 = vld [vmem:[#allocation1 + $0xc9] ss:$400 sm:%s601_s5]   ;;  %s1485_s8 = smov 104   ;;  %v1312_v45 = vld [vmem:[%s1955_s0 + $0xc4] sm:$0x3] }
  0x1f   :  { %s615_s9 = smov 3  ;;  %v1344_v46 = vld [vmem:[%s1955_s0 + $0x84] sm:$0x3]  ;;  %v609_v47 = vld [vmem:[#allocation1 + $0xc8] ss:$400 sm:%s608_s6]   ;;  %s622_s14 = smov 3 }
  0x20   :  { %13 = vst [vmem:[#allocation1 + $0x310] sm:$0x3] %v1312_v45  ;;  %173 = vst [vmem:[#allocation1 + $0x210] sm:$0x3] %v1344_v46  ;;  %v1362_v48 = vld [vmem:[%s1955_s0 + $0x60] sm:$0x3] }
  0x21   :  { %589 = vrot.lane.b32.xlu0 %v588_v42, %s1484_s7  ;;  %596 = vrot.lane.b32.xlu1 %v595_v43, %s1485_s8  ;;  %s1486_s17 = smov 102   ;;  %v616_v49 = vld [vmem:[#allocation1 + $0xc1] ss:$400 sm:%s615_s9]   ;;  %263 = vst [vmem:[#allocation1 + $0x180] sm:$0x3] %v1362_v48  ;;  %s1487_s22 = smov 100  }
  0x22   :  { %v1394_v50 = vld [vmem:[%s1955_s0 + $0x20] sm:$0x3]  ;;  %v1313_v51 = vld [vmem:[%s1955_s0 + $0xc2] sm:$0x3]  ;;  %v1363_v54 = vld [vmem:[%s1955_s0 + $0x5e] sm:$0x3] }
  0x23   :  { %v623_v52 = vld [vmem:[#allocation1 + $0xc0] ss:$400 sm:%s622_s14]   ;;  %423 = vst [vmem:[#allocation1 + $0x80] sm:$0x3] %v1394_v50  ;;  %18 = vst [vmem:[#allocation1 + $0x308] sm:$0x3] %v1313_v51 }
  0x24   :  { %v1345_v53 = vld [vmem:[%s1955_s0 + $0x82] sm:$0x3]  ;;  %s629_s27 = smov 3  ;;  %268 = vst [vmem:[#allocation1 + $0x178] sm:$0x3] %v1363_v54  ;;  %s636_s3 = smov 3 }
  0x25   :  { %603 = vrot.lane.b32.xlu0 %v602_v44, %s1486_s17  ;;  %610 = vrot.lane.b32.xlu1 %v609_v47, %s1487_s22  ;;  %178 = vst [vmem:[#allocation1 + $0x208] sm:$0x3] %v1345_v53  ;;  %v1395_v55 = vld [vmem:[%s1955_s0 + $0x1e] sm:$0x3]  ;;  %v1314_v56 = vld [vmem:[%s1955_s0 + $0xc0] sm:$0x3] }
  0x26   :  { %428 = vst [vmem:[#allocation1 + $0x78] sm:$0x3] %v1395_v55  ;;  %23 = vst [vmem:[#allocation1 + $0x300] sm:$0x3] %v1314_v56  ;;  %v1346_v57 = vld [vmem:[%s1955_s0 + $0x80] sm:$0x3] }
  0x27   :  { %v1364_v58 = vld [vmem:[%s1955_s0 + $0x5c] sm:$0x3]  ;;  %s1488_s8 = smov 98   ;;  %s643_s9 = smov 3  ;;  %183 = vst [vmem:[#allocation1 + $0x200] sm:$0x3] %v1346_v57 }
  0x28   :  { %273 = vst [vmem:[#allocation1 + $0x170] sm:$0x3] %v1364_v58  ;;  %v1396_v59 = vld [vmem:[%s1955_s0 + $0x1c] sm:$0x3]  ;;  %v1315_v60 = vld [vmem:[%s1955_s0 + $0xbe] sm:$0x3] }
  0x29   :  { %617 = vrot.lane.b32.xlu0 %v616_v49, %s1488_s8  ;;  %s1489_s14 = smov 96   ;;  %v630_v61 = vld [vmem:[#allocation1 + $0xb9] ss:$400 sm:%s629_s27]   ;;  %433 = vst [vmem:[#allocation1 + $0x70] sm:$0x3] %v1396_v59  ;;  %s650_s23 = smov 3 }
  0x2a   :  { %624 = vrot.lane.b32.xlu1 %v623_v52, %s1489_s14  ;;  %28 = vst [vmem:[#allocation1 + $0x2f8] sm:$0x3] %v1315_v60  ;;  %v1347_v62 = vld [vmem:[%s1955_s0 + $0x7e] sm:$0x3]  ;;  %v1365_v63 = vld [vmem:[%s1955_s0 + $0x5a] sm:$0x3] }
  0x2b   :  { %v637_v0 = vld [vmem:[#allocation1 + $0xb8] ss:$400 sm:%s636_s3]   ;;  %188 = vst [vmem:[#allocation1 + $0x1f8] sm:$0x3] %v1347_v62  ;;  %278 = vst [vmem:[#allocation1 + $0x168] sm:$0x3] %v1365_v63 }
  0x2c   :  { %v1397_v1 = vld [vmem:[%s1955_s0 + $0x1a] sm:$0x3]  ;;  %v1316_v2 = vld [vmem:[%s1955_s0 + $0xbc] sm:$0x3]  ;;  %s1490_s24 = smov 94   ;;  %s1491_s25 = smov 92  }
  0x2d   :  { %438 = vst [vmem:[#allocation1 + $0x68] sm:$0x3] %v1397_v1  ;;  %33 = vst [vmem:[#allocation1 + $0x2f0] sm:$0x3] %v1316_v2  ;;  %631 = vrot.lane.b32.xlu0 %v630_v61, %s1490_s24  ;;  %v644_v3 = vld [vmem:[#allocation1 + $0xb1] ss:$400 sm:%s643_s9]  }
  0x2e   :  { %638 = vrot.lane.b32.xlu1 %v637_v0, %s1491_s25  ;;  %v651_v4 = vld [vmem:[#allocation1 + $0xb0] ss:$400 sm:%s650_s23]   ;;  %s657_s26 = smov 3  ;;  %s664_s27 = smov 3  ;;  %v1348_v5 = vld [vmem:[%s1955_s0 + $0x7c] sm:$0x3] }
  0x2f   :  { %s1492_s28 = smov 90   ;;  %s671_s29 = smov 3  ;;  %v658_v6 = vld [vmem:[#allocation1 + $0xa9] ss:$400 sm:%s657_s26]   ;;  %193 = vst [vmem:[#allocation1 + $0x1f0] sm:$0x3] %v1348_v5 }
  0x30   :  { %s1493_s3 = smov 88   ;;  %s678_s4 = smov 3  ;;  %v1366_v7 = vld [vmem:[%s1955_s0 + $0x58] sm:$0x3]  ;;  %v1317_v10 = vld [vmem:[%s1955_s0 + $0xba] sm:$0x3] }
  0x31   :  { %645 = vrot.lane.b32.xlu0 %v644_v3, %s1492_s28  ;;  %v665_v8 = vld [vmem:[#allocation1 + $0xa8] ss:$400 sm:%s664_s27]   ;;  %s1703_s7 = smov 3  ;;  %283 = vst [vmem:[#allocation1 + $0x160] sm:$0x3] %v1366_v7  ;;  %s1708_s10 = smov 3 }
  0x32   :  { %652 = vrot.lane.b32.xlu1 %v651_v4, %s1493_s3  ;;  %v1398_v9 = vld [vmem:[%s1955_s0 + $0x18] sm:$0x3]  ;;  %v1349_v11 = vld [vmem:[%s1955_s0 + $0x7a] sm:$0x3]  ;;  %s1494_s15 = smov 86   ;;  %s1716_s16 = smov 3 }
  0x33   :  { %443 = vst [vmem:[#allocation1 + $0x60] sm:$0x3] %v1398_v9  ;;  %38 = vst [vmem:[#allocation1 + $0x2e8] sm:$0x3] %v1317_v10  ;;  %v1367_v12 = vld [vmem:[%s1955_s0 + $0x56] sm:$0x3] }
  0x34   :  { %198 = vst [vmem:[#allocation1 + $0x1e8] sm:$0x3] %v1349_v11  ;;  %v1399_v13 = vld [vmem:[%s1955_s0 + $0x16] sm:$0x3]  ;;  %s1495_s21 = smov 84   ;;  %s706_s30 = smov 3 }
  0x35   :  { %659 = vrot.lane.b32.xlu0 %v658_v6, %s1494_s15  ;;  %v672_v14 = vld [vmem:[#allocation1 + $0xa1] ss:$400 sm:%s671_s29]   ;;  %288 = vst [vmem:[#allocation1 + $0x158] sm:$0x3] %v1367_v12  ;;  %448 = vst [vmem:[#allocation1 + $0x58] sm:$0x3] %v1399_v13 }
  0x36   :  { %666 = vrot.lane.b32.xlu1 %v665_v8, %s1495_s21  ;;  %v1318_v15 = vld [vmem:[%s1955_s0 + $0xb8] sm:$0x3]  ;;  %v679_v17 = vld [vmem:[#allocation1 + $0xa0] ss:$400 sm:%s678_s4]   ;;  %v1368_v18 = vld [vmem:[%s1955_s0 + $0x54] sm:$0x3] }
  0x37   :  { %v1350_v16 = vld [vmem:[%s1955_s0 + $0x78] sm:$0x3]  ;;  %43 = vst [vmem:[#allocation1 + $0x2e0] sm:$0x3] %v1318_v15  ;;  %v1400_v19 = vld [vmem:[%s1955_s0 + $0x14] sm:$0x3] }
  0x38   :  { %203 = vst [vmem:[#allocation1 + $0x1e0] sm:$0x3] %v1350_v16  ;;  %293 = vst [vmem:[#allocation1 + $0x150] sm:$0x3] %v1368_v18  ;;  %v1319_v20 = vld [vmem:[%s1955_s0 + $0xb6] sm:$0x3] }
  0x39   :  { %453 = vst [vmem:[#allocation1 + $0x50] sm:$0x3] %v1400_v19  ;;  %v1351_v21 = vld [vmem:[%s1955_s0 + $0x76] sm:$0x3]  ;;  %s1496_s6 = smov 82   ;;  %s713_s8 = smov 3 }
  0x3a   :  { %673 = vrot.lane.b32.xlu0 %v672_v14, %s1496_s6  ;;  %s1742_s9 = smov 12  ;;  %48 = vst [vmem:[#allocation1 + $0x2d8] sm:$0x3] %v1319_v20  ;;  %208 = vst [vmem:[#allocation1 + $0x1d8] sm:$0x3] %v1351_v21  ;;  %s1497_s15 = smov 80  }
  0x3b   :  { %v1369_v22 = vld [vmem:[%s1955_s0 + $0x52] sm:$0x3]  ;;  %680 = vrot.lane.b32.xlu1 %v679_v17, %s1497_s15  ;;  %v686_v24 = vld [vmem:[#allocation1 + $0x99] ss:$400 sm:%s1703_s7]   ;;  %s727_s7 = smov 3  ;;  %s744_s17 = smov 12 }
  0x3c   :  { %v1401_v23 = vld [vmem:[%s1955_s0 + $0x12] sm:$0x3]  ;;  %298 = vst [vmem:[#allocation1 + $0x148] sm:$0x3] %v1369_v22  ;;  %v693_v25 = vld [vmem:[#allocation1 + $0x98] ss:$400 sm:%s1708_s10]  }
  0x3d   :  { %458 = vst [vmem:[#allocation1 + $0x48] sm:$0x3] %v1401_v23  ;;  %s730_s10 = smov 12  ;;  %v700_v26 = vld [vmem:[#allocation1 + $0x91] ss:$400 sm:%s1716_s16]   ;;  %s1753_s16 = smov 3 }
  0x3e   :  { %v1320_v27 = vld [vmem:[%s1955_s0 + $0xb4] sm:$0x3]  ;;  %s1498_s22 = smov 78   ;;  %v707_v29 = vld [vmem:[#allocation1 + $0x90] ss:$400 sm:%s706_s30]   ;;  %s1761_s23 = smov 3 }
  0x3f   :  { %v1352_v28 = vld [vmem:[%s1955_s0 + $0x74] sm:$0x3]  ;;  %687 = vrot.lane.b32.xlu0 %v686_v24, %s1498_s22  ;;  %53 = vst [vmem:[#allocation1 + $0x2d0] sm:$0x3] %v1320_v27  ;;  %s1499_s24 = smov 76   ;;  %s758_s25 = smov 12 }
  0x40   :  { %213 = vst [vmem:[#allocation1 + $0x1d0] sm:$0x3] %v1352_v28  ;;  %694 = vrot.lane.b32.xlu1 %v693_v25, %s1499_s24  ;;  %v714_v30 = vld [vmem:[#allocation1 + $0x89] ss:$400 sm:%s713_s8]   ;;  %v1370_v31 = vld [vmem:[%s1955_s0 + $0x50] sm:$0x3] }
  0x41   :  { %v717_v32 = vld [vmem:[#allocation1 - $0x197] ss:$400 sm:%s1742_s9]   ;;  %v728_v33 = vld [vmem:[#allocation1 + $0x88] ss:$400 sm:%s727_s7]   ;;  %s1767_s28 = smov 3  ;;  %s1769_s29 = smov 12 }
  0x42   :  { %303 = vst [vmem:[#allocation1 + $0x140] sm:$0x3] %v1370_v31  ;;  %v731_v34 = vld [vmem:[#allocation1 - $0x198] ss:$400 sm:%s730_s10]   ;;  %s1771_s30 = smov 3  ;;  %s1500_s4 = smov 74   ;;  %v719_v36 = vsel %vm718_vm0, %v717_v32, %v714_v30 }
  0x43   :  { %v1402_v35 = vld [vmem:[%s1955_s0 + $0x10] sm:$0x3]  ;;  %701 = vrot.lane.b32.xlu0 %v700_v26, %s1500_s4  ;;  %s1776_s5 = smov 12  ;;  %s1501_s6 = smov 72   ;;  %v1321_v39 = vld [vmem:[%s1955_s0 + $0xb2] sm:$0x3]  ;;  %v733_v40 = vsel %vm718_vm0, %v731_v34, %v728_v33 }
  0x44   :  { %463 = vst [vmem:[#allocation1 + $0x40] sm:$0x3] %v1402_v35  ;;  %708 = vrot.lane.b32.xlu1 %v707_v29, %s1501_s6  ;;  %v745_v37 = vld [vmem:[#allocation1 - $0x19f] ss:$400 sm:%s744_s17]   ;;  %v759_v38 = vld [vmem:[#allocation1 - $0x1a0] ss:$400 sm:%s758_s25]  }
  0x45   :  { %v742_v41 = vld [vmem:[#allocation1 + $0x81] ss:$400 sm:%s1753_s16]   ;;  %58 = vst [vmem:[#allocation1 + $0x2c8] sm:$0x3] %v1321_v39  ;;  %v1353_v42 = vld [vmem:[%s1955_s0 + $0x72] sm:$0x3] }
  0x46   :  { %v1371_v43 = vld [vmem:[%s1955_s0 + $0x4e] sm:$0x3]  ;;  %v756_v44 = vld [vmem:[#allocation1 + $0x80] ss:$400 sm:%s1761_s23]   ;;  %218 = vst [vmem:[#allocation1 + $0x1c8] sm:$0x3] %v1353_v42  ;;  %v747_v49 = vsel %vm718_vm0, %v745_v37, %v742_v41 }
  0x47   :  { %308 = vst [vmem:[#allocation1 + $0x138] sm:$0x3] %v1371_v43  ;;  %v1403_v45 = vld [vmem:[%s1955_s0 + $0xe] sm:$0x3]  ;;  %v1322_v46 = vld [vmem:[%s1955_s0 + $0xb0] sm:$0x3]  ;;  %v761_v51 = vsel %vm718_vm0, %v759_v38, %v756_v44 }
  0x48   :  { %s1502_s17 = smov 70   ;;  %s1797_s18 = smov 3  ;;  %468 = vst [vmem:[#allocation1 + $0x38] sm:$0x3] %v1403_v45  ;;  %63 = vst [vmem:[#allocation1 + $0x2c0] sm:$0x3] %v1322_v46 }
  0x49   :  { %720 = vrot.lane.b32.xlu0 %v719_v36, %s1502_s17  ;;  %s1799_s19 = smov 12  ;;  %v1354_v47 = vld [vmem:[%s1955_s0 + $0x70] sm:$0x3]  ;;  %v1372_v48 = vld [vmem:[%s1955_s0 + $0x4c] sm:$0x3]  ;;  %s1503_s24 = smov 68  }
  0x4a   :  { %734 = vrot.lane.b32.xlu1 %v733_v40, %s1503_s24  ;;  %v773_v50 = vld [vmem:[#allocation1 - $0x1a7] ss:$400 sm:%s1769_s29]   ;;  %s1809_s25 = smov 3  ;;  %223 = vst [vmem:[#allocation1 + $0x1c0] sm:$0x3] %v1354_v47  ;;  %s1504_s2 = smov 66  }
  0x4b   :  { %313 = vst [vmem:[#allocation1 + $0x130] sm:$0x3] %v1372_v48  ;;  %v770_v52 = vld [vmem:[#allocation1 + $0x79] ss:$400 sm:%s1767_s28]   ;;  %v1404_v53 = vld [vmem:[%s1955_s0 + $0xc] sm:$0x3] }
  0x4c   :  { %v1323_v54 = vld [vmem:[%s1955_s0 + $0xae] sm:$0x3]  ;;  %v784_v55 = vld [vmem:[#allocation1 + $0x78] ss:$400 sm:%s1771_s30]   ;;  %s814_s30 = smov 12  ;;  %s825_s3 = smov 3  ;;  %v775_v59 = vsel %vm718_vm0, %v773_v50, %v770_v52 }
  0x4d   :  { %v787_v56 = vld [vmem:[#allocation1 - $0x1a8] ss:$400 sm:%s1776_s5]   ;;  %473 = vst [vmem:[#allocation1 + $0x30] sm:$0x3] %v1404_v53  ;;  %68 = vst [vmem:[#allocation1 + $0x2b8] sm:$0x3] %v1323_v54  ;;  %748 = vrot.lane.b32.xlu0 %v747_v49, %s1504_s2 }
  0x4e   :  { %s828_s4 = smov 12  ;;  %v1355_v57 = vld [vmem:[%s1955_s0 + $0x6e] sm:$0x3]  ;;  %v1373_v58 = vld [vmem:[%s1955_s0 + $0x4a] sm:$0x3]  ;;  %s1505_s11 = smov 64   ;;  %v789_v62 = vsel %vm718_vm0, %v787_v56, %v784_v55 }
  0x4f   :  { %762 = vrot.lane.b32.xlu1 %v761_v51, %s1505_s11  ;;  %s839_s12 = smov 3  ;;  %228 = vst [vmem:[#allocation1 + $0x1b8] sm:$0x3] %v1355_v57  ;;  %318 = vst [vmem:[#allocation1 + $0x128] sm:$0x3] %v1373_v58  ;;  %s842_s10 = smov 12 }
  0x50   :  { %v1405_v60 = vld [vmem:[%s1955_s0 + $0xa] sm:$0x3]  ;;  %v1324_v61 = vld [vmem:[%s1955_s0 + $0xac] sm:$0x3]  ;;  %v798_v63 = vld [vmem:[#allocation1 + $0x71] ss:$400 sm:%s1797_s18]  }
  0x51   :  { %v801_v0 = vld [vmem:[#allocation1 - $0x1af] ss:$400 sm:%s1799_s19]   ;;  %478 = vst [vmem:[#allocation1 + $0x28] sm:$0x3] %v1405_v60  ;;  %73 = vst [vmem:[#allocation1 + $0x2b0] sm:$0x3] %v1324_v61 }
  0x52   :  { %v812_v1 = vld [vmem:[#allocation1 + $0x70] ss:$400 sm:%s1809_s25]   ;;  %s1838_s16 = smov 3  ;;  %s1840_s17 = smov 12  ;;  %v826_v3 = vld [vmem:[#allocation1 + $0x69] ss:$400 sm:%s825_s3]   ;;  %v803_v5 = vsel %vm718_vm0, %v801_v0, %v798_v63 }
  0x53   :  { %v815_v2 = vld [vmem:[#allocation1 - $0x1b0] ss:$400 sm:%s814_s30]   ;;  %s1506_s18 = smov 62   ;;  %v829_v4 = vld [vmem:[#allocation1 - $0x1b7] ss:$400 sm:%s828_s4]   ;;  %s1842_s19 = smov 3 }
  0x54   :  { %776 = vrot.lane.b32.xlu0 %v775_v59, %s1506_s18  ;;  %s1507_s20 = smov 60   ;;  %v843_v6 = vld [vmem:[#allocation1 - $0x1b8] ss:$400 sm:%s842_s10]   ;;  %s870_s21 = smov 12  ;;  %v1356_v7 = vld [vmem:[%s1955_s0 + $0x6c] sm:$0x3]  ;;  %v817_v9 = vsel %vm718_vm0, %v815_v2, %v812_v1  ;;  %v831_v14 = vsel %vm718_vm0, %v829_v4, %v826_v3 }
  0x55   :  { %790 = vrot.lane.b32.xlu1 %v789_v62, %s1507_s20  ;;  %v1374_v8 = vld [vmem:[%s1955_s0 + $0x48] sm:$0x3]  ;;  %s1852_s26 = smov 3  ;;  %s1854_s27 = smov 12  ;;  %233 = vst [vmem:[#allocation1 + $0x1b0] sm:$0x3] %v1356_v7 }
  0x56   :  { %v840_v10 = vld [vmem:[#allocation1 + $0x68] ss:$400 sm:%s839_s12]   ;;  %323 = vst [vmem:[#allocation1 + $0x120] sm:$0x3] %v1374_v8  ;;  %s1859_s30 = smov 3  ;;  %s1508_s6 = smov 58  }
  0x57   :  { %v1406_v11 = vld [vmem:[%s1955_s0 + $0x8] sm:$0x3]  ;;  %v1325_v12 = vld [vmem:[%s1955_s0 + $0xaa] sm:$0x3]  ;;  %s1867_s8 = smov 12  ;;  %s1509_s9 = smov 56   ;;  %v845_v18 = vsel %vm718_vm0, %v843_v6, %v840_v10 }
  0x58   :  { %483 = vst [vmem:[#allocation1 + $0x20] sm:$0x3] %v1406_v11  ;;  %v1357_v13 = vld [vmem:[%s1955_s0 + $0x6a] sm:$0x3]  ;;  %804 = vrot.lane.b32.xlu0 %v803_v5, %s1508_s6  ;;  %78 = vst [vmem:[#allocation1 + $0x2a8] sm:$0x3] %v1325_v12 }
  0x59   :  { %238 = vst [vmem:[#allocation1 + $0x1a8] sm:$0x3] %v1357_v13  ;;  %818 = vrot.lane.b32.xlu1 %v817_v9, %s1509_s9  ;;  %v854_v15 = vld [vmem:[#allocation1 + $0x61] ss:$400 sm:%s1838_s16]   ;;  %v871_v17 = vld [vmem:[#allocation1 - $0x1c0] ss:$400 sm:%s870_s21]  }
  0x5a   :  { %v857_v16 = vld [vmem:[#allocation1 - $0x1bf] ss:$400 sm:%s1840_s17]   ;;  %v868_v19 = vld [vmem:[#allocation1 + $0x60] ss:$400 sm:%s1842_s19]   ;;  %v1375_v20 = vld [vmem:[%s1955_s0 + $0x46] sm:$0x3] }
  0x5b   :  { %v1407_v21 = vld [vmem:[%s1955_s0 + $0x6] sm:$0x3]  ;;  %328 = vst [vmem:[#allocation1 + $0x118] sm:$0x3] %v1375_v20  ;;  %v1360_v22 = vld [vmem:[%s1955_s0 + $0x64] sm:$0x3]  ;;  %v859_v26 = vsel %vm718_vm0, %v857_v16, %v854_v15  ;;  %v873_v29 = vsel %vm718_vm0, %v871_v17, %v868_v19 }
  0x5c   :  { %488 = vst [vmem:[#allocation1 + $0x18] sm:$0x3] %v1407_v21  ;;  %v1378_v23 = vld [vmem:[%s1955_s0 + $0x40] sm:$0x3]  ;;  %s1510_s19 = smov 54   ;;  %s909_s20 = smov 3 }
  0x5d   :  { %v498_v24 = vld [vmem:[%s1955_s0] sm:$0x3]  ;;  %832 = vrot.lane.b32.xlu0 %v831_v14, %s1510_s19  ;;  %s912_s21 = smov 12  ;;  %253 = vst [vmem:[#allocation1 + $0x190] sm:$0x3] %v1360_v22  ;;  %s1511_s24 = smov 52  }
  0x5e   :  { %343 = vst [vmem:[#allocation1 + $0x100] sm:$0x3] %v1378_v23  ;;  %499 = vst [vmem:[#allocation1] sm:$0x3] %v498_v24  ;;  %v1328_v25 = vld [vmem:[%s1955_s0 + $0xa4] sm:$0x3]  ;;  %846 = vrot.lane.b32.xlu1 %v845_v18, %s1511_s24 }
  0x5f   :  { %v882_v27 = vld [vmem:[#allocation1 + $0x59] ss:$400 sm:%s1852_s26]   ;;  %s923_s25 = smov 3  ;;  %s926_s26 = smov 12  ;;  %93 = vst [vmem:[#allocation1 + $0x290] sm:$0x3] %v1328_v25 }
  0x60   :  { %v885_v28 = vld [vmem:[#allocation1 - $0x1c7] ss:$400 sm:%s1854_s27]   ;;  %v896_v30 = vld [vmem:[#allocation1 + $0x58] ss:$400 sm:%s1859_s30]   ;;  %v1376_v34 = vld [vmem:[%s1955_s0 + $0x44] sm:$0x3] }
  0x61   :  { %v899_v31 = vld [vmem:[#allocation1 - $0x1c8] ss:$400 sm:%s1867_s8]   ;;  %v1408_v35 = vld [vmem:[%s1955_s0 + $0x4] sm:$0x3]  ;;  %s1512_s6 = smov 50   ;;  %s1513_s11 = smov 48   ;;  %v887_v39 = vsel %vm718_vm0, %v885_v28, %v882_v27 }
  0x62   :  { %v1326_v32 = vld [vmem:[%s1955_s0 + $0xa8] sm:$0x3]  ;;  %860 = vrot.lane.b32.xlu0 %v859_v26, %s1512_s6  ;;  %v910_v36 = vld [vmem:[#allocation1 + $0x51] ss:$400 sm:%s909_s20]   ;;  %333 = vst [vmem:[#allocation1 + $0x110] sm:$0x3] %v1376_v34  ;;  %874 = vrot.lane.b32.xlu1 %v873_v29, %s1513_s11  ;;  %v901_v42 = vsel %vm718_vm0, %v899_v31, %v896_v30 }
  0x63   :  { %83 = vst [vmem:[#allocation1 + $0x2a0] sm:$0x3] %v1326_v32  ;;  %v1358_v33 = vld [vmem:[%s1955_s0 + $0x68] sm:$0x3]  ;;  %v913_v37 = vld [vmem:[#allocation1 - $0x1cf] ss:$400 sm:%s912_s21]  }
  0x64   :  { %243 = vst [vmem:[#allocation1 + $0x1a0] sm:$0x3] %v1358_v33  ;;  %493 = vst [vmem:[#allocation1 + $0x10] sm:$0x3] %v1408_v35  ;;  %v1327_v38 = vld [vmem:[%s1955_s0 + $0xa6] sm:$0x3]  ;;  %v915_v50 = vsel %vm718_vm0, %v913_v37, %v910_v36 }
  0x65   :  { %s937_s12 = smov 3  ;;  %88 = vst [vmem:[#allocation1 + $0x298] sm:$0x3] %v1327_v38  ;;  %v1359_v40 = vld [vmem:[%s1955_s0 + $0x66] sm:$0x3]  ;;  %s940_s10 = smov 12 }
  0x66   :  { %v1377_v41 = vld [vmem:[%s1955_s0 + $0x42] sm:$0x3]  ;;  %v924_v43 = vld [vmem:[#allocation1 + $0x50] ss:$400 sm:%s923_s25]   ;;  %248 = vst [vmem:[#allocation1 + $0x198] sm:$0x3] %v1359_v40 }
  0x67   :  { %v927_v44 = vld [vmem:[#allocation1 - $0x1d0] ss:$400 sm:%s926_s26]   ;;  %338 = vst [vmem:[#allocation1 + $0x108] sm:$0x3] %v1377_v41  ;;  %s1514_s16 = smov 46   ;;  %s951_s17 = smov 3 }
  0x68   :  { %v500_v45 = vld [vmem:[#allocation1] sm:$0x1]   ;;  %v508_v47 = vld [vmem:[#allocation1 + $0x190] sm:$0x1]   ;;  %888 = vrot.lane.b32.xlu0 %v887_v39, %s1514_s16  ;;  %s954_s18 = smov 12  ;;  %s1515_s19 = smov 44   ;;  %v929_v53 = vsel %vm718_vm0, %v927_v44, %v924_v43 }
  0x69   :  { %v502_v46 = vld [vmem:[#allocation1 + $0xff] sm:$0x2]   ;;  %v510_v49 = vld [vmem:[#allocation1 + $0x28f] sm:$0x2]   ;;  %902 = vrot.lane.b32.xlu1 %v901_v42, %s1515_s19  ;;  %v1409_v52 = vld [vmem:[%s1955_s0 + $0x2] sm:$0x3] }
  0x6a   :  { %v504_v48 = vsel %vm503_vm1, %v502_v46, %v500_v45  ;;  %v512_v51 = vsel %vm503_vm1, %v510_v49, %v508_v47  ;;  %v938_v54 = vld [vmem:[#allocation1 + $0x49] ss:$400 sm:%s937_s12]   ;;  %497 = vst [vmem:[#allocation1 + $0x8] sm:$0x3] %v1409_v52  ;;  %v952_v56 = vld [vmem:[#allocation1 + $0x48] ss:$400 sm:%s951_s17]  }
  0x6b   :  { %506 = vst.msk [vmem:[#allocation0] ss:$8 sm:$0x3] %vm505_vm2, %v504_v48   ;;  %v941_v55 = vld [vmem:[#allocation1 - $0x1d7] ss:$400 sm:%s940_s10]   ;;  %s965_s0 = smov 3 }
  0x6c   :  { %515 = vst.msk [vmem:[#allocation0 + $0x1] ss:$8 sm:$0x3] %vm505_vm2, %v512_v51   ;;  %v955_v57 = vld [vmem:[#allocation1 - $0x1d8] ss:$400 sm:%s954_s18]   ;;  %s968_s22 = smov 12  ;;  %v943_v58 = vsel %vm718_vm0, %v941_v55, %v938_v54 }
  0x6d   :  { %s1516_s23 = smov 42   ;;  %s979_s24 = smov 3  ;;  %v957_v59 = vsel %vm718_vm0, %v955_v57, %v952_v56  ;;  %v966_v60 = vld [vmem:[#allocation1 + $0x41] ss:$400 sm:%s965_s0]   ;;  %vm528_vm4 = vcmask 1032160   ;;  %vm535_vm5 = vcmask 1015760  }
  0x6e   :  { %916 = vrot.lane.b32.xlu0 %v915_v50, %s1516_s23  ;;  %s982_s25 = smov 12  ;;  %s1517_s26 = smov 40   ;;  %v969_v61 = vld [vmem:[#allocation1 - $0x1df] ss:$400 sm:%s968_s22]   ;;  %v980_v62 = vld [vmem:[#allocation1 + $0x40] ss:$400 sm:%s979_s24]  }
  0x6f   :  { %930 = vrot.lane.b32.xlu1 %v929_v53, %s1517_s26  ;;  %v983_v63 = vld [vmem:[#allocation1 - $0x1e0] ss:$400 sm:%s982_s25]   ;;  %s993_s27 = smov 3  ;;  %s996_s28 = smov 12  ;;  %v971_v0 = vsel %vm718_vm0, %v969_v61, %v966_v60  ;;  %vm542_vm6 = vcmask 999360   ;;  %vm549_vm7 = vcmask 982960  }
  0x70   :  { %s1518_s29 = smov 38   ;;  %s1007_s30 = smov 3  ;;  %v985_v1 = vsel %vm718_vm0, %v983_v63, %v980_v62  ;;  %v994_v2 = vld [vmem:[#allocation1 + $0x39] ss:$400 sm:%s993_s27]   ;;  %vm556_vm8 = vcmask 966560   ;;  %vm563_vm9 = vcmask 950160  }
  0x71   :  { %s1010_s2 = smov 12  ;;  %s1519_s3 = smov 36   ;;  %v997_v3 = vld [vmem:[#allocation1 - $0x1e7] ss:$400 sm:%s996_s28]   ;;  %v1008_v4 = vld [vmem:[#allocation1 + $0x38] ss:$400 sm:%s1007_s30]  }
  0x72   :  { %944 = vrot.lane.b32.xlu0 %v943_v58, %s1518_s29  ;;  %v1011_v5 = vld [vmem:[#allocation1 - $0x1e8] ss:$400 sm:%s1010_s2]   ;;  %s1021_s4 = smov 3  ;;  %s1024_s5 = smov 12  ;;  %v999_v6 = vsel %vm718_vm0, %v997_v3, %v994_v2  ;;  %vm570_vm10 = vcmask 933760   ;;  %vm577_vm11 = vcmask 917360  }
  0x73   :  { %958 = vrot.lane.b32.xlu1 %v957_v59, %s1519_s3  ;;  %s1520_s6 = smov 34   ;;  %s1035_s8 = smov 3  ;;  %v1013_v7 = vsel %vm718_vm0, %v1011_v5, %v1008_v4  ;;  %v1022_v8 = vld [vmem:[#allocation1 + $0x31] ss:$400 sm:%s1021_s4]   ;;  %vm584_vm12 = vcmask 900960   ;;  %vm591_vm13 = vcmask 884560  }
  0x74   :  { %s1038_s9 = smov 12  ;;  %s1521_s11 = smov 32   ;;  %v1025_v9 = vld [vmem:[#allocation1 - $0x1ef] ss:$400 sm:%s1024_s5]   ;;  %v1036_v10 = vld [vmem:[#allocation1 + $0x30] ss:$400 sm:%s1035_s8]  }
  0x75   :  { %v1039_v11 = vld [vmem:[#allocation1 - $0x1f0] ss:$400 sm:%s1038_s9]   ;;  %s1049_s12 = smov 3  ;;  %s1052_s13 = smov 12  ;;  %v1027_v12 = vsel %vm718_vm0, %v1025_v9, %v1022_v8  ;;  %vm598_vm14 = vcmask 868160   ;;  %vm605_vm15 = vcmask 851760  }
  0x76   :  { %972 = vrot.lane.b32.xlu0 %v971_v0, %s1520_s6  ;;  %s1522_s14 = smov 30   ;;  %s1063_s15 = smov 3  ;;  %v1041_v13 = vsel %vm718_vm0, %v1039_v11, %v1036_v10  ;;  %v1050_v14 = vld [vmem:[#allocation1 + $0x29] ss:$400 sm:%s1049_s12]   ;;  %vm619_vm1 = vcmask 818960   ;;  %vm626_vm2 = vcmask 802560  }
  0x77   :  { %986 = vrot.lane.b32.xlu1 %v985_v1, %s1521_s11  ;;  %s1066_s7 = smov 12  ;;  %s1523_s10 = smov 28   ;;  %v1053_v15 = vld [vmem:[#allocation1 - $0x1f7] ss:$400 sm:%s1052_s13]   ;;  %v1064_v16 = vld [vmem:[#allocation1 + $0x28] ss:$400 sm:%s1063_s15]  }
  0x78   :  { %v1067_v17 = vld [vmem:[#allocation1 - $0x1f8] ss:$400 sm:%s1066_s7]   ;;  %s1077_s16 = smov 3  ;;  %s1080_s17 = smov 12  ;;  %v1055_v18 = vsel %vm718_vm0, %v1053_v15, %v1050_v14 }
  0x79   :  { %s1524_s18 = smov 26   ;;  %s1091_s19 = smov 3  ;;  %v1069_v19 = vsel %vm718_vm0, %v1067_v17, %v1064_v16  ;;  %v1078_v20 = vld [vmem:[#allocation1 + $0x21] ss:$400 sm:%s1077_s16]  }
  0x7a   :  { %1000 = vrot.lane.b32.xlu0 %v999_v6, %s1522_s14  ;;  %s1094_s20 = smov 12  ;;  %s1525_s21 = smov 24   ;;  %v1081_v21 = vld [vmem:[#allocation1 - $0x1ff] ss:$400 sm:%s1080_s17]   ;;  %v1092_v22 = vld [vmem:[#allocation1 + $0x20] ss:$400 sm:%s1091_s19]  }
  0x7b   :  { %1014 = vrot.lane.b32.xlu1 %v1013_v7, %s1523_s10  ;;  %v1095_v23 = vld [vmem:[#allocation1 - $0x200] ss:$400 sm:%s1094_s20]   ;;  %s1105_s0 = smov 3  ;;  %s1108_s22 = smov 12  ;;  %v1083_v24 = vsel %vm718_vm0, %v1081_v21, %v1078_v20 }
  0x7c   :  { %s1526_s23 = smov 22   ;;  %s1119_s24 = smov 3  ;;  %v1097_v25 = vsel %vm718_vm0, %v1095_v23, %v1092_v22  ;;  %v1106_v26 = vld [vmem:[#allocation1 + $0x19] ss:$400 sm:%s1105_s0]  }
  0x7d   :  { %s1122_s25 = smov 12  ;;  %s1527_s26 = smov 20   ;;  %v1109_v27 = vld [vmem:[#allocation1 - $0x207] ss:$400 sm:%s1108_s22]   ;;  %v1120_v28 = vld [vmem:[#allocation1 + $0x18] ss:$400 sm:%s1119_s24]  }
  0x7e   :  { %1028 = vrot.lane.b32.xlu0 %v1027_v12, %s1524_s18  ;;  %v1123_v29 = vld [vmem:[#allocation1 - $0x208] ss:$400 sm:%s1122_s25]   ;;  %s1133_s27 = smov 3  ;;  %s1136_s28 = smov 12  ;;  %v1111_v30 = vsel %vm718_vm0, %v1109_v27, %v1106_v26 }
  0x7f   :  { %1042 = vrot.lane.b32.xlu1 %v1041_v13, %s1525_s21  ;;  %s1528_s29 = smov 18   ;;  %s1147_s30 = smov 3  ;;  %v1125_v31 = vsel %vm718_vm0, %v1123_v29, %v1120_v28  ;;  %v1134_v32 = vld [vmem:[#allocation1 + $0x11] ss:$400 sm:%s1133_s27]   ;;  %v520_v37 = vpop.permute.xlu0 %519   ;;  %v534_v41 = vpop.permute.xlu1 %533  }
  0x80   :  { %s1150_s2 = smov 12  ;;  %s1529_s3 = smov 16   ;;  %v1137_v33 = vld [vmem:[#allocation1 - $0x20f] ss:$400 sm:%s1136_s28]   ;;  %v1148_v34 = vld [vmem:[#allocation1 + $0x10] ss:$400 sm:%s1147_s30]  }
  0x81   :  { %v1151_v35 = vld [vmem:[#allocation1 - $0x210] ss:$400 sm:%s1150_s2]   ;;  %s1161_s4 = smov 3  ;;  %s1164_s5 = smov 12  ;;  %v1139_v36 = vsel %vm718_vm0, %v1137_v33, %v1134_v32  ;;  %522 = vst.msk [vmem:[#allocation0] sm:$0x3] %vm521_vm3, %v520_v37  }
  0x82   :  { %1056 = vrot.lane.b32.xlu0 %v1055_v18, %s1526_s23  ;;  %s1530_s6 = smov 14   ;;  %s1175_s8 = smov 3  ;;  %v1153_v38 = vsel %vm718_vm0, %v1151_v35, %v1148_v34  ;;  %v1162_v39 = vld [vmem:[#allocation1 + $0x9] ss:$400 sm:%s1161_s4]   ;;  %vm633_vm3 = vcmask 786160  }
  0x83   :  { %1070 = vrot.lane.b32.xlu1 %v1069_v19, %s1527_s26  ;;  %s1178_s9 = smov 12  ;;  %s1531_s11 = smov 12   ;;  %v1165_v40 = vld [vmem:[#allocation1 - $0x217] ss:$400 sm:%s1164_s5]   ;;  %v1176_v42 = vld [vmem:[#allocation1 + $0x8] ss:$400 sm:%s1175_s8]   ;;  %v527_v45 = vpop.permute.xlu0 %526   ;;  %v541_v49 = vpop.permute.xlu1 %540  }
  0x84   :  { %v1179_v43 = vld [vmem:[#allocation1 - $0x218] ss:$400 sm:%s1178_s9]   ;;  %s1189_s12 = smov 3  ;;  %s1192_s13 = smov 12  ;;  %v1167_v44 = vsel %vm718_vm0, %v1165_v40, %v1162_v39  ;;  %529 = vst.msk [vmem:[#allocation0] sm:$0x3] %vm528_vm4, %v527_v45  }
  0x85   :  { %s1532_s14 = smov 10   ;;  %s1533_s15 = smov 8   ;;  %v1181_v46 = vsel %vm718_vm0, %v1179_v43, %v1176_v42  ;;  %v1190_v47 = vld [vmem:[#allocation1 + $0x1] ss:$400 sm:%s1189_s12]   ;;  %536 = vst.msk [vmem:[#allocation0] sm:$0x3] %vm535_vm5, %v534_v41  }
  0x86   :  { %1084 = vrot.lane.b32.xlu0 %v1083_v24, %s1528_s29  ;;  %v1193_v48 = vld [vmem:[#allocation1 - $0x21f] ss:$400 sm:%s1192_s13]   ;;  %s1534_s7 = smov 6   ;;  %543 = vst.msk [vmem:[#allocation0] sm:$0x3] %vm542_vm6, %v541_v49   ;;  %s1535_s10 = smov 4  }
  0x87   :  { %1098 = vrot.lane.b32.xlu1 %v1097_v25, %s1529_s3  ;;  %v1195_v50 = vsel %vm718_vm0, %v1193_v48, %v1190_v47  ;;  %v548_v51 = vpop.permute.xlu0 %547   ;;  %v555_v52 = vpop.permute.xlu1 %554   ;;  %s1536_s16 = smov 2   ;;  %vm612_vm0 = vcmask 835360   ;;  %vm640_vm4 = vcmask 769760   ;;  %vm647_vm5 = vcmask 753360  }
  0x88   :  { %550 = vst.msk [vmem:[#allocation0] sm:$0x3] %vm549_vm7, %v548_v51   ;;  %vm654_vm6 = vcmask 736960   ;;  %vm661_vm7 = vcmask 720560  }
  0x89   :  { %557 = vst.msk [vmem:[#allocation0] sm:$0x3] %vm556_vm8, %v555_v52   ;;  %vm668_vm8 = vcmask 704160  }
  0x8a   :  { %1112 = vrot.lane.b32.xlu0 %v1111_v30, %s1530_s6 }
  0x8b   :  { %1126 = vrot.lane.b32.xlu1 %v1125_v31, %s1531_s11  ;;  %v562_v53 = vpop.permute.xlu0 %561   ;;  %v569_v54 = vpop.permute.xlu1 %568  }
  0x8c   :  { %564 = vst.msk [vmem:[#allocation0] sm:$0x3] %vm563_vm9, %v562_v53   ;;  %vm675_vm9 = vcmask 687760  }
  0x8d   :  { %571 = vst.msk [vmem:[#allocation0] sm:$0x3] %vm570_vm10, %v569_v54   ;;  %vm682_vm10 = vcmask 671360  }
  0x8e   :  { %1140 = vrot.lane.b32.xlu0 %v1139_v36, %s1532_s14 }
  0x8f   :  { %1154 = vrot.lane.b32.xlu1 %v1153_v38, %s1533_s15  ;;  %v576_v55 = vpop.permute.xlu0 %575   ;;  %v583_v56 = vpop.permute.xlu1 %582  }
  0x90   :  { %578 = vst.msk [vmem:[#allocation0] sm:$0x3] %vm577_vm11, %v576_v55   ;;  %vm689_vm11 = vcmask 654960  }
  0x91   :  { %585 = vst.msk [vmem:[#allocation0] sm:$0x3] %vm584_vm12, %v583_v56   ;;  %vm696_vm12 = vcmask 638560  }
  0x92   :  { %1168 = vrot.lane.b32.xlu0 %v1167_v44, %s1534_s7 }
  0x93   :  { %1182 = vrot.lane.b32.xlu1 %v1181_v46, %s1535_s10  ;;  %v590_v57 = vpop.permute.xlu0 %589   ;;  %v597_v58 = vpop.permute.xlu1 %596  }
  0x94   :  { %592 = vst.msk [vmem:[#allocation0] sm:$0x3] %vm591_vm13, %v590_v57   ;;  %vm703_vm13 = vcmask 622160  }
  0x95   :  { %599 = vst.msk [vmem:[#allocation0] sm:$0x3] %vm598_vm14, %v597_v58   ;;  %vm710_vm14 = vcmask 605760  }
  0x96   :  { %1196 = vrot.lane.b32.xlu0 %v1195_v50, %s1536_s16 }
  0x97   :  { %v604_v59 = vpop.permute.xlu0 %603   ;;  %v611_v60 = vpop.permute.xlu1 %610  }
  0x98   :  { %606 = vst.msk [vmem:[#allocation0] sm:$0x3] %vm605_vm15, %v604_v59   ;;  %vm722_vm15 = vcmask 589360  }
  0x99   :  { %613 = vst.msk [vmem:[#allocation0] sm:$0x3] %vm612_vm0, %v611_v60   ;;  %vm736_vm0 = vcmask 572960  }
  0x9b   :  { %v618_v61 = vpop.permute.xlu0 %617  }
  0x9c   :  { %620 = vst.msk [vmem:[#allocation0] sm:$0x3] %vm619_vm1, %v618_v61   ;;  %v625_v62 = vpop.permute.xlu1 %624   ;;  %vm750_vm1 = vcmask 556560  }
  0x9d   :  { %627 = vst.msk [vmem:[#allocation0] sm:$0x3] %vm626_vm2, %v625_v62   ;;  %vm764_vm2 = vcmask 540160  }
  0x9f   :  { %v632_v63 = vpop.permute.xlu0 %631  }
  0xa0   :  { %634 = vst.msk [vmem:[#allocation0] sm:$0x3] %vm633_vm3, %v632_v63   ;;  %v639_v0 = vpop.permute.xlu1 %638   ;;  %vm778_vm3 = vcmask 523760  }
  0xa1   :  { %641 = vst.msk [vmem:[#allocation0] sm:$0x3] %vm640_vm4, %v639_v0   ;;  %vm792_vm4 = vcmask 507360  }
  0xa3   :  { %v646_v1 = vpop.permute.xlu0 %645  }
  0xa4   :  { %648 = vst.msk [vmem:[#allocation0] sm:$0x3] %vm647_vm5, %v646_v1   ;;  %v653_v2 = vpop.permute.xlu1 %652   ;;  %vm806_vm5 = vcmask 490960  }
  0xa5   :  { %655 = vst.msk [vmem:[#allocation0] sm:$0x3] %vm654_vm6, %v653_v2   ;;  %vm820_vm6 = vcmask 474560  }
  0xa7   :  { %v660_v3 = vpop.permute.xlu0 %659  }
  0xa8   :  { %662 = vst.msk [vmem:[#allocation0] sm:$0x3] %vm661_vm7, %v660_v3   ;;  %v667_v4 = vpop.permute.xlu1 %666   ;;  %vm834_vm7 = vcmask 458160  }
  0xa9   :  { %669 = vst.msk [vmem:[#allocation0] sm:$0x3] %vm668_vm8, %v667_v4   ;;  %vm848_vm8 = vcmask 441760  }
  0xac   :  { %v674_v5 = vpop.permute.xlu0 %673  }
  0xad   :  { %676 = vst.msk [vmem:[#allocation0] sm:$0x3] %vm675_vm9, %v674_v5   ;;  %v681_v6 = vpop.permute.xlu1 %680   ;;  %vm862_vm9 = vcmask 425360  }
  0xae   :  { %683 = vst.msk [vmem:[#allocation0] sm:$0x3] %vm682_vm10, %v681_v6   ;;  %vm876_vm10 = vcmask 408960  }
  0xb1   :  { %v688_v7 = vpop.permute.xlu0 %687  }
  0xb2   :  { %690 = vst.msk [vmem:[#allocation0] sm:$0x3] %vm689_vm11, %v688_v7   ;;  %v695_v8 = vpop.permute.xlu1 %694   ;;  %vm890_vm11 = vcmask 392560  }
  0xb3   :  { %697 = vst.msk [vmem:[#allocation0] sm:$0x3] %vm696_vm12, %v695_v8   ;;  %vm904_vm12 = vcmask 376160  }
  0xb5   :  { %v702_v9 = vpop.permute.xlu0 %701  }
  0xb6   :  { %704 = vst.msk [vmem:[#allocation0] sm:$0x3] %vm703_vm13, %v702_v9   ;;  %v709_v10 = vpop.permute.xlu1 %708   ;;  %vm918_vm13 = vcmask 359760  }
  0xb7   :  { %711 = vst.msk [vmem:[#allocation0] sm:$0x3] %vm710_vm14, %v709_v10   ;;  %vm932_vm14 = vcmask 343360  }
  0xbb   :  { %v721_v11 = vpop.permute.xlu0 %720  }
  0xbc   :  { %723 = vst.msk [vmem:[#allocation0] sm:$0x3] %vm722_vm15, %v721_v11   ;;  %725 = vst.msk [vmem:[#allocation0 + $0x6] sm:$0xc] %vm722_vm15, %v721_v11   ;;  %v735_v12 = vpop.permute.xlu1 %734   ;;  %vm946_vm15 = vcmask 326960  }
  0xbd   :  { %737 = vst.msk [vmem:[#allocation0] sm:$0x3] %vm736_vm0, %v735_v12   ;;  %739 = vst.msk [vmem:[#allocation0 + $0x6] sm:$0xc] %vm736_vm0, %v735_v12   ;;  %vm960_vm0 = vcmask 310560  }
  0xbf   :  { %v749_v13 = vpop.permute.xlu0 %748  }
  0xc0   :  { %751 = vst.msk [vmem:[#allocation0] sm:$0x3] %vm750_vm1, %v749_v13   ;;  %753 = vst.msk [vmem:[#allocation0 + $0x6] sm:$0xc] %vm750_vm1, %v749_v13   ;;  %vm974_vm1 = vcmask 294160  }
  0xc1   :  { %v763_v14 = vpop.permute.xlu1 %762  }
  0xc2   :  { %765 = vst.msk [vmem:[#allocation0] sm:$0x3] %vm764_vm2, %v763_v14   ;;  %767 = vst.msk [vmem:[#allocation0 + $0x6] sm:$0xc] %vm764_vm2, %v763_v14   ;;  %vm988_vm2 = vcmask 277760  }
  0xc6   :  { %v777_v15 = vpop.permute.xlu0 %776  }
  0xc7   :  { %779 = vst.msk [vmem:[#allocation0] sm:$0x3] %vm778_vm3, %v777_v15   ;;  %781 = vst.msk [vmem:[#allocation0 + $0x6] sm:$0xc] %vm778_vm3, %v777_v15   ;;  %v791_v16 = vpop.permute.xlu1 %790   ;;  %vm1002_vm3 = vcmask 261360  }
  0xc8   :  { %793 = vst.msk [vmem:[#allocation0] sm:$0x3] %vm792_vm4, %v791_v16   ;;  %795 = vst.msk [vmem:[#allocation0 + $0x6] sm:$0xc] %vm792_vm4, %v791_v16   ;;  %vm1016_vm4 = vcmask 244960  }
  0xca   :  { %v805_v17 = vpop.permute.xlu0 %804  }
  0xcb   :  { %807 = vst.msk [vmem:[#allocation0] sm:$0x3] %vm806_vm5, %v805_v17   ;;  %809 = vst.msk [vmem:[#allocation0 + $0x6] sm:$0xc] %vm806_vm5, %v805_v17   ;;  %v819_v18 = vpop.permute.xlu1 %818   ;;  %vm1030_vm5 = vcmask 228560  }
  0xcc   :  { %821 = vst.msk [vmem:[#allocation0] sm:$0x3] %vm820_vm6, %v819_v18   ;;  %823 = vst.msk [vmem:[#allocation0 + $0x6] sm:$0xc] %vm820_vm6, %v819_v18   ;;  %vm1044_vm6 = vcmask 212160  }
  0xcf   :  { %v833_v19 = vpop.permute.xlu0 %832  }
  0xd0   :  { %835 = vst.msk [vmem:[#allocation0] sm:$0x3] %vm834_vm7, %v833_v19   ;;  %837 = vst.msk [vmem:[#allocation0 + $0x6] sm:$0xc] %vm834_vm7, %v833_v19   ;;  %v847_v20 = vpop.permute.xlu1 %846   ;;  %vm1058_vm7 = vcmask 195760  }
  0xd1   :  { %849 = vst.msk [vmem:[#allocation0] sm:$0x3] %vm848_vm8, %v847_v20   ;;  %851 = vst.msk [vmem:[#allocation0 + $0x6] sm:$0xc] %vm848_vm8, %v847_v20   ;;  %vm1072_vm8 = vcmask 179360  }
  0xd4   :  { %v861_v21 = vpop.permute.xlu0 %860   ;;  %v875_v22 = vpop.permute.xlu1 %874  }
  0xd5   :  { %863 = vst.msk [vmem:[#allocation0] sm:$0x3] %vm862_vm9, %v861_v21   ;;  %865 = vst.msk [vmem:[#allocation0 + $0x6] sm:$0xc] %vm862_vm9, %v861_v21   ;;  %vm1086_vm9 = vcmask 162960  }
  0xd6   :  { %877 = vst.msk [vmem:[#allocation0] sm:$0x3] %vm876_vm10, %v875_v22   ;;  %879 = vst.msk [vmem:[#allocation0 + $0x6] sm:$0xc] %vm876_vm10, %v875_v22   ;;  %vm1100_vm10 = vcmask 146560  }
  0xda   :  { %v889_v23 = vpop.permute.xlu0 %888  }
  0xdb   :  { %891 = vst.msk [vmem:[#allocation0] sm:$0x3] %vm890_vm11, %v889_v23   ;;  %893 = vst.msk [vmem:[#allocation0 + $0x6] sm:$0xc] %vm890_vm11, %v889_v23   ;;  %v903_v24 = vpop.permute.xlu1 %902   ;;  %vm1114_vm11 = vcmask 130160  }
  0xdc   :  { %905 = vst.msk [vmem:[#allocation0] sm:$0x3] %vm904_vm12, %v903_v24   ;;  %907 = vst.msk [vmem:[#allocation0 + $0x6] sm:$0xc] %vm904_vm12, %v903_v24   ;;  %vm1128_vm12 = vcmask 113760  }
  0xe0   :  { %v917_v25 = vpop.permute.xlu0 %916  }
  0xe1   :  { %919 = vst.msk [vmem:[#allocation0] sm:$0x3] %vm918_vm13, %v917_v25   ;;  %921 = vst.msk [vmem:[#allocation0 + $0x6] sm:$0xc] %vm918_vm13, %v917_v25   ;;  %v931_v26 = vpop.permute.xlu1 %930   ;;  %vm1142_vm13 = vcmask 97360  }
  0xe2   :  { %933 = vst.msk [vmem:[#allocation0] sm:$0x3] %vm932_vm14, %v931_v26   ;;  %935 = vst.msk [vmem:[#allocation0 + $0x6] sm:$0xc] %vm932_vm14, %v931_v26   ;;  %vm1156_vm14 = vcmask 80960  }
  0xe4   :  { %v945_v27 = vpop.permute.xlu0 %944  }
  0xe5   :  { %947 = vst.msk [vmem:[#allocation0] sm:$0x3] %vm946_vm15, %v945_v27   ;;  %949 = vst.msk [vmem:[#allocation0 + $0x6] sm:$0xc] %vm946_vm15, %v945_v27   ;;  %v959_v28 = vpop.permute.xlu1 %958   ;;  %vm1170_vm15 = vcmask 64560  }
  0xe6   :  { %961 = vst.msk [vmem:[#allocation0] sm:$0x3] %vm960_vm0, %v959_v28   ;;  %963 = vst.msk [vmem:[#allocation0 + $0x6] sm:$0xc] %vm960_vm0, %v959_v28   ;;  %vm1184_vm0 = vcmask 48160  }
  0xe8   :  { %v973_v29 = vpop.permute.xlu0 %972  }
  0xe9   :  { %975 = vst.msk [vmem:[#allocation0] sm:$0x3] %vm974_vm1, %v973_v29   ;;  %977 = vst.msk [vmem:[#allocation0 + $0x6] sm:$0xc] %vm974_vm1, %v973_v29   ;;  %v987_v30 = vpop.permute.xlu1 %986   ;;  %vm1198_vm1 = vcmask 31760  }
  0xea   :  { %989 = vst.msk [vmem:[#allocation0] sm:$0x3] %vm988_vm2, %v987_v30   ;;  %991 = vst.msk [vmem:[#allocation0 + $0x6] sm:$0xc] %vm988_vm2, %v987_v30  }
  0xec   :  { %v1001_v31 = vpop.permute.xlu0 %1000  }
  0xed   :  { %1003 = vst.msk [vmem:[#allocation0] sm:$0x3] %vm1002_vm3, %v1001_v31   ;;  %1005 = vst.msk [vmem:[#allocation0 + $0x6] sm:$0xc] %vm1002_vm3, %v1001_v31   ;;  %v1015_v32 = vpop.permute.xlu1 %1014  }
  0xee   :  { %1017 = vst.msk [vmem:[#allocation0] sm:$0x3] %vm1016_vm4, %v1015_v32   ;;  %1019 = vst.msk [vmem:[#allocation0 + $0x6] sm:$0xc] %vm1016_vm4, %v1015_v32  }
  0xf0   :  { %v1029_v33 = vpop.permute.xlu0 %1028  }
  0xf1   :  { %1031 = vst.msk [vmem:[#allocation0] sm:$0x3] %vm1030_vm5, %v1029_v33   ;;  %1033 = vst.msk [vmem:[#allocation0 + $0x6] sm:$0xc] %vm1030_vm5, %v1029_v33   ;;  %v1043_v34 = vpop.permute.xlu1 %1042  }
  0xf2   :  { %1045 = vst.msk [vmem:[#allocation0] sm:$0x3] %vm1044_vm6, %v1043_v34   ;;  %1047 = vst.msk [vmem:[#allocation0 + $0x6] sm:$0xc] %vm1044_vm6, %v1043_v34  }
  0xf4   :  { %v1057_v35 = vpop.permute.xlu0 %1056  }
  0xf5   :  { %1059 = vst.msk [vmem:[#allocation0] sm:$0x3] %vm1058_vm7, %v1057_v35   ;;  %1061 = vst.msk [vmem:[#allocation0 + $0x6] sm:$0xc] %vm1058_vm7, %v1057_v35   ;;  %v1071_v36 = vpop.permute.xlu1 %1070  }
  0xf6   :  { %1073 = vst.msk [vmem:[#allocation0] sm:$0x3] %vm1072_vm8, %v1071_v36   ;;  %1075 = vst.msk [vmem:[#allocation0 + $0x6] sm:$0xc] %vm1072_vm8, %v1071_v36  }
  0xf8   :  { %v1085_v37 = vpop.permute.xlu0 %1084  }
  0xf9   :  { %1087 = vst.msk [vmem:[#allocation0] sm:$0x3] %vm1086_vm9, %v1085_v37   ;;  %1089 = vst.msk [vmem:[#allocation0 + $0x6] sm:$0xc] %vm1086_vm9, %v1085_v37   ;;  %v1099_v38 = vpop.permute.xlu1 %1098  }
  0xfa   :  { %1101 = vst.msk [vmem:[#allocation0] sm:$0x3] %vm1100_vm10, %v1099_v38   ;;  %1103 = vst.msk [vmem:[#allocation0 + $0x6] sm:$0xc] %vm1100_vm10, %v1099_v38  }
  0xfc   :  { %v1113_v39 = vpop.permute.xlu0 %1112  }
  0xfd   :  { %1115 = vst.msk [vmem:[#allocation0] sm:$0x3] %vm1114_vm11, %v1113_v39   ;;  %1117 = vst.msk [vmem:[#allocation0 + $0x6] sm:$0xc] %vm1114_vm11, %v1113_v39   ;;  %v1127_v40 = vpop.permute.xlu1 %1126  }
  0xfe   :  { %1129 = vst.msk [vmem:[#allocation0] sm:$0x3] %vm1128_vm12, %v1127_v40   ;;  %1131 = vst.msk [vmem:[#allocation0 + $0x6] sm:$0xc] %vm1128_vm12, %v1127_v40  }
 0x100   :  { %v1141_v41 = vpop.permute.xlu0 %1140  }
 0x101   :  { %1143 = vst.msk [vmem:[#allocation0] sm:$0x3] %vm1142_vm13, %v1141_v41   ;;  %1145 = vst.msk [vmem:[#allocation0 + $0x6] sm:$0xc] %vm1142_vm13, %v1141_v41   ;;  %v1155_v42 = vpop.permute.xlu1 %1154  }
 0x102   :  { %1157 = vst.msk [vmem:[#allocation0] sm:$0x3] %vm1156_vm14, %v1155_v42   ;;  %1159 = vst.msk [vmem:[#allocation0 + $0x6] sm:$0xc] %vm1156_vm14, %v1155_v42  }
 0x104   :  { %v1169_v43 = vpop.permute.xlu0 %1168  }
 0x105   :  { %1171 = vst.msk [vmem:[#allocation0] sm:$0x3] %vm1170_vm15, %v1169_v43   ;;  %1173 = vst.msk [vmem:[#allocation0 + $0x6] sm:$0xc] %vm1170_vm15, %v1169_v43   ;;  %v1183_v44 = vpop.permute.xlu1 %1182  }
 0x106   :  { %1185 = vst.msk [vmem:[#allocation0] sm:$0x3] %vm1184_vm0, %v1183_v44   ;;  %1187 = vst.msk [vmem:[#allocation0 + $0x6] sm:$0xc] %vm1184_vm0, %v1183_v44  }
 0x108   :  { %v1197_v45 = vpop.permute.xlu0 %1196  }
 0x109   :  { %1199 = vst.msk [vmem:[#allocation0] sm:$0x3] %vm1198_vm1, %v1197_v45   ;;  %1201 = vst.msk [vmem:[#allocation0 + $0x6] sm:$0xc] %vm1198_vm1, %v1197_v45  }
 0x110   :  { %v1205_v46 = vld [vmem:[#allocation0] sm:$0x3]  ;;  %v1209_v47 = vld [vmem:[#allocation0 + $0x8] sm:$0x3] }
 0x111   :  { %1207 = vst [vmem:[%s1956_s1] sm:$0x3] %v1205_v46  ;;  %1410 = vst [vmem:[%s1956_s1 + $0x2] sm:$0x3] %v1209_v47 }

// kernel: generator_forward.1
= control target key start
LH: loop header
LB: loop body
LE: loop exit
PB: predicated region body
PF: predicated region fallthrough
CT: control target
= control target key end

     0   :  { %vm82_vm0 = vcmask 58368   ;;  %v4420_v2 = vmov 0   ;;  %v4421_v19 = vmov 0.0   ;;  %vm4422_vm1 = vmmov 0   ;;  %s5920_s0 = inlined_call_operand.vmem [shape: f32[2,8], index: 0, kind: input, shape index: {}]   ;;  %s5921_s1 = inlined_call_operand.<no memory space> [shape: f32[1,1], index: 1, kind: input, shape index: {}]   ;;  %s5922_s2 = inlined_call_operand.<no memory space> [shape: f32[1,1], index: 2, kind: input, shape index: {}]   ;;  %s5923_s3 = inlined_call_operand.vmem [shape: f32[50,2], index: 3, kind: input, shape index: {}]   ;;  %s5924_s4 = inlined_call_operand.vmem [shape: f32[8,88], index: 4, kind: input, shape index: {}]   ;;  %s5925_s6 = inlined_call_operand.vmem [shape: f32[88,80], index: 6, kind: input, shape index: {}]   ;;  %s5926_s5 = inlined_call_operand.vmem [shape: f32[50,88], index: 5, kind: input, shape index: {}]   ;;  %s5927_s10 = inlined_call_operand.vmem [shape: f32[80,50], index: 10, kind: input, shape index: {}]   ;;  %s5928_s7 = inlined_call_operand.vmem [shape: f32[1,80], index: 7, kind: input, shape index: {}]   ;;  %s5929_s8 = inlined_call_operand.vmem [shape: f32[1,80], index: 8, kind: input, shape index: {}]   ;;  %s5930_s11 = inlined_call_operand.vmem [shape: f32[80,50], index: 11, kind: input, shape index: {}]   ;;  %s5931_s9 = inlined_call_operand.vmem [shape: f32[1,80], index: 9, kind: input, shape index: {}]   ;;  %s5932_s15 = inlined_call_operand.vmem [shape: f32[50,25], index: 15, kind: input, shape index: {}]   ;;  %s5933_s16 = inlined_call_operand.vmem [shape: f32[50,25], index: 16, kind: input, shape index: {}]   ;;  %s5934_s12 = inlined_call_operand.vmem [shape: f32[1,50], index: 12, kind: input, shape index: {}]   ;;  %s5935_s13 = inlined_call_operand.vmem [shape: f32[1,50], index: 13, kind: input, shape index: {}]   ;;  %s5936_s14 = inlined_call_operand.vmem [shape: f32[1,50], index: 14, kind: input, shape index: {}]   ;;  %s5937_s20 = inlined_call_operand.vmem [shape: f32[25,10], index: 20, kind: input, shape index: {}]   ;;  %s5938_s17 = inlined_call_operand.vmem [shape: f32[1,25], index: 17, kind: input, shape index: {}]   ;;  %s5939_s18 = inlined_call_operand.vmem [shape: f32[1,25], index: 18, kind: input, shape index: {}]   ;;  %s5940_s21 = inlined_call_operand.vmem [shape: f32[25,10], index: 21, kind: input, shape index: {}]   ;;  %s5941_s19 = inlined_call_operand.vmem [shape: f32[1,25], index: 19, kind: input, shape index: {}]   ;;  %s5942_s22 = inlined_call_operand.vmem [shape: f32[1,10], index: 22, kind: input, shape index: {}]   ;;  %s5943_s23 = inlined_call_operand.vmem [shape: f32[3,10], index: 23, kind: input, shape index: {}]   ;;  %s5944_s24 = inlined_call_operand.vmem [shape: f32[3,400], index: 24, kind: output, shape index: {}]  }
   0x1   :  { %5949 = sst [smem:[#allocation8_spill]] %s5920_s0  ;;  %4216 = vset.pattern.permute.xlu1 %v4420_v2  ;;  %4217 = vset.pattern.permute.xlu0 %v4420_v2  ;;  %vm164_vm2 = vcmask 1041408   ;;  %vm142_vm3 = vcmask 15360   ;;  %v4423_v44 = vmov 0.0|0.0   ;;  %vm269_vm4 = vcmask 64512  }
   0x2   :  { %5950 = sst [smem:[#allocation9_spill]] %s5921_s1  ;;  %s5958_s27 = sld [smem:[#allocation8_spill]]  ;;  %3439 = vmatprep.subr.mxu0 %v4421_v19  ;;  %3462 = vmatprep.subr.mxu1 %v4421_v19  ;;  %vm423_vm5 = vcmask 719872   ;;  %vm552_vm6 = vcmask 654336   ;;  %vm559_vm7 = vcmask 648192   ;;  %vm937_vm8 = vcmask 408576  }
   0x3   :  { %5951 = sst [smem:[#allocation10_spill]] %s5922_s2  ;;  %s5959_s2 = sld [smem:[#allocation9_spill]]  ;;  %3441 = vmatprep.mubr.msk.f32.mxu0 %vm4422_vm1, %v4421_v19  ;;  %3464 = vmatprep.mubr.msk.f32.mxu1 %vm4422_vm1, %v4421_v19  ;;  %vm944_vm9 = vcmask 402432   ;;  %vm1102_vm10 = vcmask 404480   ;;  %vm1930_vm11 = vcmask 1040384   ;;  %vm4424_vm12 = vmmov 1  }
   0x4   :  { %5952 = sst [smem:[#allocation11_spill]] %s5923_s3  ;;  %vm5254_vm13 = vmpackc.low %vm1930_vm11, %vm4424_vm12  ;;  %vm1539_vm14 = vcmask 203776   ;;  %vm1552_vm15 = vcmask 199680  }
   0x5   :  { %5953 = sst [smem:[#allocation12_spill]] %s5924_s4  ;;  %s5961_s4 = sld [smem:[#allocation11_spill]] }
   0x6   :  { %5954 = sst [smem:[#allocation13_spill]] %s5925_s6  ;;  %s5962_s1 = sld [smem:[#allocation12_spill]] }
   0x7   :  { %5955 = sst [smem:[#allocation14_spill]] %s5926_s5 }
   0x8   :  { %5956 = sst [smem:[#allocation15_spill]] %s5927_s10  ;;  %v81_v0 = vld [vmem:[%s5958_s27] sm:$0x3]  ;;  %s5960_s10 = sld [smem:[#allocation10_spill]] }
   0x9   :  { %5957 = sst [smem:[#allocation16_spill]] %s5928_s7  ;;  %v83_v1 = vsel %vm82_vm0, %v81_v0, 0.0  ;;  %v29_v3 = vstv %s5959_s2  ;;  %s5963_s27 = sld [smem:[#allocation13_spill]] }
   0xa   :  { %84 = vadd.xlane.f32.xlu0 %v83_v1  ;;  %30 = vst [vmem:[#allocation6] sm:$0x1] %v29_v3  ;;  %s5965_s25 = sld [smem:[#allocation15_spill]]  ;;  %s5966_s28 = sld [smem:[#allocation16_spill]] }
   0xb   :  { %v135_v36 = vld [vmem:[%s5961_s4] sm:$0xff]  ;;  %v136_v37 = vld [vmem:[%s5961_s4 + $0x8] sm:$0xff]  ;;  %v137_v38 = vld [vmem:[%s5961_s4 + $0x10] sm:$0xff] }
   0xc   :  { %v138_v39 = vld [vmem:[%s5961_s4 + $0x18] sm:$0xff]  ;;  %v139_v40 = vld [vmem:[%s5961_s4 + $0x20] sm:$0xff]  ;;  %v140_v41 = vld [vmem:[%s5961_s4 + $0x28] sm:$0xff] }
   0xd   :  { %v141_v42 = vld [vmem:[%s5961_s4 + $0x30] sm:$0x3]  ;;  %v268_v43 = vld [vmem:[%s5962_s1] sm:$0xff] }
   0xe   :  { %v31_v4 = vstv %s5960_s10  ;;  %3463 = vmatpush3.msra.mxu1 %v268_v43 }
   0xf   :  { %32 = vst [vmem:[#allocation7] sm:$0x1] %v31_v4  ;;  %v405_v45 = vld [vmem:[%s5963_s27] sm:$0xff]  ;;  %v406_v46 = vld [vmem:[%s5963_s27 + $0x8] sm:$0xff]  ;;  %v407_v47 = vld [vmem:[%s5963_s27 + $0x10] sm:$0xff]  ;;  %3999 = vmatprep.subr.bf16.mxu1 %v4423_v44 }
  0x10   :  { %v3985_v48 = vpack.c.bf16 %v406_v46, %v405_v45  ;;  %v408_v49 = vld [vmem:[%s5963_s27 + $0x18] sm:$0xff]  ;;  %v409_v51 = vld [vmem:[%s5963_s27 + $0x20] sm:$0xff]  ;;  %v410_v52 = vld [vmem:[%s5963_s27 + $0x28] sm:$0xff] }
  0x11   :  { %v3010_v5 = vld [vmem:[#allocation6] ss:$0 sm:$0xff]  ;;  %v3988_v50 = vpack.c.bf16 %v408_v49, %v407_v47  ;;  %v3991_v53 = vpack.c.bf16 %v410_v52, %v409_v51  ;;  %v411_v54 = vld [vmem:[%s5963_s27 + $0x30] sm:$0xff]  ;;  %v413_v57 = vld [vmem:[%s5963_s27 + $0x40] sm:$0xff] }
  0x12   :  { %120 = vperm.xlu1 %4216, %v3010_v5   ;;  %v412_v55 = vld [vmem:[%s5963_s27 + $0x38] sm:$0xff]  ;;  %v414_v58 = vld [vmem:[%s5963_s27 + $0x48] sm:$0xff]  ;;  %v642_v47 = vld [vmem:[%s5965_s25 + $0x20] sm:$0xff] }
  0x13   :  { %v3994_v56 = vpack.c.bf16 %v412_v55, %v411_v54  ;;  %v3997_v59 = vpack.c.bf16 %v414_v58, %v413_v57  ;;  %v641_v45 = vld [vmem:[%s5965_s25 + $0x18] sm:$0xff]  ;;  %v647_v54 = vld [vmem:[%s5965_s25 + $0x48] sm:$0xff] }
  0x14   :  { %v645_v51 = vld [vmem:[%s5965_s25 + $0x38] sm:$0xff] }
  0x16   :  { %v3011_v6 = vld [vmem:[#allocation7] ss:$0 sm:$0xff] }
  0x17   :  { %131 = vperm.xlu1 %4216, %v3011_v6  }
  0x91   :  { %v121_v30 = vpop.permute.xlu1 %120 }
  0x96   :  { %v132_v34 = vpop.permute.xlu1 %131 }
  0x97   :  { %v85_v7 = vpop.xlane.xlu0 %84 }
  0x98   :  { %v86_v8 = vrot.slane %v85_v7, 4 }
  0x9a   :  { %v87_v9 = vadd.f32 %v86_v8, %v85_v7 }
  0x9c   :  { %v88_v10 = vrot.slane %v87_v9, 2 }
  0x9e   :  { %v89_v11 = vadd.f32 %v88_v10, %v87_v9  ;;  %v415_v10 = vld [vmem:[%s5963_s27 + $0x50] sm:$0xff] }
  0xa0   :  { %v90_v12 = vrot.slane %v89_v11, 1 }
  0xa2   :  { %v91_v13 = vadd.f32 %v90_v12, %v89_v11 }
  0xa4   :  { %4207 = vpush %v91_v13 }
  0xd5   :  { %s4208_s30 = spop %4207 }
  0xd6   :  { %v93_v14 = vstv %s4208_s30 }
  0xd7   :  { %v95_v15 = vmul.f32 0.0625, %v93_v14 }
  0xd9   :  { %v96_v16 = vsub.f32 %v81_v0, %v95_v15 }
  0xdb   :  { %v97_v17 = vmul.f32 %v96_v16, %v96_v16 }
  0xdd   :  { %v98_v18 = vsel %vm82_vm0, %v97_v17, 0.0  ;;  %vm2375_vm0 = vcmask 80896  }
  0xde   :  { %99 = vadd.xlane.f32.xlu0 %v98_v18 }
 0x16b   :  { %v100_v20 = vpop.xlane.xlu0 %99 }
 0x16c   :  { %v101_v21 = vrot.slane %v100_v20, 4 }
 0x16e   :  { %v102_v22 = vadd.f32 %v101_v21, %v100_v20 }
 0x170   :  { %v103_v23 = vrot.slane %v102_v22, 2 }
 0x172   :  { %v104_v24 = vadd.f32 %v103_v23, %v102_v22 }
 0x174   :  { %v105_v25 = vrot.slane %v104_v24, 1 }
 0x176   :  { %v106_v26 = vadd.f32 %v105_v25, %v104_v24 }
 0x178   :  { %4209 = vpush %v106_v26 }
 0x1a9   :  { %s4210_s3 = spop %4209 }
 0x1aa   :  { %v108_v27 = vstv %s4210_s3  ;;  %s5964_s3 = sld [smem:[#allocation14_spill]] }
 0x1ab   :  { %v109_v28 = vmul.f32 0.0625, %v108_v27 }
 0x1ad   :  { %v110_v29 = vadd.f32 1e-05, %v109_v28 }
 0x1af   :  { %4218 = vrsqrt.f32 %v110_v29 }
 0x1b0   :  { %v391_v11 = vld [vmem:[%s5964_s3] sm:$0xff]  ;;  %v392_v15 = vld [vmem:[%s5964_s3 + $0x8] sm:$0xff]  ;;  %v393_v20 = vld [vmem:[%s5964_s3 + $0x10] sm:$0xff] }
 0x1b1   :  { %v394_v24 = vld [vmem:[%s5964_s3 + $0x18] sm:$0xff]  ;;  %v395_v28 = vld [vmem:[%s5964_s3 + $0x20] sm:$0xff] }
 0x1b9   :  { %v4219_v31 = vpop.eup %4218 }
 0x1ba   :  { %v112_v32 = vmul.f32 %v4219_v31, %v96_v16 }
 0x1bc   :  { %v123_v33 = vmul.f32 %v121_v30, %v112_v32  ;;  %v396_v32 = vld [vmem:[%s5964_s3 + $0x28] sm:$0xff] }
 0x1be   :  { %v134_v35 = vadd.f32 %v132_v34, %v123_v33 }
 0x1c0   :  { %3440 = vmatpush3.msk.msra.mxu0 %vm164_vm2, %v134_v35 }
 0x1c1   :  { %3442 = vmatmul.mubr.msk.f32.vlgmr.msra.gmra.mrb[0].mxu0 %vm142_vm3, %v135_v36  ;;  %3984 = vmatprep.subr.bf16.mxu0 %v4423_v44  ;;  %v397_v36 = vld [vmem:[%s5964_s3 + $0x30] sm:$0x3] }
 0x1c2   :  { %3444 = vmatprep.mubr.msk.f32.mxu0 %vm4422_vm1, %v4421_v19  ;;  %3986 = vmatpush3.bf16.msra.mxu0 %v3985_v48  ;;  %v643_v48 = vld [vmem:[%s5965_s25 + $0x28] sm:$0xff] }
 0x1c3   :  { %3987 = vmatprep.subr.bf16.mxu0 %v4423_v44  ;;  %v4006_v49 = vpack.c.bf16 %v643_v48, %v642_v47 }
 0x1c5   :  { %3445 = vmatmul.mubr.msk.f32.gmra.mrb[2].mxu0 %vm142_vm3, %v136_v37 }
 0x1c6   :  { %3447 = vmatprep.mubr.msk.f32.mxu0 %vm4422_vm1, %v4421_v19  ;;  %3989 = vmatpush3.bf16.msra.mxu0 %v3988_v50  ;;  %v644_v50 = vld [vmem:[%s5965_s25 + $0x30] sm:$0xff] }
 0x1c7   :  { %3990 = vmatprep.subr.bf16.mxu0 %v4423_v44  ;;  %v4009_v52 = vpack.c.bf16 %v645_v51, %v644_v50 }
 0x1c9   :  { %3448 = vmatmul.mubr.msk.f32.gmra.mrb[4].mxu0 %vm142_vm3, %v137_v38 }
 0x1ca   :  { %3450 = vmatprep.mubr.msk.f32.mxu0 %vm4422_vm1, %v4421_v19  ;;  %3992 = vmatpush3.bf16.msra.mxu0 %v3991_v53  ;;  %v646_v53 = vld [vmem:[%s5965_s25 + $0x40] sm:$0xff] }
 0x1cb   :  { %3993 = vmatprep.subr.bf16.mxu0 %v4423_v44  ;;  %v4012_v55 = vpack.c.bf16 %v647_v54, %v646_v53 }
 0x1cd   :  { %3451 = vmatmul.mubr.msk.f32.gmra.mrb[6].mxu0 %vm142_vm3, %v138_v39 }
 0x1ce   :  { %3453 = vmatprep.mubr.msk.f32.mxu0 %vm4422_vm1, %v4421_v19  ;;  %3995 = vmatpush3.bf16.msra.mxu0 %v3994_v56  ;;  %v3027_v56 = vld [vmem:[%s5966_s28] ss:$0 sm:$0xff] }
 0x1cf   :  { %3996 = vmatprep.subr.bf16.mxu0 %v4423_v44 }
 0x1d1   :  { %3454 = vmatmul.mubr.msk.f32.gmra.mrb[8].mxu0 %vm142_vm3, %v139_v40  ;;  %v638_v40 = vld [vmem:[%s5965_s25] sm:$0xff] }
 0x1d2   :  { %3456 = vmatprep.mubr.msk.f32.mxu0 %vm4422_vm1, %v4421_v19  ;;  %3998 = vmatpush3.bf16.msra.mxu0 %v3997_v59 }
 0x1d3   :  { %3505 = vmatprep.subr.mxu0 %v4421_v19 }
 0x1d5   :  { %3457 = vmatmul.mubr.msk.f32.gmra.mrb[10].mxu0 %vm142_vm3, %v140_v41  ;;  %v639_v41 = vld [vmem:[%s5965_s25 + $0x8] sm:$0xff] }
 0x1d6   :  { %3459 = vmatprep.mubr.msk.f32.mxu0 %vm4422_vm1, %v4421_v19  ;;  %3506 = vmatpush3.msra.mxu0 %v415_v10  ;;  %v4000_v43 = vpack.c.bf16 %v639_v41, %v638_v40 }
 0x1d7   :  { %4029 = vmatprep.subr.bf16.mxu0 %v4423_v44 }
 0x1d9   :  { %3460 = vmatmul.mubr.msk.f32.gmra.mrb[12].mxu0 %vm142_vm3, %v141_v42  ;;  %v640_v42 = vld [vmem:[%s5965_s25 + $0x10] sm:$0xff]  ;;  %vm3003_vm3 = vcmask 129028  }
 0x1da   :  { %3507 = vmatprep.mubr.msk.f32.mxu0 %vm4422_vm1, %v4421_v19  ;;  %v4003_v46 = vpack.c.bf16 %v641_v45, %v640_v42 }
 0x294   :  { %v234_v60 = vpop.f32.mrb[0].mxu0 }
 0x295   :  { %v3443_v61 = vpop.f32.mrb[1].mxu0  ;;  %3465 = vmatmul.mubr.msk.f32.vlgmr.msra.gmra.mrb[0].mxu1 %vm269_vm4, %v234_v60 }
 0x296   :  { %3467 = vmatprep.mubr.msk.f32.mxu1 %vm4422_vm1, %v4421_v19  ;;  %4001 = vmatpush3.bf16.msra.mxu1 %v4000_v43 }
 0x297   :  { %4002 = vmatprep.subr.bf16.mxu1 %v4423_v44 }
 0x298   :  { %v239_v62 = vpop.f32.mrb[2].mxu0 }
 0x299   :  { %v3446_v63 = vpop.f32.mrb[3].mxu0  ;;  %3468 = vmatmul.mubr.msk.f32.gmra.mrb[2].mxu1 %vm269_vm4, %v239_v62 }
 0x29a   :  { %3470 = vmatprep.mubr.msk.f32.mxu1 %vm4422_vm1, %v4421_v19  ;;  %4004 = vmatpush3.bf16.msra.mxu1 %v4003_v46 }
 0x29b   :  { %4005 = vmatprep.subr.bf16.mxu1 %v4423_v44 }
 0x29c   :  { %v244_v0 = vpop.f32.mrb[4].mxu0 }
 0x29d   :  { %v3449_v1 = vpop.f32.mrb[5].mxu0  ;;  %3471 = vmatmul.mubr.msk.f32.gmra.mrb[4].mxu1 %vm269_vm4, %v244_v0 }
 0x29e   :  { %3473 = vmatprep.mubr.msk.f32.mxu1 %vm4422_vm1, %v4421_v19  ;;  %4007 = vmatpush3.bf16.msra.mxu1 %v4006_v49 }
 0x29f   :  { %4008 = vmatprep.subr.bf16.mxu1 %v4423_v44 }
 0x2a0   :  { %v249_v2 = vpop.f32.mrb[6].mxu0 }
 0x2a1   :  { %v3452_v3 = vpop.f32.mrb[7].mxu0  ;;  %3474 = vmatmul.mubr.msk.f32.gmra.mrb[6].mxu1 %vm269_vm4, %v249_v2 }
 0x2a2   :  { %3476 = vmatprep.mubr.msk.f32.mxu1 %vm4422_vm1, %v4421_v19  ;;  %4010 = vmatpush3.bf16.msra.mxu1 %v4009_v52 }
 0x2a3   :  { %4011 = vmatprep.subr.bf16.mxu1 %v4423_v44 }
 0x2a4   :  { %v254_v4 = vpop.f32.mrb[8].mxu0 }
 0x2a5   :  { %v3455_v5 = vpop.f32.mrb[9].mxu0  ;;  %3477 = vmatmul.mubr.msk.f32.gmra.mrb[8].mxu1 %vm269_vm4, %v254_v4 }
 0x2a6   :  { %3479 = vmatprep.mubr.msk.f32.mxu1 %vm4422_vm1, %v4421_v19  ;;  %4013 = vmatpush3.bf16.msra.mxu1 %v4012_v55 }
 0x2a7   :  { %4014 = vmatprep.subr.bf16.mxu1 %v4423_v44 }
 0x2a8   :  { %v259_v6 = vpop.f32.mrb[10].mxu0 }
 0x2a9   :  { %v3458_v7 = vpop.f32.mrb[11].mxu0  ;;  %3480 = vmatmul.mubr.msk.f32.gmra.mrb[10].mxu1 %vm269_vm4, %v259_v6 }
 0x2aa   :  { %3482 = vmatprep.mubr.msk.f32.mxu1 %vm4422_vm1, %v4421_v19 }
 0x2ac   :  { %v264_v8 = vpop.f32.mrb[12].mxu0 }
 0x2ad   :  { %v3461_v9 = vpop.f32.mrb[13].mxu0  ;;  %3483 = vmatmul.mubr.msk.f32.gmra.mrb[12].mxu1 %vm269_vm4, %v264_v8 }
 0x2ae   :  { %3548 = vmatprep.mubr.msk.f32.mxu1 %vm4422_vm1, %v4421_v19 }
 0x368   :  { %v357_v12 = vpop.f32.mrb[0].mxu1 }
 0x369   :  { %v398_v13 = vmul.f32 %v391_v11, %v357_v12  ;;  %v3466_v14 = vpop.f32.mrb[1].mxu1 }
 0x36b   :  { %3508 = vmatmul.mubr.msk.f32.vlgmr.msra.gmra.mrb[14].mxu0 %vm423_vm5, %v398_v13 }
 0x36c   :  { %v362_v16 = vpop.f32.mrb[2].mxu1  ;;  %3510 = vmatprep.mubr.msk.f32.mxu0 %vm4422_vm1, %v4421_v19  ;;  %4031 = vmatpush3.bf16.msra.mxu0 %v4000_v43 }
 0x36d   :  { %v399_v17 = vmul.f32 %v392_v15, %v362_v16  ;;  %v3469_v18 = vpop.f32.mrb[3].mxu1  ;;  %4032 = vmatprep.subr.bf16.mxu0 %v4423_v44 }
 0x36f   :  { %3511 = vmatmul.mubr.msk.f32.gmra.mrb[16].mxu0 %vm423_vm5, %v399_v17 }
 0x370   :  { %v367_v21 = vpop.f32.mrb[4].mxu1  ;;  %3513 = vmatprep.mubr.msk.f32.mxu0 %vm4422_vm1, %v4421_v19  ;;  %4034 = vmatpush3.bf16.msra.mxu0 %v4003_v46 }
 0x371   :  { %v400_v22 = vmul.f32 %v393_v20, %v367_v21  ;;  %v3472_v23 = vpop.f32.mrb[5].mxu1  ;;  %4035 = vmatprep.subr.bf16.mxu0 %v4423_v44 }
 0x373   :  { %3514 = vmatmul.mubr.msk.f32.gmra.mrb[18].mxu0 %vm423_vm5, %v400_v22 }
 0x374   :  { %v372_v25 = vpop.f32.mrb[6].mxu1  ;;  %3516 = vmatprep.mubr.msk.f32.mxu0 %vm4422_vm1, %v4421_v19  ;;  %4037 = vmatpush3.bf16.msra.mxu0 %v4006_v49 }
 0x375   :  { %v401_v26 = vmul.f32 %v394_v24, %v372_v25  ;;  %v3475_v27 = vpop.f32.mrb[7].mxu1  ;;  %4038 = vmatprep.subr.bf16.mxu0 %v4423_v44 }
 0x377   :  { %3517 = vmatmul.mubr.msk.f32.gmra.mrb[20].mxu0 %vm423_vm5, %v401_v26 }
 0x378   :  { %v377_v29 = vpop.f32.mrb[8].mxu1  ;;  %3519 = vmatprep.mubr.msk.f32.mxu0 %vm4422_vm1, %v4421_v19  ;;  %4040 = vmatpush3.bf16.msra.mxu0 %v4009_v52 }
 0x379   :  { %v402_v30 = vmul.f32 %v395_v28, %v377_v29  ;;  %v3478_v31 = vpop.f32.mrb[9].mxu1  ;;  %4041 = vmatprep.subr.bf16.mxu0 %v4423_v44 }
 0x37b   :  { %3520 = vmatmul.mubr.msk.f32.gmra.mrb[22].mxu0 %vm423_vm5, %v402_v30 }
 0x37c   :  { %v382_v33 = vpop.f32.mrb[10].mxu1  ;;  %3522 = vmatprep.mubr.msk.f32.mxu0 %vm4422_vm1, %v4421_v19  ;;  %4043 = vmatpush3.bf16.msra.mxu0 %v4012_v55 }
 0x37d   :  { %v403_v34 = vmul.f32 %v396_v32, %v382_v33  ;;  %v3481_v35 = vpop.f32.mrb[11].mxu1  ;;  %4059 = vmatprep.subr.bf16.mxu0 %v4423_v44 }
 0x37f   :  { %3523 = vmatmul.mubr.msk.f32.gmra.mrb[24].mxu0 %vm423_vm5, %v403_v34 }
 0x380   :  { %v387_v37 = vpop.f32.mrb[12].mxu1  ;;  %3525 = vmatprep.mubr.msk.f32.mxu0 %vm4422_vm1, %v4421_v19 }
 0x381   :  { %v404_v38 = vmul.f32 %v397_v36, %v387_v37  ;;  %v3484_v39 = vpop.f32.mrb[13].mxu1 }
 0x383   :  { %3526 = vmatmul.mubr.msk.f32.gmra.mrb[26].mxu0 %vm423_vm5, %v404_v38 }
 0x384   :  { %3594 = vmatprep.mubr.msk.f32.mxu0 %vm4422_vm1, %v4421_v19 }
 0x43e   :  { %v511_v57 = vpop.f32.mrb[14].mxu0 }
 0x43f   :  { %v512_v58 = vadd.f32 %v3027_v56, %v511_v57  ;;  %v3509_v59 = vpop.f32.mrb[15].mxu0 }
 0x441   :  { %4220 = vtanh.f32 %v512_v58 }
 0x442   :  { %v516_v60 = vpop.f32.mrb[16].mxu0 }
 0x443   :  { %v517_v61 = vadd.f32 %v3027_v56, %v516_v60  ;;  %v3512_v62 = vpop.f32.mrb[17].mxu0 }
 0x445   :  { %4222 = vtanh.f32 %v517_v61 }
 0x446   :  { %v521_v63 = vpop.f32.mrb[18].mxu0 }
 0x447   :  { %v522_v0 = vadd.f32 %v3027_v56, %v521_v63  ;;  %v3515_v1 = vpop.f32.mrb[19].mxu0 }
 0x449   :  { %4224 = vtanh.f32 %v522_v0 }
 0x44a   :  { %v526_v2 = vpop.f32.mrb[20].mxu0 }
 0x44b   :  { %v4221_v3 = vpop.eup %4220  ;;  %v527_v4 = vadd.f32 %v3027_v56, %v526_v2  ;;  %v3518_v5 = vpop.f32.mrb[21].mxu0 }
 0x44c   :  { %553 = vst.msk [vmem:[#allocation2] sm:$0xff] %vm552_vm6, %v4221_v3 }
 0x44d   :  { %4226 = vtanh.f32 %v527_v4 }
 0x44e   :  { %v531_v6 = vpop.f32.mrb[22].mxu0 }
 0x44f   :  { %v4223_v7 = vpop.eup %4222  ;;  %v532_v8 = vadd.f32 %v3027_v56, %v531_v6  ;;  %v3521_v9 = vpop.f32.mrb[23].mxu0 }
 0x450   :  { %554 = vst.msk [vmem:[#allocation2 + $0x8] sm:$0xff] %vm552_vm6, %v4223_v7 }
 0x451   :  { %4228 = vtanh.f32 %v532_v8 }
 0x452   :  { %v536_v10 = vpop.f32.mrb[24].mxu0 }
 0x453   :  { %v4225_v11 = vpop.eup %4224  ;;  %v537_v12 = vadd.f32 %v3027_v56, %v536_v10  ;;  %v3524_v13 = vpop.f32.mrb[25].mxu0  ;;  %v4767_v21 = vld [vmem:[#allocation2] sm:$0xff] }
 0x454   :  { %555 = vst.msk [vmem:[#allocation2 + $0x10] sm:$0xff] %vm552_vm6, %v4225_v11  ;;  %v588_v27 = vmul.f32 %v4767_v21, %v4767_v21  ;;  %v568_v29 = vsel %vm552_vm6, %v4767_v21, 0.0 }
 0x455   :  { %4230 = vtanh.f32 %v537_v12 }
 0x456   :  { %v541_v14 = vpop.f32.mrb[26].mxu0  ;;  %v595_v38 = vsel %vm552_vm6, %v588_v27, 0.0  ;;  %v648_v27 = vld [vmem:[%s5930_s11] sm:$0xff] }
 0x457   :  { %v4227_v15 = vpop.eup %4226  ;;  %v542_v16 = vadd.f32 %v3027_v56, %v541_v14  ;;  %v3527_v17 = vpop.f32.mrb[27].mxu0  ;;  %v4764_v20 = vld [vmem:[#allocation2 + $0x8] sm:$0xff] }
 0x458   :  { %556 = vst.msk [vmem:[#allocation2 + $0x18] sm:$0xff] %vm552_vm6, %v4227_v15  ;;  %v589_v23 = vmul.f32 %v4764_v20, %v4764_v20  ;;  %v569_v26 = vsel %vm552_vm6, %v4764_v20, 0.0 }
 0x459   :  { %4232 = vtanh.f32 %v542_v16  ;;  %v570_v35 = vadd.f32 %v569_v26, %v568_v29  ;;  %v625_v16 = vlaneseq  ;;  %v621_v29 = vld [vmem:[%s5931_s9] sm:$0x1] }
 0x45a   :  { %v596_v32 = vsel %vm552_vm6, %v589_v23, 0.0 }
 0x45b   :  { %v4229_v18 = vpop.eup %4228  ;;  %v4769_v22 = vld [vmem:[#allocation2 + $0x10] sm:$0xff]  ;;  %v597_v41 = vadd.f32 %v596_v32, %v595_v38  ;;  %v626_v17 = vshrl.u32 %v625_v16, 7 }
 0x45c   :  { %557 = vst.msk [vmem:[#allocation2 + $0x20] sm:$0xff] %vm552_vm6, %v4229_v18  ;;  %v590_v28 = vmul.f32 %v4769_v22, %v4769_v22  ;;  %v571_v30 = vsel %vm552_vm6, %v4769_v22, 0.0  ;;  %v617_v18 = vld [vmem:[%s5929_s8] sm:$0x1] }
 0x45d   :  { %v572_v40 = vadd.f32 %v571_v30, %v570_v35  ;;  %v4819_v23 = vsub.s32 0, %v626_v17 }
 0x45e   :  { %v598_v39 = vsel %vm552_vm6, %v590_v28, 0.0  ;;  %v649_v28 = vld [vmem:[%s5930_s11 + $0x8] sm:$0xff] }
 0x45f   :  { %v4231_v24 = vpop.eup %4230  ;;  %v4773_v25 = vld [vmem:[#allocation2 + $0x18] sm:$0xff]  ;;  %v599_v47 = vadd.f32 %v598_v39, %v597_v41  ;;  %v4015_v32 = vpack.c.bf16 %v649_v28, %v648_v27  ;;  %v652_v39 = vld [vmem:[%s5930_s11 + $0x20] sm:$0xff] }
 0x460   :  { %558 = vst.msk [vmem:[#allocation2 + $0x28] sm:$0xff] %vm552_vm6, %v4231_v24  ;;  %v591_v31 = vmul.f32 %v4773_v25, %v4773_v25  ;;  %v573_v36 = vsel %vm552_vm6, %v4773_v25, 0.0 }
 0x461   :  { %v574_v46 = vadd.f32 %v573_v36, %v572_v40  ;;  %v650_v36 = vld [vmem:[%s5930_s11 + $0x10] sm:$0xff]  ;;  %v653_v40 = vld [vmem:[%s5930_s11 + $0x28] sm:$0xff] }
 0x462   :  { %v600_v43 = vsel %vm552_vm6, %v591_v31, 0.0  ;;  %v4021_v41 = vpack.c.bf16 %v653_v40, %v652_v39 }
 0x463   :  { %v4233_v33 = vpop.eup %4232  ;;  %v4789_v34 = vld [vmem:[#allocation2 + $0x20] sm:$0xff]  ;;  %v601_v52 = vadd.f32 %v600_v43, %v599_v47  ;;  %v655_v43 = vld [vmem:[%s5930_s11 + $0x38] sm:$0xff] }
 0x464   :  { %560 = vst.msk [vmem:[#allocation2 + $0x30] sm:$0x3] %vm559_vm7, %v4233_v33  ;;  %v592_v37 = vmul.f32 %v4789_v34, %v4789_v34  ;;  %v575_v42 = vsel %vm552_vm6, %v4789_v34, 0.0 }
 0x465   :  { %v576_v51 = vadd.f32 %v575_v42, %v574_v46  ;;  %v654_v42 = vld [vmem:[%s5930_s11 + $0x30] sm:$0xff] }
 0x466   :  { %v602_v50 = vsel %vm552_vm6, %v592_v37, 0.0  ;;  %v651_v37 = vld [vmem:[%s5930_s11 + $0x18] sm:$0xff]  ;;  %v4024_v46 = vpack.c.bf16 %v655_v43, %v654_v42 }
 0x467   :  { %v4801_v45 = vld [vmem:[#allocation2 + $0x28] sm:$0xff]  ;;  %v603_v56 = vadd.f32 %v602_v50, %v601_v52  ;;  %v4018_v38 = vpack.c.bf16 %v651_v37, %v650_v36  ;;  %v1193_v52 = vld [vmem:[%s5933_s16] sm:$0xff] }
 0x468   :  { %v577_v48 = vsel %vm552_vm6, %v4801_v45, 0.0  ;;  %v593_v49 = vmul.f32 %v4801_v45, %v4801_v45 }
 0x469   :  { %v578_v55 = vadd.f32 %v577_v48, %v576_v51  ;;  %v657_v48 = vld [vmem:[%s5930_s11 + $0x48] sm:$0xff] }
 0x46a   :  { %v604_v53 = vsel %vm552_vm6, %v593_v49, 0.0  ;;  %v1187_v51 = vld [vmem:[%s5932_s15 + $0x8] sm:$0xff] }
 0x46b   :  { %v4809_v54 = vld [vmem:[#allocation2 + $0x30] sm:$0x3]  ;;  %v605_v60 = vadd.f32 %v604_v53, %v603_v56  ;;  %v1189_v56 = vld [vmem:[%s5932_s15 + $0x18] sm:$0xff] }
 0x46c   :  { %v579_v57 = vsel %vm559_vm7, %v4809_v54, 0.0  ;;  %v594_v58 = vmul.f32 %v4809_v54, %v4809_v54 }
 0x46d   :  { %v580_v59 = vadd.f32 %v579_v57, %v578_v55  ;;  %v1188_v55 = vld [vmem:[%s5932_s15 + $0x10] sm:$0xff] }
 0x46e   :  { %v606_v61 = vsel %vm559_vm7, %v594_v58, 0.0  ;;  %v1195_v58 = vld [vmem:[%s5933_s16 + $0x10] sm:$0xff] }
 0x46f   :  { %v581_v62 = vrot.slane %v580_v59, 4  ;;  %v607_v63 = vadd.f32 %v606_v61, %v605_v60  ;;  %v4949_v60 = vpack.c.bf16 %v1189_v56, %v1188_v55 }
 0x471   :  { %v582_v0 = vadd.f32 %v581_v62, %v580_v59  ;;  %v608_v1 = vrot.slane %v607_v63, 4  ;;  %v1196_v59 = vld [vmem:[%s5933_s16 + $0x18] sm:$0xff]  ;;  %v1190_v62 = vld [vmem:[%s5932_s15 + $0x20] sm:$0xff] }
 0x472   :  { %v4953_v61 = vpack.c.bf16 %v1196_v59, %v1195_v58 }
 0x473   :  { %v583_v2 = vrot.slane %v582_v0, 2  ;;  %v609_v3 = vadd.f32 %v608_v1, %v607_v63  ;;  %v1191_v63 = vld [vmem:[%s5932_s15 + $0x28] sm:$0xff] }
 0x474   :  { %v1198_v1 = vld [vmem:[%s5933_s16 + $0x28] sm:$0xff] }
 0x475   :  { %v584_v4 = vadd.f32 %v583_v2, %v582_v0  ;;  %v610_v5 = vrot.slane %v609_v3, 2  ;;  %v1197_v0 = vld [vmem:[%s5933_s16 + $0x20] sm:$0xff]  ;;  %v4969_v2 = vpack.c.bf16 %v1191_v63, %v1190_v62 }
 0x477   :  { %v585_v6 = vrot.slane %v584_v4, 1  ;;  %v611_v7 = vadd.f32 %v610_v5, %v609_v3  ;;  %v4973_v3 = vpack.c.bf16 %v1198_v1, %v1197_v0  ;;  %v4988_v5 = vld [vmem:[%s5933_s16 + $0x30] sm:$0x3] }
 0x479   :  { %v612_v8 = vrot.slane %v611_v7, 1  ;;  %v586_v9 = vadd.f32 %v585_v6, %v584_v4  ;;  %v4982_v4 = vld [vmem:[%s5932_s15 + $0x30] sm:$0x3]  ;;  %v637_v6 = vld [vmem:[%s5934_s12] sm:$0x1] }
 0x47b   :  { %v613_v10 = vadd.f32 %v612_v8, %v611_v7  ;;  %v587_v11 = vmul.f32 0.02, %v586_v9 }
 0x47d   :  { %v614_v12 = vmul.f32 0.02, %v613_v10  ;;  %v615_v13 = vmul.f32 %v587_v11, %v587_v11 }
 0x47f   :  { %v616_v14 = vsub.f32 %v614_v12, %v615_v13 }
 0x481   :  { %v618_v15 = vadd.f32 1e-05, %v616_v14 }
 0x483   :  { %4234 = vrsqrt.f32 %v618_v15 }
 0x48d   :  { %v4235_v24 = vpop.eup %4234 }
 0x48e   :  { %v620_v26 = vmul.f32 %v4235_v24, %v617_v18 }
 0x490   :  { %v622_v30 = vmul.f32 %v620_v26, %v587_v11  ;;  %v628_v31 = vrot.slane %v620_v26, %v4819_v23 }
 0x492   :  { %v623_v33 = vsub.f32 %v621_v29, %v622_v30  ;;  %v630_v35 = vmul.f32 %v628_v31, %v4767_v21  ;;  %v631_v21 = vmul.f32 %v628_v31, %v4764_v20  ;;  %v632_v20 = vmul.f32 %v628_v31, %v4769_v22  ;;  %v656_v22 = vld [vmem:[%s5930_s11 + $0x40] sm:$0xff] }
 0x493   :  { %v633_v47 = vmul.f32 %v628_v31, %v4773_v25  ;;  %v4027_v49 = vpack.c.bf16 %v657_v48, %v656_v22  ;;  %v634_v50 = vmul.f32 %v628_v31, %v4789_v34  ;;  %v635_v25 = vmul.f32 %v628_v31, %v4801_v45  ;;  %v1186_v45 = vld [vmem:[%s5932_s15] sm:$0xff] }
 0x494   :  { %3549 = vmatmul.mubr.msk.f32.vlgmr.msra.gmra.mrb[14].mxu1 %vm552_vm6, %v623_v33  ;;  %3595 = vmatmul.mubr.msk.f32.vlgmr.msra.gmra.mrb[28].mxu0 %vm552_vm6, %v630_v35  ;;  %v636_v34 = vmul.f32 %v628_v31, %v4809_v54  ;;  %v4929_v53 = vpack.c.bf16 %v1187_v51, %v1186_v45  ;;  %v1194_v54 = vld [vmem:[%s5933_s16 + $0x8] sm:$0xff] }
 0x495   :  { %4016 = vmatpush3.bf16.msra.mxu1 %v4015_v32  ;;  %3597 = vmatprep.mubr.msk.f32.mxu0 %vm4422_vm1, %v4421_v19  ;;  %v4940_v57 = vpack.c.bf16 %v1194_v54, %v1193_v52 }
 0x496   :  { %4017 = vmatprep.subr.bf16.mxu1 %v4423_v44  ;;  %3571 = vmatprep.mubr.msk.f32.mxu1 %vm4422_vm1, %v4421_v19 }
 0x497   :  { %4061 = vmatpush3.bf16.msra.mxu0 %v4929_v53 }
 0x498   :  { %3598 = vmatmul.mubr.msk.f32.gmra.mrb[30].mxu0 %vm552_vm6, %v631_v21  ;;  %4062 = vmatprep.subr.bf16.mxu0 %v4423_v44 }
 0x499   :  { %4019 = vmatpush3.bf16.msra.mxu1 %v4018_v38  ;;  %3600 = vmatprep.mubr.msk.f32.mxu0 %vm4422_vm1, %v4421_v19 }
 0x49a   :  { %4020 = vmatprep.subr.bf16.mxu1 %v4423_v44 }
 0x49b   :  { %4064 = vmatpush3.bf16.msra.mxu0 %v4949_v60 }
 0x49c   :  { %3601 = vmatmul.mubr.msk.f32.gmra.mrb[32].mxu0 %vm552_vm6, %v632_v20  ;;  %4065 = vmatprep.subr.bf16.mxu0 %v4423_v44 }
 0x49d   :  { %4022 = vmatpush3.bf16.msra.mxu1 %v4021_v41  ;;  %3603 = vmatprep.mubr.msk.f32.mxu0 %vm4422_vm1, %v4421_v19 }
 0x49e   :  { %4023 = vmatprep.subr.bf16.mxu1 %v4423_v44 }
 0x49f   :  { %4067 = vmatpush3.bf16.msra.mxu0 %v4969_v2 }
 0x4a0   :  { %3604 = vmatmul.mubr.msk.f32.gmra.mrb[34].mxu0 %vm552_vm6, %v633_v47  ;;  %3668 = vmatprep.subr.mxu0 %v4421_v19 }
 0x4a1   :  { %4025 = vmatpush3.bf16.msra.mxu1 %v4024_v46  ;;  %3606 = vmatprep.mubr.msk.f32.mxu0 %vm4422_vm1, %v4421_v19 }
 0x4a2   :  { %4026 = vmatprep.subr.bf16.mxu1 %v4423_v44 }
 0x4a3   :  { %3669 = vmatpush3.msk.msra.mxu0 %vm164_vm2, %v4982_v4 }
 0x4a4   :  { %3607 = vmatmul.mubr.msk.f32.gmra.mrb[36].mxu0 %vm552_vm6, %v634_v50  ;;  %4077 = vmatprep.subr.bf16.mxu0 %v4423_v44 }
 0x4a5   :  { %4028 = vmatpush3.bf16.msra.mxu1 %v4027_v49  ;;  %3609 = vmatprep.mubr.msk.f32.mxu0 %vm4422_vm1, %v4421_v19 }
 0x4a6   :  { %4044 = vmatprep.subr.bf16.mxu1 %v4423_v44 }
 0x4a8   :  { %3572 = vmatmul.mubr.msk.f32.vlgmr.msra.gmra.mrb[16].mxu1 %vm552_vm6, %v623_v33  ;;  %3610 = vmatmul.mubr.msk.f32.gmra.mrb[38].mxu0 %vm552_vm6, %v635_v25 }
 0x4a9   :  { %4046 = vmatpush3.bf16.msra.mxu1 %v4015_v32  ;;  %3612 = vmatprep.mubr.msk.f32.mxu0 %vm4422_vm1, %v4421_v19 }
 0x4aa   :  { %4047 = vmatprep.subr.bf16.mxu1 %v4423_v44  ;;  %3635 = vmatprep.mubr.msk.f32.mxu1 %vm4422_vm1, %v4421_v19 }
 0x4ac   :  { %3613 = vmatmul.mubr.msk.f32.gmra.mrb[40].mxu0 %vm552_vm6, %v636_v34 }
 0x4ad   :  { %4049 = vmatpush3.bf16.msra.mxu1 %v4018_v38  ;;  %3670 = vmatprep.mubr.msk.f32.mxu0 %vm4422_vm1, %v4421_v19 }
 0x4ae   :  { %4050 = vmatprep.subr.bf16.mxu1 %v4423_v44 }
 0x4b1   :  { %4052 = vmatpush3.bf16.msra.mxu1 %v4021_v41 }
 0x4b2   :  { %4053 = vmatprep.subr.bf16.mxu1 %v4423_v44 }
 0x4b5   :  { %4055 = vmatpush3.bf16.msra.mxu1 %v4024_v46 }
 0x4b6   :  { %4056 = vmatprep.subr.bf16.mxu1 %v4423_v44 }
 0x4b9   :  { %4058 = vmatpush3.bf16.msra.mxu1 %v4027_v49 }
 0x4ba   :  { %4068 = vmatprep.subr.bf16.mxu1 %v4423_v44 }
 0x4bc   :  { %3636 = vmatmul.mubr.msk.f32.vlgmr.msra.gmra.mrb[18].mxu1 %vm552_vm6, %v630_v35 }
 0x4bd   :  { %3638 = vmatprep.mubr.msk.f32.mxu1 %vm4422_vm1, %v4421_v19  ;;  %4070 = vmatpush3.bf16.msra.mxu1 %v4940_v57 }
 0x4be   :  { %4071 = vmatprep.subr.bf16.mxu1 %v4423_v44 }
 0x4c0   :  { %3639 = vmatmul.mubr.msk.f32.gmra.mrb[20].mxu1 %vm552_vm6, %v631_v21 }
 0x4c1   :  { %3641 = vmatprep.mubr.msk.f32.mxu1 %vm4422_vm1, %v4421_v19  ;;  %4073 = vmatpush3.bf16.msra.mxu1 %v4953_v61 }
 0x4c2   :  { %4074 = vmatprep.subr.bf16.mxu1 %v4423_v44 }
 0x4c4   :  { %3642 = vmatmul.mubr.msk.f32.gmra.mrb[22].mxu1 %vm552_vm6, %v632_v20 }
 0x4c5   :  { %3644 = vmatprep.mubr.msk.f32.mxu1 %vm4422_vm1, %v4421_v19  ;;  %4076 = vmatpush3.bf16.msra.mxu1 %v4973_v3 }
 0x4c6   :  { %3685 = vmatprep.subr.mxu1 %v4421_v19 }
 0x4c8   :  { %3645 = vmatmul.mubr.msk.f32.gmra.mrb[24].mxu1 %vm552_vm6, %v633_v47 }
 0x4c9   :  { %3647 = vmatprep.mubr.msk.f32.mxu1 %vm4422_vm1, %v4421_v19  ;;  %3686 = vmatpush3.msk.msra.mxu1 %vm164_vm2, %v4988_v5 }
 0x4ca   :  { %4086 = vmatprep.subr.bf16.mxu1 %v4423_v44 }
 0x4cc   :  { %3648 = vmatmul.mubr.msk.f32.gmra.mrb[26].mxu1 %vm552_vm6, %v634_v50 }
 0x4cd   :  { %3650 = vmatprep.mubr.msk.f32.mxu1 %vm4422_vm1, %v4421_v19 }
 0x4d0   :  { %3651 = vmatmul.mubr.msk.f32.gmra.mrb[28].mxu1 %vm552_vm6, %v635_v25 }
 0x4d1   :  { %3653 = vmatprep.mubr.msk.f32.mxu1 %vm4422_vm1, %v4421_v19 }
 0x4d4   :  { %3654 = vmatmul.mubr.msk.f32.gmra.mrb[30].mxu1 %vm552_vm6, %v636_v34 }
 0x4d5   :  { %3687 = vmatprep.mubr.msk.f32.mxu1 %vm4422_vm1, %v4421_v19 }
 0x567   :  { %v727_v7 = vpop.f32.mrb[14].mxu1  ;;  %v896_v8 = vpop.f32.mrb[28].mxu0 }
 0x568   :  { %v731_v9 = vadd.f32 %v727_v7, %v637_v6  ;;  %v3550_v10 = vpop.f32.mrb[15].mxu1  ;;  %v3596_v11 = vpop.f32.mrb[29].mxu0 }
 0x56a   :  { %v807_v12 = vrot.slane %v731_v9, %v4819_v23 }
 0x56b   :  { %v901_v13 = vpop.f32.mrb[30].mxu0 }
 0x56c   :  { %v897_v14 = vadd.f32 %v896_v8, %v807_v12  ;;  %v902_v15 = vadd.f32 %v901_v13, %v807_v12  ;;  %v3599_v16 = vpop.f32.mrb[31].mxu0 }
 0x56e   :  { %4236 = vtanh.f32 %v897_v14 }
 0x56f   :  { %4238 = vtanh.f32 %v902_v15  ;;  %v906_v17 = vpop.f32.mrb[32].mxu0 }
 0x570   :  { %v907_v18 = vadd.f32 %v906_v17, %v807_v12  ;;  %v3602_v24 = vpop.f32.mrb[33].mxu0 }
 0x572   :  { %4240 = vtanh.f32 %v907_v18 }
 0x573   :  { %v911_v26 = vpop.f32.mrb[34].mxu0 }
 0x574   :  { %v912_v27 = vadd.f32 %v911_v26, %v807_v12  ;;  %v3605_v28 = vpop.f32.mrb[35].mxu0 }
 0x576   :  { %4242 = vtanh.f32 %v912_v27 }
 0x577   :  { %v916_v29 = vpop.f32.mrb[36].mxu0 }
 0x578   :  { %v4237_v30 = vpop.eup %4236  ;;  %v917_v31 = vadd.f32 %v916_v29, %v807_v12  ;;  %v3608_v32 = vpop.f32.mrb[37].mxu0 }
 0x579   :  { %v4239_v33 = vpop.eup %4238  ;;  %938 = vst.msk [vmem:[#allocation3] sm:$0xff] %vm937_vm8, %v4237_v30 }
 0x57a   :  { %939 = vst.msk [vmem:[#allocation3 + $0x8] sm:$0xff] %vm937_vm8, %v4239_v33  ;;  %4244 = vtanh.f32 %v917_v31 }
 0x57b   :  { %v798_v35 = vpop.f32.mrb[16].mxu1  ;;  %v921_v36 = vpop.f32.mrb[38].mxu0 }
 0x57c   :  { %v4241_v37 = vpop.eup %4240  ;;  %v3573_v38 = vpop.f32.mrb[17].mxu1  ;;  %v922_v21 = vadd.f32 %v921_v36, %v807_v12  ;;  %v802_v47 = vadd.f32 %v798_v35, %v637_v6 }
 0x57d   :  { %v3611_v39 = vpop.f32.mrb[39].mxu0  ;;  %940 = vst.msk [vmem:[#allocation3 + $0x10] sm:$0xff] %vm937_vm8, %v4241_v37 }
 0x57e   :  { %4246 = vtanh.f32 %v922_v21  ;;  %v950_v48 = vrot.slane %v802_v47, %v4819_v23 }
 0x57f   :  { %v926_v40 = vpop.f32.mrb[40].mxu0 }
 0x580   :  { %v4243_v41 = vpop.eup %4242  ;;  %v927_v20 = vadd.f32 %v926_v40, %v807_v12  ;;  %v3614_v42 = vpop.f32.mrb[41].mxu0  ;;  %v5009_v1 = vld [vmem:[#allocation3] sm:$0xff] }
 0x581   :  { %941 = vst.msk [vmem:[#allocation3 + $0x18] sm:$0xff] %vm937_vm8, %v4243_v41  ;;  %v5011_v6 = vld [vmem:[#allocation3 + $0x8] sm:$0xff]  ;;  %v1112_v10 = vmul.f32 %v5009_v1, %v5009_v1  ;;  %v1079_v17 = vsel %vm937_vm8, %v5009_v1, 0.0 }
 0x582   :  { %4248 = vtanh.f32 %v927_v20  ;;  %v1113_v11 = vmul.f32 %v5011_v6, %v5011_v6  ;;  %v1080_v18 = vsel %vm937_vm8, %v5011_v6, 0.0 }
 0x583   :  { %v1125_v27 = vsel %vm937_vm8, %v1112_v10, 0.0  ;;  %v1081_v33 = vadd.f32 %v1080_v18, %v1079_v17 }
 0x584   :  { %v4245_v43 = vpop.eup %4244  ;;  %v5014_v9 = vld [vmem:[#allocation3 + $0x10] sm:$0xff]  ;;  %v1126_v28 = vsel %vm937_vm8, %v1113_v11, 0.0 }
 0x585   :  { %942 = vst.msk [vmem:[#allocation3 + $0x20] sm:$0xff] %vm937_vm8, %v4245_v43  ;;  %v1114_v24 = vmul.f32 %v5014_v9, %v5014_v9  ;;  %v1082_v29 = vsel %vm937_vm8, %v5014_v9, 0.0  ;;  %v1127_v40 = vadd.f32 %v1126_v28, %v1125_v27 }
 0x586   :  { %v1083_v41 = vadd.f32 %v1082_v29, %v1081_v33 }
 0x587   :  { %v1128_v38 = vsel %vm937_vm8, %v1114_v24, 0.0 }
 0x588   :  { %v4247_v46 = vpop.eup %4246  ;;  %v5020_v14 = vld [vmem:[#allocation3 + $0x18] sm:$0xff] }
 0x589   :  { %943 = vst.msk [vmem:[#allocation3 + $0x28] sm:$0xff] %vm937_vm8, %v4247_v46  ;;  %v1115_v30 = vmul.f32 %v5020_v14, %v5020_v14  ;;  %v1084_v21 = vsel %vm937_vm8, %v5020_v14, 0.0 }
 0x58b   :  { %v1130_v42 = vsel %vm937_vm8, %v1115_v30, 0.0 }
 0x58c   :  { %v4249_v22 = vpop.eup %4248  ;;  %v5029_v26 = vld [vmem:[#allocation3 + $0x20] sm:$0xff] }
 0x58d   :  { %945 = vst.msk [vmem:[#allocation3 + $0x30] sm:$0x3] %vm944_vm9, %v4249_v22  ;;  %v1116_v39 = vmul.f32 %v5029_v26, %v5029_v26  ;;  %v1086_v46 = vsel %vm937_vm8, %v5029_v26, 0.0  ;;  %v1129_v22 = vadd.f32 %v1128_v38, %v1127_v40 }
 0x58f   :  { %v1018_v49 = vpop.f32.mrb[18].mxu1 }
 0x590   :  { %v1019_v50 = vadd.f32 %v1018_v49, %v950_v48  ;;  %v3637_v25 = vpop.f32.mrb[19].mxu1  ;;  %v5037_v35 = vld [vmem:[#allocation3 + $0x28] sm:$0xff]  ;;  %v1085_v49 = vadd.f32 %v1084_v21, %v1083_v41 }
 0x591   :  { %v1117_v43 = vmul.f32 %v5037_v35, %v5037_v35  ;;  %v1088_v25 = vsel %vm937_vm8, %v5037_v35, 0.0 }
 0x592   :  { %4250 = vtanh.f32 %v1019_v50  ;;  %v1132_v50 = vsel %vm937_vm8, %v1116_v39, 0.0 }
 0x593   :  { %v1023_v34 = vpop.f32.mrb[20].mxu1 }
 0x594   :  { %v1024_v45 = vadd.f32 %v1023_v34, %v950_v48  ;;  %v3640_v51 = vpop.f32.mrb[21].mxu1 }
 0x596   :  { %4252 = vtanh.f32 %v1024_v45  ;;  %v1131_v45 = vadd.f32 %v1130_v42, %v1129_v22 }
 0x597   :  { %v1028_v52 = vpop.f32.mrb[22].mxu1 }
 0x598   :  { %v1029_v54 = vadd.f32 %v1028_v52, %v950_v48  ;;  %v3643_v55 = vpop.f32.mrb[23].mxu1  ;;  %v1087_v52 = vadd.f32 %v1086_v46, %v1085_v49 }
 0x59a   :  { %4254 = vtanh.f32 %v1029_v54 }
 0x59b   :  { %v1033_v56 = vpop.f32.mrb[24].mxu1 }
 0x59c   :  { %v4251_v58 = vpop.eup %4250  ;;  %v1034_v59 = vadd.f32 %v1033_v56, %v950_v48  ;;  %v3646_v62 = vpop.f32.mrb[25].mxu1  ;;  %v1134_v56 = vsel %vm937_vm8, %v1117_v43, 0.0 }
 0x59d   :  { %1059 = vst.msk [vmem:[#allocation3 + $0x32] sm:$0xff] %vm937_vm8, %v4251_v58  ;;  %v1089_v62 = vadd.f32 %v1088_v25, %v1087_v52 }
 0x59e   :  { %4256 = vtanh.f32 %v1034_v59 }
 0x59f   :  { %v1038_v63 = vpop.f32.mrb[26].mxu1 }
 0x5a0   :  { %v4253_v0 = vpop.eup %4252  ;;  %v1039_v7 = vadd.f32 %v1038_v63, %v950_v48  ;;  %v3649_v8 = vpop.f32.mrb[27].mxu1  ;;  %v1133_v63 = vadd.f32 %v1132_v50, %v1131_v45 }
 0x5a1   :  { %1060 = vst.msk [vmem:[#allocation3 + $0x3a] sm:$0xff] %vm937_vm8, %v4253_v0 }
 0x5a2   :  { %4258 = vtanh.f32 %v1039_v7  ;;  %v1135_v11 = vadd.f32 %v1134_v56, %v1133_v63 }
 0x5a3   :  { %v1043_v12 = vpop.f32.mrb[28].mxu1 }
 0x5a4   :  { %v4255_v13 = vpop.eup %4254  ;;  %v1044_v15 = vadd.f32 %v1043_v12, %v950_v48  ;;  %v3652_v16 = vpop.f32.mrb[29].mxu1  ;;  %v5045_v20 = vld [vmem:[#allocation3 + $0x30] sm:$0xff] }
 0x5a5   :  { %1061 = vst.msk [vmem:[#allocation3 + $0x42] sm:$0xff] %vm937_vm8, %v4255_v13  ;;  %v1118_v34 = vmul.f32 %v5045_v20, %v5045_v20  ;;  %v1090_v54 = vsel %vm937_vm8, %v5045_v20, 0.0 }
 0x5a6   :  { %4260 = vtanh.f32 %v1044_v15  ;;  %v1091_v10 = vadd.f32 %v1090_v54, %v1089_v62 }
 0x5a7   :  { %v1048_v31 = vpop.f32.mrb[30].mxu1  ;;  %v1136_v8 = vsel %vm937_vm8, %v1118_v34, 0.0 }
 0x5a8   :  { %v4257_v32 = vpop.eup %4256  ;;  %v1049_v36 = vadd.f32 %v1048_v31, %v950_v48  ;;  %v3655_v37 = vpop.f32.mrb[31].mxu1  ;;  %v5052_v48 = vld [vmem:[#allocation3 + $0x38] sm:$0xff]  ;;  %v1137_v24 = vadd.f32 %v1136_v8, %v1135_v11 }
 0x5a9   :  { %1062 = vst.msk [vmem:[#allocation3 + $0x4a] sm:$0xff] %vm937_vm8, %v4257_v32  ;;  %v1119_v55 = vmul.f32 %v5052_v48, %v5052_v48  ;;  %v1092_v0 = vsel %vm937_vm8, %v5052_v48, 0.0 }
 0x5aa   :  { %4262 = vtanh.f32 %v1049_v36  ;;  %v1093_v18 = vadd.f32 %v1092_v0, %v1091_v10 }
 0x5ab   :  { %v1138_v15 = vsel %vm937_vm8, %v1119_v55, 0.0 }
 0x5ac   :  { %v4259_v47 = vpop.eup %4258  ;;  %v5060_v51 = vld [vmem:[#allocation3 + $0x40] sm:$0xff]  ;;  %v1139_v31 = vadd.f32 %v1138_v15, %v1137_v24 }
 0x5ad   :  { %1063 = vst.msk [vmem:[#allocation3 + $0x52] sm:$0xff] %vm937_vm8, %v4259_v47  ;;  %v1120_v7 = vmul.f32 %v5060_v51, %v5060_v51  ;;  %v1094_v12 = vsel %vm937_vm8, %v5060_v51, 0.0 }
 0x5ae   :  { %v1095_v30 = vadd.f32 %v1094_v12, %v1093_v18 }
 0x5af   :  { %v1140_v29 = vsel %vm937_vm8, %v1120_v7, 0.0 }
 0x5b0   :  { %v4261_v58 = vpop.eup %4260  ;;  %v5067_v59 = vld [vmem:[#allocation3 + $0x48] sm:$0xff]  ;;  %v1141_v38 = vadd.f32 %v1140_v29, %v1139_v31 }
 0x5b1   :  { %1064 = vst.msk [vmem:[#allocation3 + $0x5a] sm:$0xff] %vm937_vm8, %v4261_v58  ;;  %v1121_v13 = vmul.f32 %v5067_v59, %v5067_v59  ;;  %v1096_v27 = vsel %vm937_vm8, %v5067_v59, 0.0 }
 0x5b2   :  { %v1097_v37 = vadd.f32 %v1096_v27, %v1095_v30  ;;  %v1159_v27 = vld [vmem:[%s5935_s13] sm:$0x1] }
 0x5b3   :  { %v1142_v33 = vsel %vm937_vm8, %v1121_v13, 0.0  ;;  %v1163_v30 = vld [vmem:[%s5936_s14] sm:$0x1] }
 0x5b4   :  { %v4263_v16 = vpop.eup %4262  ;;  %v5080_v17 = vld [vmem:[#allocation3 + $0x50] sm:$0xff]  ;;  %v1143_v42 = vadd.f32 %v1142_v33, %v1141_v38 }
 0x5b5   :  { %1065 = vst.msk [vmem:[#allocation3 + $0x62] sm:$0x3] %vm944_vm9, %v4263_v16  ;;  %v1122_v28 = vmul.f32 %v5080_v17, %v5080_v17  ;;  %v1098_v32 = vsel %vm937_vm8, %v5080_v17, 0.0 }
 0x5b6   :  { %v1099_v41 = vadd.f32 %v1098_v32, %v1097_v37 }
 0x5b7   :  { %v1144_v40 = vsel %vm937_vm8, %v1122_v28, 0.0 }
 0x5b8   :  { %v5091_v36 = vld [vmem:[#allocation3 + $0x58] sm:$0xff]  ;;  %v1145_v22 = vadd.f32 %v1144_v40, %v1143_v42  ;;  %v1185_v40 = vld [vmem:[%s5938_s17] sm:$0x1] }
 0x5b9   :  { %v1100_v21 = vsel %vm937_vm8, %v5091_v36, 0.0  ;;  %v1123_v39 = vmul.f32 %v5091_v36, %v5091_v36 }
 0x5ba   :  { %v1101_v47 = vadd.f32 %v1100_v21, %v1099_v41 }
 0x5bb   :  { %v1146_v43 = vsel %vm937_vm8, %v1123_v39, 0.0 }
 0x5bc   :  { %v5099_v46 = vld [vmem:[#allocation3 + $0x60] sm:$0xf]  ;;  %v1147_v34 = vadd.f32 %v1146_v43, %v1145_v22 }
 0x5bd   :  { %v1103_v49 = vsel %vm1102_vm10, %v5099_v46, 0.0  ;;  %v1124_v50 = vmul.f32 %v5099_v46, %v5099_v46 }
 0x5be   :  { %v1104_v25 = vadd.f32 %v1103_v49, %v1101_v47 }
 0x5bf   :  { %v1148_v45 = vsel %vm1102_vm10, %v1124_v50, 0.0 }
 0x5c0   :  { %v1105_v52 = vrot.slane %v1104_v25, 4  ;;  %v1149_v54 = vadd.f32 %v1148_v45, %v1147_v34 }
 0x5c2   :  { %v1106_v55 = vadd.f32 %v1105_v52, %v1104_v25  ;;  %v1150_v56 = vrot.slane %v1149_v54, 4 }
 0x5c4   :  { %v1107_v58 = vrot.slane %v1106_v55, 2  ;;  %v1151_v62 = vadd.f32 %v1150_v56, %v1149_v54 }
 0x5c6   :  { %v1108_v63 = vadd.f32 %v1107_v58, %v1106_v55  ;;  %v1152_v0 = vrot.slane %v1151_v62, 2 }
 0x5c8   :  { %v1109_v7 = vrot.slane %v1108_v63, 1  ;;  %v1153_v8 = vadd.f32 %v1152_v0, %v1151_v62 }
 0x5ca   :  { %v1110_v10 = vadd.f32 %v1109_v7, %v1108_v63  ;;  %v1154_v11 = vrot.slane %v1153_v8, 1 }
 0x5cc   :  { %v1111_v12 = vmul.f32 0.01, %v1110_v10  ;;  %v1155_v13 = vadd.f32 %v1154_v11, %v1153_v8 }
 0x5ce   :  { %v1156_v15 = vmul.f32 0.01, %v1155_v13  ;;  %v1157_v16 = vmul.f32 %v1111_v12, %v1111_v12 }
 0x5d0   :  { %v1158_v18 = vsub.f32 %v1156_v15, %v1157_v16 }
 0x5d2   :  { %v1160_v24 = vadd.f32 1e-05, %v1158_v18 }
 0x5d4   :  { %4264 = vrsqrt.f32 %v1160_v24 }
 0x5de   :  { %v4265_v28 = vpop.eup %4264 }
 0x5df   :  { %v1162_v29 = vmul.f32 %v4265_v28, %v1159_v27 }
 0x5e1   :  { %v1164_v31 = vmul.f32 %v1162_v29, %v1111_v12 }
 0x5e3   :  { %v1165_v32 = vsub.f32 %v1163_v30, %v1164_v31 }
 0x5e5   :  { %3671 = vmatmul.mubr.msk.f32.vlgmr.msra.gmra.mrb[42].mxu0 %vm937_vm8, %v1165_v32  ;;  %3688 = vmatmul.mubr.msk.f32.vlgmr.msra.gmra.mrb[32].mxu1 %vm937_vm8, %v1165_v32 }
 0x5e6   :  { %4079 = vmatpush3.bf16.msra.mxu0 %v4929_v53  ;;  %4088 = vmatpush3.bf16.msra.mxu1 %v4940_v57  ;;  %v5125_v53 = vrot.slane %v1162_v29, %v4819_v23 }
 0x5e7   :  { %4080 = vmatprep.subr.bf16.mxu0 %v4423_v44  ;;  %4089 = vmatprep.subr.bf16.mxu1 %v4423_v44 }
 0x5e8   :  { %3704 = vmatprep.mubr.msk.f32.mxu0 %vm4422_vm1, %v4421_v19  ;;  %3757 = vmatprep.mubr.msk.f32.mxu1 %vm4422_vm1, %v4421_v19  ;;  %v1172_v57 = vmul.f32 %v5125_v53, %v5009_v1  ;;  %v1179_v1 = vmul.f32 %v5125_v53, %v5052_v48  ;;  %v1920_v48 = vld [vmem:[%s5937_s20 + $0x8] sm:$0xff] }
 0x5ea   :  { %4082 = vmatpush3.bf16.msra.mxu0 %v4949_v60  ;;  %4091 = vmatpush3.bf16.msra.mxu1 %v4953_v61  ;;  %v1173_v60 = vmul.f32 %v5125_v53, %v5011_v6  ;;  %v1174_v61 = vmul.f32 %v5125_v53, %v5014_v9  ;;  %v1180_v6 = vmul.f32 %v5125_v53, %v5060_v51  ;;  %v1921_v51 = vld [vmem:[%s5937_s20 + $0x10] sm:$0xff] }
 0x5eb   :  { %4083 = vmatprep.subr.bf16.mxu0 %v4423_v44  ;;  %4092 = vmatprep.subr.bf16.mxu1 %v4423_v44  ;;  %v1181_v9 = vmul.f32 %v5125_v53, %v5067_v59 }
 0x5ee   :  { %4085 = vmatpush3.bf16.msra.mxu0 %v4969_v2  ;;  %4094 = vmatpush3.bf16.msra.mxu1 %v4973_v3  ;;  %v1175_v2 = vmul.f32 %v5125_v53, %v5020_v14  ;;  %v1176_v3 = vmul.f32 %v5125_v53, %v5029_v26  ;;  %v1182_v14 = vmul.f32 %v5125_v53, %v5080_v17  ;;  %v1922_v17 = vld [vmem:[%s5937_s20 + $0x18] sm:$0x1] }
 0x5ef   :  { %3702 = vmatprep.subr.mxu0 %v4421_v19  ;;  %3755 = vmatprep.subr.mxu1 %v4421_v19  ;;  %v1183_v26 = vmul.f32 %v5125_v53, %v5091_v36  ;;  %v4099_v33 = vpack.c.bf16 %v1922_v17, %v1921_v51 }
 0x5f2   :  { %3703 = vmatpush3.msk.msra.mxu0 %vm164_vm2, %v4982_v4  ;;  %3756 = vmatpush3.msk.msra.mxu1 %vm164_vm2, %v4988_v5  ;;  %v1177_v4 = vmul.f32 %v5125_v53, %v5037_v35  ;;  %v1178_v5 = vmul.f32 %v5125_v53, %v5045_v20  ;;  %v1184_v35 = vmul.f32 %v5125_v53, %v5099_v46  ;;  %v1919_v20 = vld [vmem:[%s5937_s20] sm:$0xff]  ;;  %vm3002_vm2 = vcmask 1042432  }
 0x5f3   :  { %3705 = vmatmul.mubr.msk.f32.vlgmr.msra.gmra.mrb[44].mxu0 %vm937_vm8, %v1172_v57  ;;  %3758 = vmatmul.mubr.msk.f32.vlgmr.msra.gmra.mrb[34].mxu1 %vm937_vm8, %v1172_v57  ;;  %v4096_v59 = vpack.c.bf16 %v1920_v48, %v1919_v20  ;;  %vm3004_vm4 = vmor %vm3003_vm3, %vm3002_vm2 }
 0x5f4   :  { %3707 = vmatprep.mubr.msk.f32.mxu0 %vm4422_vm1, %v4421_v19  ;;  %3760 = vmatprep.mubr.msk.f32.mxu1 %vm4422_vm1, %v4421_v19 }
 0x5f5   :  { %4109 = vmatprep.subr.bf16.mxu1 %v4423_v44  ;;  %4095 = vmatprep.subr.bf16.mxu0 %v4423_v44 }
 0x5f6   :  { %4111 = vmatpush3.bf16.msra.mxu1 %v4096_v59  ;;  %4097 = vmatpush3.bf16.msra.mxu0 %v4096_v59 }
 0x5f7   :  { %3708 = vmatmul.mubr.msk.f32.gmra.mrb[46].mxu0 %vm937_vm8, %v1173_v60  ;;  %3761 = vmatmul.mubr.msk.f32.gmra.mrb[36].mxu1 %vm937_vm8, %v1173_v60 }
 0x5f8   :  { %3710 = vmatprep.mubr.msk.f32.mxu0 %vm4422_vm1, %v4421_v19  ;;  %3763 = vmatprep.mubr.msk.f32.mxu1 %vm4422_vm1, %v4421_v19 }
 0x5f9   :  { %4098 = vmatprep.subr.bf16.mxu0 %v4423_v44  ;;  %4112 = vmatprep.subr.bf16.mxu1 %v4423_v44 }
 0x5fa   :  { %4101 = vmatpush3.bf16.msk.msra.mxu0 %vm5254_vm13, %v4099_v33  ;;  %4115 = vmatpush3.bf16.msk.msra.mxu1 %vm5254_vm13, %v4099_v33 }
 0x5fb   :  { %3711 = vmatmul.mubr.msk.f32.gmra.mrb[48].mxu0 %vm937_vm8, %v1174_v61  ;;  %3764 = vmatmul.mubr.msk.f32.gmra.mrb[38].mxu1 %vm937_vm8, %v1174_v61 }
 0x5fc   :  { %3713 = vmatprep.mubr.msk.f32.mxu0 %vm4422_vm1, %v4421_v19  ;;  %3766 = vmatprep.mubr.msk.f32.mxu1 %vm4422_vm1, %v4421_v19 }
 0x5fd   :  { %4102 = vmatprep.subr.bf16.mxu0 %v4423_v44 }
 0x5ff   :  { %3714 = vmatmul.mubr.msk.f32.gmra.mrb[50].mxu0 %vm937_vm8, %v1175_v2  ;;  %3767 = vmatmul.mubr.msk.f32.gmra.mrb[40].mxu1 %vm937_vm8, %v1175_v2 }
 0x600   :  { %3716 = vmatprep.mubr.msk.f32.mxu0 %vm4422_vm1, %v4421_v19  ;;  %3769 = vmatprep.mubr.msk.f32.mxu1 %vm4422_vm1, %v4421_v19 }
 0x603   :  { %3717 = vmatmul.mubr.msk.f32.gmra.mrb[52].mxu0 %vm937_vm8, %v1176_v3  ;;  %3770 = vmatmul.mubr.msk.f32.gmra.mrb[42].mxu1 %vm937_vm8, %v1176_v3 }
 0x604   :  { %3719 = vmatprep.mubr.msk.f32.mxu0 %vm4422_vm1, %v4421_v19  ;;  %3772 = vmatprep.mubr.msk.f32.mxu1 %vm4422_vm1, %v4421_v19 }
 0x607   :  { %3720 = vmatmul.mubr.msk.f32.gmra.mrb[54].mxu0 %vm937_vm8, %v1177_v4  ;;  %3773 = vmatmul.mubr.msk.f32.gmra.mrb[44].mxu1 %vm937_vm8, %v1177_v4 }
 0x608   :  { %3722 = vmatprep.mubr.msk.f32.mxu0 %vm4422_vm1, %v4421_v19  ;;  %3775 = vmatprep.mubr.msk.f32.mxu1 %vm4422_vm1, %v4421_v19 }
 0x60b   :  { %3723 = vmatmul.mubr.msk.f32.gmra.mrb[56].mxu0 %vm937_vm8, %v1178_v5  ;;  %3776 = vmatmul.mubr.msk.f32.gmra.mrb[46].mxu1 %vm937_vm8, %v1178_v5 }
 0x60c   :  { %3725 = vmatprep.mubr.msk.f32.mxu0 %vm4422_vm1, %v4421_v19  ;;  %3778 = vmatprep.mubr.msk.f32.mxu1 %vm4422_vm1, %v4421_v19 }
 0x60f   :  { %3726 = vmatmul.mubr.msk.f32.gmra.mrb[58].mxu0 %vm937_vm8, %v1179_v1  ;;  %3779 = vmatmul.mubr.msk.f32.gmra.mrb[48].mxu1 %vm937_vm8, %v1179_v1 }
 0x610   :  { %3728 = vmatprep.mubr.msk.f32.mxu0 %vm4422_vm1, %v4421_v19  ;;  %3781 = vmatprep.mubr.msk.f32.mxu1 %vm4422_vm1, %v4421_v19 }
 0x613   :  { %3729 = vmatmul.mubr.msk.f32.gmra.mrb[60].mxu0 %vm937_vm8, %v1180_v6  ;;  %3782 = vmatmul.mubr.msk.f32.gmra.mrb[50].mxu1 %vm937_vm8, %v1180_v6 }
 0x614   :  { %3731 = vmatprep.mubr.msk.f32.mxu0 %vm4422_vm1, %v4421_v19  ;;  %3784 = vmatprep.mubr.msk.f32.mxu1 %vm4422_vm1, %v4421_v19 }
 0x617   :  { %3732 = vmatmul.mubr.msk.f32.gmra.mrb[62].mxu0 %vm937_vm8, %v1181_v9  ;;  %3785 = vmatmul.mubr.msk.f32.gmra.mrb[52].mxu1 %vm937_vm8, %v1181_v9 }
 0x618   :  { %3734 = vmatprep.mubr.msk.f32.mxu0 %vm4422_vm1, %v4421_v19  ;;  %3787 = vmatprep.mubr.msk.f32.mxu1 %vm4422_vm1, %v4421_v19 }
 0x61b   :  { %3735 = vmatmul.mubr.msk.f32.gmra.mrb[64].mxu0 %vm937_vm8, %v1182_v14  ;;  %3788 = vmatmul.mubr.msk.f32.gmra.mrb[54].mxu1 %vm937_vm8, %v1182_v14 }
 0x61c   :  { %3737 = vmatprep.mubr.msk.f32.mxu0 %vm4422_vm1, %v4421_v19  ;;  %3790 = vmatprep.mubr.msk.f32.mxu1 %vm4422_vm1, %v4421_v19 }
 0x61f   :  { %3738 = vmatmul.mubr.msk.f32.gmra.mrb[66].mxu0 %vm937_vm8, %v1183_v26  ;;  %3791 = vmatmul.mubr.msk.f32.gmra.mrb[56].mxu1 %vm937_vm8, %v1183_v26 }
 0x620   :  { %3740 = vmatprep.mubr.msk.f32.mxu0 %vm4422_vm1, %v4421_v19  ;;  %3793 = vmatprep.mubr.msk.f32.mxu1 %vm4422_vm1, %v4421_v19 }
 0x623   :  { %3741 = vmatmul.mubr.msk.f32.gmra.mrb[68].mxu0 %vm937_vm8, %v1184_v35  ;;  %3794 = vmatmul.mubr.msk.f32.gmra.mrb[58].mxu1 %vm937_vm8, %v1184_v35 }
 0x624   :  { %3804 = vmatprep.mubr.msk.f32.mxu0 %vm4422_vm1, %v4421_v19  ;;  %3826 = vmatprep.mubr.msk.f32.mxu1 %vm4422_vm1, %v4421_v19 }
 0x6b8   :  { %v1272_v37 = vpop.f32.mrb[42].mxu0  ;;  %v1346_v38 = vpop.f32.mrb[32].mxu1 }
 0x6b9   :  { %v3672_v21 = vpop.f32.mrb[43].mxu0  ;;  %v3689_v39 = vpop.f32.mrb[33].mxu1  ;;  %v1276_v41 = vadd.f32 %v1272_v37, %v1185_v40  ;;  %v1350_v42 = vadd.f32 %v1346_v38, %v1185_v40 }
 0x6bb   :  { %v5268_v43 = vrot.slane %v1276_v41, %v4819_v23  ;;  %v5271_v46 = vrot.slane %v1350_v42, %v4819_v23 }
 0x6c6   :  { %v1462_v47 = vpop.f32.mrb[44].mxu0  ;;  %v1626_v22 = vpop.f32.mrb[34].mxu1 }
 0x6c7   :  { %v1463_v49 = vadd.f32 %v1462_v47, %v5268_v43  ;;  %v1627_v50 = vadd.f32 %v1626_v22, %v5271_v46  ;;  %v3706_v25 = vpop.f32.mrb[45].mxu0  ;;  %v3759_v34 = vpop.f32.mrb[35].mxu1 }
 0x6c9   :  { %4266 = vtanh.f32 %v1463_v49 }
 0x6ca   :  { %4268 = vtanh.f32 %v1627_v50  ;;  %v1467_v45 = vpop.f32.mrb[46].mxu0  ;;  %v1631_v52 = vpop.f32.mrb[36].mxu1 }
 0x6cb   :  { %v1468_v54 = vadd.f32 %v1467_v45, %v5268_v43  ;;  %v1632_v55 = vadd.f32 %v1631_v52, %v5271_v46  ;;  %v3709_v56 = vpop.f32.mrb[47].mxu0  ;;  %v3762_v58 = vpop.f32.mrb[37].mxu1 }
 0x6cd   :  { %4270 = vtanh.f32 %v1468_v54 }
 0x6ce   :  { %4272 = vtanh.f32 %v1632_v55  ;;  %v1472_v62 = vpop.f32.mrb[48].mxu0  ;;  %v1636_v63 = vpop.f32.mrb[38].mxu1 }
 0x6cf   :  { %v1473_v0 = vadd.f32 %v1472_v62, %v5268_v43  ;;  %v1637_v7 = vadd.f32 %v1636_v63, %v5271_v46  ;;  %v3712_v8 = vpop.f32.mrb[49].mxu0  ;;  %v3765_v10 = vpop.f32.mrb[39].mxu1 }
 0x6d1   :  { %4274 = vtanh.f32 %v1473_v0 }
 0x6d2   :  { %4276 = vtanh.f32 %v1637_v7  ;;  %v1477_v11 = vpop.f32.mrb[50].mxu0  ;;  %v1641_v12 = vpop.f32.mrb[40].mxu1 }
 0x6d3   :  { %v4267_v13 = vpop.eup %4266  ;;  %v1478_v15 = vadd.f32 %v1477_v11, %v5268_v43  ;;  %v1642_v16 = vadd.f32 %v1641_v12, %v5271_v46  ;;  %v3715_v18 = vpop.f32.mrb[51].mxu0 }
 0x6d4   :  { %v3768_v24 = vpop.f32.mrb[41].mxu1  ;;  %v4269_v27 = vpop.eup %4268  ;;  %1540 = vst.msk [vmem:[#allocation4] sm:$0xff] %vm1539_vm14, %v4267_v13 }
 0x6d5   :  { %1703 = vst.msk [vmem:[#allocation4 + $0x64] sm:$0xff] %vm1539_vm14, %v4269_v27  ;;  %4278 = vtanh.f32 %v1478_v15 }
 0x6d6   :  { %4280 = vtanh.f32 %v1642_v16  ;;  %v1482_v28 = vpop.f32.mrb[52].mxu0  ;;  %v1646_v29 = vpop.f32.mrb[42].mxu1 }
 0x6d7   :  { %v4271_v30 = vpop.eup %4270  ;;  %v1483_v31 = vadd.f32 %v1482_v28, %v5268_v43  ;;  %v1647_v32 = vadd.f32 %v1646_v29, %v5271_v46  ;;  %v3718_v53 = vpop.f32.mrb[53].mxu0 }
 0x6d8   :  { %v3771_v57 = vpop.f32.mrb[43].mxu1  ;;  %v4273_v60 = vpop.eup %4272  ;;  %1541 = vst.msk [vmem:[#allocation4 + $0x8] sm:$0xff] %vm1539_vm14, %v4271_v30 }
 0x6d9   :  { %1704 = vst.msk [vmem:[#allocation4 + $0x6c] sm:$0xff] %vm1539_vm14, %v4273_v60  ;;  %4282 = vtanh.f32 %v1483_v31 }
 0x6da   :  { %4284 = vtanh.f32 %v1647_v32  ;;  %v1487_v61 = vpop.f32.mrb[54].mxu0  ;;  %v1651_v2 = vpop.f32.mrb[44].mxu1 }
 0x6db   :  { %v4275_v3 = vpop.eup %4274  ;;  %v1488_v4 = vadd.f32 %v1487_v61, %v5268_v43  ;;  %v1652_v5 = vadd.f32 %v1651_v2, %v5271_v46  ;;  %v3721_v1 = vpop.f32.mrb[55].mxu0  ;;  %v5312_v27 = vld [vmem:[#allocation4] sm:$0xff] }
 0x6dc   :  { %v3774_v6 = vpop.f32.mrb[45].mxu1  ;;  %v4277_v9 = vpop.eup %4276  ;;  %1542 = vst.msk [vmem:[#allocation4 + $0x10] sm:$0xff] %vm1539_vm14, %v4275_v3 }
 0x6dd   :  { %1705 = vst.msk [vmem:[#allocation4 + $0x74] sm:$0xff] %vm1539_vm14, %v4277_v9  ;;  %4286 = vtanh.f32 %v1488_v4  ;;  %v1797_v4 = vmul.f32 %v5312_v27, %v5312_v27  ;;  %v1741_v6 = vsel %vm1539_vm14, %v5312_v27, 0.0 }
 0x6de   :  { %4288 = vtanh.f32 %v1652_v5  ;;  %v1492_v14 = vpop.f32.mrb[56].mxu0  ;;  %v1656_v26 = vpop.f32.mrb[46].mxu1 }
 0x6df   :  { %v4279_v35 = vpop.eup %4278  ;;  %v1493_v20 = vadd.f32 %v1492_v14, %v5268_v43  ;;  %v1657_v48 = vadd.f32 %v1656_v26, %v5271_v46  ;;  %v3724_v51 = vpop.f32.mrb[57].mxu0  ;;  %v5307_v12 = vld [vmem:[#allocation4 + $0x8] sm:$0xff] }
 0x6e0   :  { %v3777_v59 = vpop.f32.mrb[47].mxu1  ;;  %v4281_v17 = vpop.eup %4280  ;;  %1543 = vst.msk [vmem:[#allocation4 + $0x18] sm:$0xff] %vm1539_vm14, %v4279_v35  ;;  %v1798_v29 = vmul.f32 %v5307_v12, %v5307_v12  ;;  %v1742_v5 = vsel %vm1539_vm14, %v5307_v12, 0.0 }
 0x6e1   :  { %1706 = vst.msk [vmem:[#allocation4 + $0x7c] sm:$0xff] %vm1539_vm14, %v4281_v17  ;;  %4290 = vtanh.f32 %v1493_v20  ;;  %v1743_v59 = vadd.f32 %v1742_v5, %v1741_v6 }
 0x6e2   :  { %4292 = vtanh.f32 %v1657_v48  ;;  %v1497_v33 = vpop.f32.mrb[58].mxu0  ;;  %v1661_v37 = vpop.f32.mrb[48].mxu1  ;;  %v1823_v14 = vsel %vm1539_vm14, %v1798_v29, 0.0 }
 0x6e3   :  { %v4283_v38 = vpop.eup %4282  ;;  %v1498_v21 = vadd.f32 %v1497_v33, %v5268_v43  ;;  %v1662_v39 = vadd.f32 %v1661_v37, %v5271_v46  ;;  %v3727_v40 = vpop.f32.mrb[59].mxu0  ;;  %v5314_v28 = vld [vmem:[#allocation4 + $0x10] sm:$0xff] }
 0x6e4   :  { %v3780_v41 = vpop.f32.mrb[49].mxu1  ;;  %v4285_v42 = vpop.eup %4284  ;;  %1544 = vst.msk [vmem:[#allocation4 + $0x20] sm:$0xff] %vm1539_vm14, %v4283_v38  ;;  %v1799_v1 = vmul.f32 %v5314_v28, %v5314_v28  ;;  %v1744_v26 = vsel %vm1539_vm14, %v5314_v28, 0.0  ;;  %v1822_v40 = vsel %vm1539_vm14, %v1797_v4, 0.0 }
 0x6e5   :  { %1707 = vst.msk [vmem:[#allocation4 + $0x84] sm:$0xff] %vm1539_vm14, %v4285_v42  ;;  %4294 = vtanh.f32 %v1498_v21 }
 0x6e6   :  { %4296 = vtanh.f32 %v1662_v39  ;;  %v1502_v47 = vpop.f32.mrb[60].mxu0  ;;  %v1666_v22 = vpop.f32.mrb[50].mxu1  ;;  %v1825_v41 = vsel %vm1539_vm14, %v1799_v1, 0.0 }
 0x6e7   :  { %v4287_v49 = vpop.eup %4286  ;;  %v1503_v50 = vadd.f32 %v1502_v47, %v5268_v43  ;;  %v1667_v25 = vadd.f32 %v1666_v22, %v5271_v46  ;;  %v3730_v34 = vpop.f32.mrb[61].mxu0  ;;  %v5319_v53 = vld [vmem:[#allocation4 + $0x18] sm:$0xff]  ;;  %v1824_v22 = vadd.f32 %v1823_v14, %v1822_v40 }
 0x6e8   :  { %v3783_v45 = vpop.f32.mrb[51].mxu1  ;;  %v4289_v52 = vpop.eup %4288  ;;  %1545 = vst.msk [vmem:[#allocation4 + $0x28] sm:$0xff] %vm1539_vm14, %v4287_v49  ;;  %v1800_v35 = vmul.f32 %v5319_v53, %v5319_v53  ;;  %v1746_v42 = vsel %vm1539_vm14, %v5319_v53, 0.0  ;;  %v1745_v49 = vadd.f32 %v1744_v26, %v1743_v59 }
 0x6e9   :  { %1708 = vst.msk [vmem:[#allocation4 + $0x8c] sm:$0xff] %vm1539_vm14, %v4289_v52  ;;  %4298 = vtanh.f32 %v1503_v50  ;;  %v1826_v45 = vadd.f32 %v1825_v41, %v1824_v22  ;;  %v5406_v41 = vld [vmem:[#allocation4 + $0x68] sm:$0xff] }
 0x6ea   :  { %4300 = vtanh.f32 %v1667_v25  ;;  %v1507_v54 = vpop.f32.mrb[62].mxu0  ;;  %v1671_v55 = vpop.f32.mrb[52].mxu1  ;;  %v1747_v52 = vadd.f32 %v1746_v42, %v1745_v49  ;;  %v5409_v49 = vld [vmem:[#allocation4 + $0x70] sm:$0xff] }
 0x6eb   :  { %v4291_v56 = vpop.eup %4290  ;;  %v1508_v58 = vadd.f32 %v1507_v54, %v5268_v43  ;;  %v1672_v62 = vadd.f32 %v1671_v55, %v5271_v46  ;;  %v3733_v63 = vpop.f32.mrb[63].mxu0  ;;  %v5332_v9 = vld [vmem:[#allocation4 + $0x20] sm:$0xff] }
 0x6ec   :  { %v3786_v0 = vpop.f32.mrb[53].mxu1  ;;  %v4293_v7 = vpop.eup %4292  ;;  %1546 = vst.msk [vmem:[#allocation4 + $0x30] sm:$0xff] %vm1539_vm14, %v4291_v56  ;;  %v1801_v47 = vmul.f32 %v5332_v9, %v5332_v9  ;;  %v1748_v50 = vsel %vm1539_vm14, %v5332_v9, 0.0 }
 0x6ed   :  { %1709 = vst.msk [vmem:[#allocation4 + $0x94] sm:$0xff] %vm1539_vm14, %v4293_v7  ;;  %4302 = vtanh.f32 %v1508_v58  ;;  %v1749_v0 = vadd.f32 %v1748_v50, %v1747_v52 }
 0x6ee   :  { %4304 = vtanh.f32 %v1672_v62  ;;  %v1512_v8 = vpop.f32.mrb[64].mxu0  ;;  %v1676_v10 = vpop.f32.mrb[54].mxu1  ;;  %v1829_v56 = vsel %vm1539_vm14, %v1801_v47, 0.0 }
 0x6ef   :  { %v4295_v11 = vpop.eup %4294  ;;  %v1513_v13 = vadd.f32 %v1512_v8, %v5268_v43  ;;  %v1677_v15 = vadd.f32 %v1676_v10, %v5271_v46  ;;  %v3736_v16 = vpop.f32.mrb[65].mxu0  ;;  %v5340_v17 = vld [vmem:[#allocation4 + $0x28] sm:$0xff] }
 0x6f0   :  { %v3789_v18 = vpop.f32.mrb[55].mxu1  ;;  %v4297_v24 = vpop.eup %4296  ;;  %1547 = vst.msk [vmem:[#allocation4 + $0x38] sm:$0xff] %vm1539_vm14, %v4295_v11  ;;  %v1802_v25 = vmul.f32 %v5340_v17, %v5340_v17  ;;  %v1750_v58 = vsel %vm1539_vm14, %v5340_v17, 0.0 }
 0x6f1   :  { %1710 = vst.msk [vmem:[#allocation4 + $0x9c] sm:$0xff] %vm1539_vm14, %v4297_v24  ;;  %4306 = vtanh.f32 %v1513_v13  ;;  %v1751_v16 = vadd.f32 %v1750_v58, %v1749_v0 }
 0x6f2   :  { %4308 = vtanh.f32 %v1677_v15  ;;  %v1517_v30 = vpop.f32.mrb[66].mxu0  ;;  %v1681_v31 = vpop.f32.mrb[56].mxu1  ;;  %v1831_v8 = vsel %vm1539_vm14, %v1802_v25, 0.0 }
 0x6f3   :  { %v4299_v32 = vpop.eup %4298  ;;  %v1518_v57 = vadd.f32 %v1517_v30, %v5268_v43  ;;  %v1682_v60 = vadd.f32 %v1681_v31, %v5271_v46  ;;  %v3739_v61 = vpop.f32.mrb[67].mxu0 }
 0x6f4   :  { %v3792_v2 = vpop.f32.mrb[57].mxu1  ;;  %v4301_v3 = vpop.eup %4300  ;;  %1548 = vst.msk [vmem:[#allocation4 + $0x40] sm:$0xff] %vm1539_vm14, %v4299_v32 }
 0x6f5   :  { %1711 = vst.msk [vmem:[#allocation4 + $0xa4] sm:$0xff] %vm1539_vm14, %v4301_v3  ;;  %4310 = vtanh.f32 %v1518_v57 }
 0x6f6   :  { %4312 = vtanh.f32 %v1682_v60  ;;  %v1522_v20 = vpop.f32.mrb[68].mxu0  ;;  %v1686_v48 = vpop.f32.mrb[58].mxu1 }
 0x6f7   :  { %v4303_v51 = vpop.eup %4302  ;;  %v1523_v33 = vadd.f32 %v1522_v20, %v5268_v43  ;;  %v1687_v37 = vadd.f32 %v1686_v48, %v5271_v46  ;;  %v3742_v38 = vpop.f32.mrb[69].mxu0  ;;  %v5351_v43 = vld [vmem:[#allocation4 + $0x30] sm:$0xff]  ;;  %v1827_v46 = vsel %vm1539_vm14, %v1800_v35, 0.0  ;;  %v5359_v54 = vld [vmem:[#allocation4 + $0x38] sm:$0xff] }
 0x6f8   :  { %v3795_v21 = vpop.f32.mrb[59].mxu1  ;;  %v4305_v39 = vpop.eup %4304  ;;  %1549 = vst.msk [vmem:[#allocation4 + $0x48] sm:$0xff] %vm1539_vm14, %v4303_v51  ;;  %v1803_v62 = vmul.f32 %v5351_v43, %v5351_v43  ;;  %v1828_v63 = vadd.f32 %v1827_v46, %v1826_v45  ;;  %v1752_v10 = vsel %vm1539_vm14, %v5351_v43, 0.0  ;;  %v1804_v11 = vmul.f32 %v5359_v54, %v5359_v54 }
 0x6f9   :  { %1712 = vst.msk [vmem:[#allocation4 + $0xac] sm:$0xff] %vm1539_vm14, %v4305_v39  ;;  %4314 = vtanh.f32 %v1523_v33  ;;  %v1754_v30 = vsel %vm1539_vm14, %v5359_v54, 0.0  ;;  %v1753_v57 = vadd.f32 %v1752_v10, %v1751_v16 }
 0x6fa   :  { %4316 = vtanh.f32 %v1687_v37  ;;  %v1830_v15 = vadd.f32 %v1829_v56, %v1828_v63  ;;  %v1833_v29 = vsel %vm1539_vm14, %v1803_v62, 0.0  ;;  %v1835_v60 = vsel %vm1539_vm14, %v1804_v11, 0.0 }
 0x6fb   :  { %v4307_v34 = vpop.eup %4306  ;;  %v5367_v7 = vld [vmem:[#allocation4 + $0x40] sm:$0xff]  ;;  %v1755_v5 = vadd.f32 %v1754_v30, %v1753_v57  ;;  %v1766_v62 = vsel %vm1539_vm14, %v5406_v41, 0.0  ;;  %v1811_v63 = vmul.f32 %v5409_v49, %v5409_v49 }
 0x6fc   :  { %v4309_v55 = vpop.eup %4308  ;;  %1550 = vst.msk [vmem:[#allocation4 + $0x50] sm:$0xff] %vm1539_vm14, %v4307_v34  ;;  %v1805_v31 = vmul.f32 %v5367_v7, %v5367_v7  ;;  %v1832_v32 = vadd.f32 %v1831_v8, %v1830_v15  ;;  %v1756_v61 = vsel %vm1539_vm14, %v5367_v7, 0.0  ;;  %v1810_v34 = vmul.f32 %v5406_v41, %v5406_v41  ;;  %v5426_v8 = vld [vmem:[#allocation4 + $0x80] sm:$0xff] }
 0x6fd   :  { %1713 = vst.msk [vmem:[#allocation4 + $0xb4] sm:$0xff] %vm1539_vm14, %v4309_v55  ;;  %v1757_v48 = vadd.f32 %v1756_v61, %v1755_v5  ;;  %v5419_v55 = vld [vmem:[#allocation4 + $0x78] sm:$0xff]  ;;  %v1768_v15 = vsel %vm1539_vm14, %v5409_v49, 0.0  ;;  %v1813_v57 = vmul.f32 %v5426_v8, %v5426_v8  ;;  %v5440_v61 = vld [vmem:[#allocation4 + $0x90] sm:$0xff]  ;;  %v1772_v5 = vsel %vm1539_vm14, %v5426_v8, 0.0 }
 0x6fe   :  { %v1834_v4 = vadd.f32 %v1833_v29, %v1832_v32  ;;  %v1837_v14 = vsel %vm1539_vm14, %v1805_v31, 0.0  ;;  %v1812_v16 = vmul.f32 %v5419_v55, %v5419_v55  ;;  %v1849_v31 = vsel %vm1539_vm14, %v1811_v63, 0.0 }
 0x6ff   :  { %v4311_v13 = vpop.eup %4310  ;;  %v5375_v18 = vld [vmem:[#allocation4 + $0x48] sm:$0xff]  ;;  %v1770_v32 = vsel %vm1539_vm14, %v5419_v55, 0.0 }
 0x700   :  { %v4313_v24 = vpop.eup %4312  ;;  %1551 = vst.msk [vmem:[#allocation4 + $0x58] sm:$0xff] %vm1539_vm14, %v4311_v13  ;;  %v1806_v2 = vmul.f32 %v5375_v18, %v5375_v18  ;;  %v1758_v26 = vsel %vm1539_vm14, %v5375_v18, 0.0  ;;  %v1836_v20 = vadd.f32 %v1835_v60, %v1834_v4  ;;  %v1847_v13 = vsel %vm1539_vm14, %v1810_v34, 0.0 }
 0x701   :  { %1714 = vst.msk [vmem:[#allocation4 + $0xbc] sm:$0xff] %vm1539_vm14, %v4313_v24  ;;  %v1759_v37 = vadd.f32 %v1758_v26, %v1757_v48  ;;  %v5433_v24 = vld [vmem:[#allocation4 + $0x88] sm:$0xff]  ;;  %v1815_v48 = vmul.f32 %v5440_v61, %v5440_v61 }
 0x702   :  { %v1839_v51 = vsel %vm1539_vm14, %v1806_v2, 0.0  ;;  %v1838_v33 = vadd.f32 %v1837_v14, %v1836_v20  ;;  %v1814_v4 = vmul.f32 %v5433_v24, %v5433_v24  ;;  %v1774_v20 = vsel %vm1539_vm14, %v5433_v24, 0.0 }
 0x703   :  { %v4315_v3 = vpop.eup %4314  ;;  %v5389_v1 = vld [vmem:[#allocation4 + $0x50] sm:$0xff] }
 0x704   :  { %v4317_v6 = vpop.eup %4316  ;;  %v1807_v35 = vmul.f32 %v5389_v1, %v5389_v1  ;;  %1553 = vst.msk [vmem:[#allocation4 + $0x60] sm:$0xf] %vm1552_vm15, %v4315_v3  ;;  %v1760_v59 = vsel %vm1539_vm14, %v5389_v1, 0.0  ;;  %v1840_v42 = vadd.f32 %v1839_v51, %v1838_v33  ;;  %v1851_v3 = vsel %vm1539_vm14, %v1812_v16, 0.0  ;;  %v5454_v51 = vld [vmem:[#allocation4 + $0xa0] sm:$0xff]  ;;  %v5468_v34 = vld [vmem:[#allocation4 + $0xb0] sm:$0xff] }
 0x705   :  { %1715 = vst.msk [vmem:[#allocation4 + $0xc4] sm:$0xf] %vm1552_vm15, %v4317_v6  ;;  %v1761_v47 = vadd.f32 %v1760_v59, %v1759_v37  ;;  %v5447_v6 = vld [vmem:[#allocation4 + $0x98] sm:$0xff]  ;;  %v1855_v37 = vsel %vm1539_vm14, %v1814_v4, 0.0 }
 0x706   :  { %v1841_v21 = vsel %vm1539_vm14, %v1807_v35, 0.0  ;;  %v1853_v35 = vsel %vm1539_vm14, %v1813_v57, 0.0 }
 0x707   :  { %v5399_v38 = vld [vmem:[#allocation4 + $0x58] sm:$0xff]  ;;  %v1842_v46 = vadd.f32 %v1841_v21, %v1840_v42  ;;  %v1776_v21 = vsel %vm1539_vm14, %v5440_v61, 0.0 }
 0x708   :  { %v1762_v39 = vsel %vm1539_vm14, %v5399_v38, 0.0  ;;  %v1808_v40 = vmul.f32 %v5399_v38, %v5399_v38  ;;  %v5475_v63 = vld [vmem:[#allocation4 + $0xb8] sm:$0xff] }
 0x709   :  { %v1763_v50 = vadd.f32 %v1762_v39, %v1761_v47  ;;  %v1816_v39 = vmul.f32 %v5447_v6, %v5447_v6 }
 0x70a   :  { %v1843_v22 = vsel %vm1539_vm14, %v1808_v40, 0.0  ;;  %v5461_v40 = vld [vmem:[#allocation4 + $0xa8] sm:$0xff] }
 0x70b   :  { %v5411_v25 = vld [vmem:[#allocation4 + $0x60] sm:$0xff]  ;;  %v1844_v56 = vadd.f32 %v1843_v22, %v1842_v46  ;;  %v1778_v22 = vsel %vm1539_vm14, %v5447_v6, 0.0  ;;  %v1817_v46 = vmul.f32 %v5454_v51, %v5454_v51 }
 0x70c   :  { %v1764_v45 = vsel %vm1539_vm14, %v5411_v25, 0.0  ;;  %v1809_v52 = vmul.f32 %v5411_v25, %v5411_v25  ;;  %v5482_v16 = vld [vmem:[#allocation4 + $0xc0] sm:$0xff] }
 0x70d   :  { %v1765_v58 = vadd.f32 %v1764_v45, %v1763_v50  ;;  %v1857_v50 = vsel %vm1539_vm14, %v1815_v48, 0.0  ;;  %v1821_v4 = vmul.f32 %v5482_v16, %v5482_v16 }
 0x70e   :  { %v1845_v0 = vsel %vm1539_vm14, %v1809_v52, 0.0 }
 0x70f   :  { %v1767_v10 = vadd.f32 %v1766_v62, %v1765_v58  ;;  %v1846_v11 = vadd.f32 %v1845_v0, %v1844_v56  ;;  %v1780_v56 = vsel %vm1539_vm14, %v5454_v51, 0.0  ;;  %v1818_v58 = vmul.f32 %v5461_v40, %v5461_v40 }
 0x710   :  { %v1859_v62 = vsel %vm1539_vm14, %v1816_v39, 0.0 }
 0x711   :  { %v1848_v29 = vadd.f32 %v1847_v13, %v1846_v11  ;;  %v1769_v30 = vadd.f32 %v1768_v15, %v1767_v10  ;;  %v1782_v11 = vsel %vm1539_vm14, %v5461_v40, 0.0  ;;  %v1819_v13 = vmul.f32 %v5468_v34, %v5468_v34 }
 0x712   :  { %v1861_v15 = vsel %vm1539_vm14, %v1817_v46, 0.0  ;;  %v1863_v57 = vsel %vm1539_vm14, %v1818_v58, 0.0 }
 0x713   :  { %v1850_v60 = vadd.f32 %v1849_v31, %v1848_v29  ;;  %v1771_v2 = vadd.f32 %v1770_v32, %v1769_v30  ;;  %v1784_v31 = vsel %vm1539_vm14, %v5468_v34, 0.0  ;;  %v1820_v32 = vmul.f32 %v5475_v63, %v5475_v63 }
 0x715   :  { %v1773_v14 = vadd.f32 %v1772_v5, %v1771_v2  ;;  %v1852_v26 = vadd.f32 %v1851_v3, %v1850_v60  ;;  %v1786_v3 = vsel %vm1539_vm14, %v5475_v63, 0.0  ;;  %v1865_v5 = vsel %vm1539_vm14, %v1819_v13, 0.0 }
 0x717   :  { %v1775_v59 = vadd.f32 %v1774_v20, %v1773_v14  ;;  %v1854_v33 = vadd.f32 %v1853_v35, %v1852_v26  ;;  %v1788_v35 = vsel %vm1539_vm14, %v5482_v16, 0.0  ;;  %v1867_v20 = vsel %vm1539_vm14, %v1820_v32, 0.0  ;;  %v1923_v32 = vld [vmem:[%s5940_s21] sm:$0xff] }
 0x719   :  { %v1777_v42 = vadd.f32 %v1776_v21, %v1775_v59  ;;  %v1856_v47 = vadd.f32 %v1855_v37, %v1854_v33  ;;  %v1869_v33 = vsel %vm1539_vm14, %v1821_v4, 0.0 }
 0x71b   :  { %v1779_v45 = vadd.f32 %v1778_v22, %v1777_v42  ;;  %v1858_v52 = vadd.f32 %v1857_v50, %v1856_v47 }
 0x71d   :  { %v1781_v0 = vadd.f32 %v1780_v56, %v1779_v45  ;;  %v1860_v10 = vadd.f32 %v1859_v62, %v1858_v52 }
 0x71f   :  { %v1783_v29 = vadd.f32 %v1782_v11, %v1781_v0  ;;  %v1862_v30 = vadd.f32 %v1861_v15, %v1860_v10 }
 0x721   :  { %v1785_v60 = vadd.f32 %v1784_v31, %v1783_v29  ;;  %v1864_v2 = vadd.f32 %v1863_v57, %v1862_v30  ;;  %v1880_v29 = vld [vmem:[%s5939_s18] sm:$0x1]  ;;  %v1924_v57 = vld [vmem:[%s5940_s21 + $0x8] sm:$0xff] }
 0x722   :  { %v4103_v4 = vpack.c.bf16 %v1924_v57, %v1923_v32 }
 0x723   :  { %v1787_v14 = vadd.f32 %v1786_v3, %v1785_v60  ;;  %v1866_v26 = vadd.f32 %v1865_v5, %v1864_v2  ;;  %v1884_v60 = vld [vmem:[%s5941_s19] sm:$0x1] }
 0x725   :  { %v1789_v48 = vadd.f32 %v1788_v35, %v1787_v14  ;;  %v1868_v59 = vadd.f32 %v1867_v20, %v1866_v26  ;;  %v1925_v26 = vld [vmem:[%s5940_s21 + $0x10] sm:$0xff]  ;;  %v1926_v35 = vld [vmem:[%s5940_s21 + $0x18] sm:$0x1] }
 0x726   :  { %v4106_v20 = vpack.c.bf16 %v1926_v35, %v1925_v26  ;;  %v5753_v26 = vld [vmem:[%s5943_s23] sm:$0x7] }
 0x727   :  { %v1790_v37 = vrot.slane %v1789_v48, 4  ;;  %v1870_v21 = vadd.f32 %v1869_v33, %v1868_v59 }
 0x729   :  { %v1791_v39 = vadd.f32 %v1790_v37, %v1789_v48  ;;  %v1871_v42 = vrot.slane %v1870_v21, 4 }
 0x72b   :  { %v1792_v47 = vrot.slane %v1791_v39, 2  ;;  %v1872_v22 = vadd.f32 %v1871_v42, %v1870_v21 }
 0x72d   :  { %v1793_v46 = vadd.f32 %v1792_v47, %v1791_v39  ;;  %v1873_v50 = vrot.slane %v1872_v22, 2 }
 0x72f   :  { %v1794_v45 = vrot.slane %v1793_v46, 1  ;;  %v1874_v52 = vadd.f32 %v1873_v50, %v1872_v22 }
 0x731   :  { %v1795_v56 = vadd.f32 %v1794_v45, %v1793_v46  ;;  %v1875_v58 = vrot.slane %v1874_v52, 1 }
 0x733   :  { %v1796_v62 = vmul.f32 0.005, %v1795_v56  ;;  %v1876_v0 = vadd.f32 %v1875_v58, %v1874_v52 }
 0x735   :  { %v1877_v10 = vmul.f32 0.005, %v1876_v0  ;;  %v1878_v11 = vmul.f32 %v1796_v62, %v1796_v62 }
 0x737   :  { %v1879_v13 = vsub.f32 %v1877_v10, %v1878_v11 }
 0x739   :  { %v1881_v15 = vadd.f32 1e-05, %v1879_v13 }
 0x73b   :  { %4318 = vrsqrt.f32 %v1881_v15 }
 0x745   :  { %v4319_v30 = vpop.eup %4318 }
 0x746   :  { %v1883_v31 = vmul.f32 %v4319_v30, %v1880_v29 }
 0x748   :  { %v1885_v2 = vmul.f32 %v1883_v31, %v1796_v62  ;;  %v5511_v3 = vrot.slane %v1883_v31, %v4819_v23 }
 0x74a   :  { %v1886_v5 = vsub.f32 %v1884_v60, %v1885_v2  ;;  %v1893_v14 = vmul.f32 %v5511_v3, %v5312_v27  ;;  %v1894_v27 = vmul.f32 %v5511_v3, %v5307_v12  ;;  %v1895_v48 = vmul.f32 %v5511_v3, %v5314_v28 }
 0x74b   :  { %v1896_v12 = vmul.f32 %v5511_v3, %v5319_v53  ;;  %v1897_v28 = vmul.f32 %v5511_v3, %v5332_v9  ;;  %v1898_v36 = vmul.f32 %v5511_v3, %v5340_v17  ;;  %v1899_v53 = vmul.f32 %v5511_v3, %v5351_v43 }
 0x74c   :  { %3805 = vmatmul.mubr.msk.f32.vlgmr.msra.gmra.mrb[70].mxu0 %vm1539_vm14, %v1886_v5  ;;  %3827 = vmatmul.mubr.msk.f32.vlgmr.msra.gmra.mrb[60].mxu1 %vm1539_vm14, %v1893_v14  ;;  %v1900_v9 = vmul.f32 %v5511_v3, %v5359_v54  ;;  %v1901_v17 = vmul.f32 %v5511_v3, %v5367_v7  ;;  %v1902_v43 = vmul.f32 %v5511_v3, %v5375_v18 }
 0x74d   :  { %4104 = vmatpush3.bf16.msra.mxu0 %v4103_v4  ;;  %3829 = vmatprep.mubr.msk.f32.mxu1 %vm4422_vm1, %v4421_v19  ;;  %v1903_v54 = vmul.f32 %v5511_v3, %v5389_v1  ;;  %v1904_v7 = vmul.f32 %v5511_v3, %v5399_v38  ;;  %v1905_v18 = vmul.f32 %v5511_v3, %v5411_v25 }
 0x74e   :  { %4105 = vmatprep.subr.bf16.mxu0 %v4423_v44  ;;  %3815 = vmatprep.mubr.msk.f32.mxu0 %vm4422_vm1, %v4421_v19  ;;  %v1906_v1 = vmul.f32 %v5511_v3, %v5406_v41  ;;  %v1907_v38 = vmul.f32 %v5511_v3, %v5409_v49  ;;  %v1908_v41 = vmul.f32 %v5511_v3, %v5419_v55 }
 0x74f   :  { %v1909_v49 = vmul.f32 %v5511_v3, %v5426_v8  ;;  %v1910_v25 = vmul.f32 %v5511_v3, %v5433_v24  ;;  %v1911_v55 = vmul.f32 %v5511_v3, %v5440_v61  ;;  %v1912_v8 = vmul.f32 %v5511_v3, %v5447_v6 }
 0x750   :  { %3830 = vmatmul.mubr.msk.f32.gmra.mrb[62].mxu1 %vm1539_vm14, %v1894_v27  ;;  %v1913_v24 = vmul.f32 %v5511_v3, %v5454_v51  ;;  %v1914_v61 = vmul.f32 %v5511_v3, %v5461_v40  ;;  %v1915_v6 = vmul.f32 %v5511_v3, %v5468_v34  ;;  %v1916_v51 = vmul.f32 %v5511_v3, %v5475_v63  ;;  %v1918_v34 = vld [vmem:[%s5942_s22] sm:$0x1] }
 0x751   :  { %4108 = vmatpush3.bf16.msk.msra.mxu0 %vm5254_vm13, %v4106_v20  ;;  %3832 = vmatprep.mubr.msk.f32.mxu1 %vm4422_vm1, %v4421_v19  ;;  %v1917_v40 = vmul.f32 %v5511_v3, %v5482_v16 }
 0x752   :  { %4116 = vmatprep.subr.bf16.mxu0 %v4423_v44 }
 0x754   :  { %3816 = vmatmul.mubr.msk.f32.vlgmr.msra.gmra.mrb[72].mxu0 %vm1539_vm14, %v1886_v5  ;;  %3833 = vmatmul.mubr.msk.f32.gmra.mrb[64].mxu1 %vm1539_vm14, %v1895_v48 }
 0x755   :  { %4118 = vmatpush3.bf16.msra.mxu0 %v4103_v4  ;;  %3835 = vmatprep.mubr.msk.f32.mxu1 %vm4422_vm1, %v4421_v19 }
 0x756   :  { %4119 = vmatprep.subr.bf16.mxu0 %v4423_v44  ;;  %3909 = vmatprep.mubr.msk.f32.mxu0 %vm4422_vm1, %v4421_v19 }
 0x758   :  { %3836 = vmatmul.mubr.msk.f32.gmra.mrb[66].mxu1 %vm1539_vm14, %v1896_v12 }
 0x759   :  { %4122 = vmatpush3.bf16.msk.msra.mxu0 %vm5254_vm13, %v4106_v20  ;;  %3838 = vmatprep.mubr.msk.f32.mxu1 %vm4422_vm1, %v4421_v19 }
 0x75a   :  { %4171 = vmatprep.subr.bf16.mxu0 %v4423_v44 }
 0x75c   :  { %3910 = vmatmul.mubr.msk.f32.vlgmr.msra.gmra.mrb[74].mxu0 %vm1539_vm14, %v1893_v14  ;;  %3839 = vmatmul.mubr.msk.f32.gmra.mrb[68].mxu1 %vm1539_vm14, %v1897_v28 }
 0x75d   :  { %3912 = vmatprep.mubr.msk.f32.mxu0 %vm4422_vm1, %v4421_v19  ;;  %3841 = vmatprep.mubr.msk.f32.mxu1 %vm4422_vm1, %v4421_v19 }
 0x760   :  { %3913 = vmatmul.mubr.msk.f32.gmra.mrb[76].mxu0 %vm1539_vm14, %v1894_v27  ;;  %3842 = vmatmul.mubr.msk.f32.gmra.mrb[70].mxu1 %vm1539_vm14, %v1898_v36 }
 0x761   :  { %3915 = vmatprep.mubr.msk.f32.mxu0 %vm4422_vm1, %v4421_v19  ;;  %3844 = vmatprep.mubr.msk.f32.mxu1 %vm4422_vm1, %v4421_v19 }
 0x764   :  { %3916 = vmatmul.mubr.msk.f32.gmra.mrb[78].mxu0 %vm1539_vm14, %v1895_v48  ;;  %3845 = vmatmul.mubr.msk.f32.gmra.mrb[72].mxu1 %vm1539_vm14, %v1899_v53 }
 0x765   :  { %3918 = vmatprep.mubr.msk.f32.mxu0 %vm4422_vm1, %v4421_v19  ;;  %3847 = vmatprep.mubr.msk.f32.mxu1 %vm4422_vm1, %v4421_v19 }
 0x768   :  { %3919 = vmatmul.mubr.msk.f32.gmra.mrb[80].mxu0 %vm1539_vm14, %v1896_v12  ;;  %3848 = vmatmul.mubr.msk.f32.gmra.mrb[74].mxu1 %vm1539_vm14, %v1900_v9 }
 0x769   :  { %3921 = vmatprep.mubr.msk.f32.mxu0 %vm4422_vm1, %v4421_v19  ;;  %3850 = vmatprep.mubr.msk.f32.mxu1 %vm4422_vm1, %v4421_v19 }
 0x76c   :  { %3922 = vmatmul.mubr.msk.f32.gmra.mrb[82].mxu0 %vm1539_vm14, %v1897_v28  ;;  %3851 = vmatmul.mubr.msk.f32.gmra.mrb[76].mxu1 %vm1539_vm14, %v1901_v17 }
 0x76d   :  { %3924 = vmatprep.mubr.msk.f32.mxu0 %vm4422_vm1, %v4421_v19  ;;  %3853 = vmatprep.mubr.msk.f32.mxu1 %vm4422_vm1, %v4421_v19 }
 0x770   :  { %3925 = vmatmul.mubr.msk.f32.gmra.mrb[84].mxu0 %vm1539_vm14, %v1898_v36  ;;  %3854 = vmatmul.mubr.msk.f32.gmra.mrb[78].mxu1 %vm1539_vm14, %v1902_v43 }
 0x771   :  { %3927 = vmatprep.mubr.msk.f32.mxu0 %vm4422_vm1, %v4421_v19  ;;  %3856 = vmatprep.mubr.msk.f32.mxu1 %vm4422_vm1, %v4421_v19 }
 0x774   :  { %3928 = vmatmul.mubr.msk.f32.gmra.mrb[86].mxu0 %vm1539_vm14, %v1899_v53  ;;  %3857 = vmatmul.mubr.msk.f32.gmra.mrb[80].mxu1 %vm1539_vm14, %v1903_v54 }
 0x775   :  { %3930 = vmatprep.mubr.msk.f32.mxu0 %vm4422_vm1, %v4421_v19  ;;  %3859 = vmatprep.mubr.msk.f32.mxu1 %vm4422_vm1, %v4421_v19 }
 0x778   :  { %3931 = vmatmul.mubr.msk.f32.gmra.mrb[88].mxu0 %vm1539_vm14, %v1900_v9  ;;  %3860 = vmatmul.mubr.msk.f32.gmra.mrb[82].mxu1 %vm1539_vm14, %v1904_v7 }
 0x779   :  { %3933 = vmatprep.mubr.msk.f32.mxu0 %vm4422_vm1, %v4421_v19  ;;  %3862 = vmatprep.mubr.msk.f32.mxu1 %vm4422_vm1, %v4421_v19 }
 0x77c   :  { %3934 = vmatmul.mubr.msk.f32.gmra.mrb[90].mxu0 %vm1539_vm14, %v1901_v17  ;;  %3863 = vmatmul.mubr.msk.f32.gmra.mrb[84].mxu1 %vm1539_vm14, %v1905_v18 }
 0x77d   :  { %3936 = vmatprep.mubr.msk.f32.mxu0 %vm4422_vm1, %v4421_v19  ;;  %3865 = vmatprep.mubr.msk.f32.mxu1 %vm4422_vm1, %v4421_v19 }
 0x780   :  { %3937 = vmatmul.mubr.msk.f32.gmra.mrb[92].mxu0 %vm1539_vm14, %v1902_v43  ;;  %3866 = vmatmul.mubr.msk.f32.gmra.mrb[86].mxu1 %vm1539_vm14, %v1906_v1 }
 0x781   :  { %3939 = vmatprep.mubr.msk.f32.mxu0 %vm4422_vm1, %v4421_v19  ;;  %3868 = vmatprep.mubr.msk.f32.mxu1 %vm4422_vm1, %v4421_v19 }
 0x784   :  { %3940 = vmatmul.mubr.msk.f32.gmra.mrb[94].mxu0 %vm1539_vm14, %v1903_v54  ;;  %3869 = vmatmul.mubr.msk.f32.gmra.mrb[88].mxu1 %vm1539_vm14, %v1907_v38 }
 0x785   :  { %3942 = vmatprep.mubr.msk.f32.mxu0 %vm4422_vm1, %v4421_v19  ;;  %3871 = vmatprep.mubr.msk.f32.mxu1 %vm4422_vm1, %v4421_v19 }
 0x788   :  { %3943 = vmatmul.mubr.msk.f32.gmra.mrb[96].mxu0 %vm1539_vm14, %v1904_v7  ;;  %3872 = vmatmul.mubr.msk.f32.gmra.mrb[90].mxu1 %vm1539_vm14, %v1908_v41 }
 0x789   :  { %3945 = vmatprep.mubr.msk.f32.mxu0 %vm4422_vm1, %v4421_v19  ;;  %3874 = vmatprep.mubr.msk.f32.mxu1 %vm4422_vm1, %v4421_v19 }
 0x78c   :  { %3946 = vmatmul.mubr.msk.f32.gmra.mrb[98].mxu0 %vm1539_vm14, %v1905_v18  ;;  %3875 = vmatmul.mubr.msk.f32.gmra.mrb[92].mxu1 %vm1539_vm14, %v1909_v49 }
 0x78d   :  { %3948 = vmatprep.mubr.msk.f32.mxu0 %vm4422_vm1, %v4421_v19  ;;  %3877 = vmatprep.mubr.msk.f32.mxu1 %vm4422_vm1, %v4421_v19 }
 0x790   :  { %3949 = vmatmul.mubr.msk.f32.gmra.mrb[100].mxu0 %vm1539_vm14, %v1906_v1  ;;  %3878 = vmatmul.mubr.msk.f32.gmra.mrb[94].mxu1 %vm1539_vm14, %v1910_v25 }
 0x791   :  { %3951 = vmatprep.mubr.msk.f32.mxu0 %vm4422_vm1, %v4421_v19  ;;  %3880 = vmatprep.mubr.msk.f32.mxu1 %vm4422_vm1, %v4421_v19 }
 0x794   :  { %3952 = vmatmul.mubr.msk.f32.gmra.mrb[102].mxu0 %vm1539_vm14, %v1907_v38  ;;  %3881 = vmatmul.mubr.msk.f32.gmra.mrb[96].mxu1 %vm1539_vm14, %v1911_v55 }
 0x795   :  { %3954 = vmatprep.mubr.msk.f32.mxu0 %vm4422_vm1, %v4421_v19  ;;  %3883 = vmatprep.mubr.msk.f32.mxu1 %vm4422_vm1, %v4421_v19 }
 0x798   :  { %3955 = vmatmul.mubr.msk.f32.gmra.mrb[104].mxu0 %vm1539_vm14, %v1908_v41  ;;  %3884 = vmatmul.mubr.msk.f32.gmra.mrb[98].mxu1 %vm1539_vm14, %v1912_v8 }
 0x799   :  { %3957 = vmatprep.mubr.msk.f32.mxu0 %vm4422_vm1, %v4421_v19  ;;  %3886 = vmatprep.mubr.msk.f32.mxu1 %vm4422_vm1, %v4421_v19 }
 0x79c   :  { %3958 = vmatmul.mubr.msk.f32.gmra.mrb[106].mxu0 %vm1539_vm14, %v1909_v49  ;;  %3887 = vmatmul.mubr.msk.f32.gmra.mrb[100].mxu1 %vm1539_vm14, %v1913_v24 }
 0x79d   :  { %3960 = vmatprep.mubr.msk.f32.mxu0 %vm4422_vm1, %v4421_v19  ;;  %3889 = vmatprep.mubr.msk.f32.mxu1 %vm4422_vm1, %v4421_v19 }
 0x7a0   :  { %3961 = vmatmul.mubr.msk.f32.gmra.mrb[108].mxu0 %vm1539_vm14, %v1910_v25  ;;  %3890 = vmatmul.mubr.msk.f32.gmra.mrb[102].mxu1 %vm1539_vm14, %v1914_v61 }
 0x7a1   :  { %3963 = vmatprep.mubr.msk.f32.mxu0 %vm4422_vm1, %v4421_v19  ;;  %3892 = vmatprep.mubr.msk.f32.mxu1 %vm4422_vm1, %v4421_v19 }
 0x7a4   :  { %3964 = vmatmul.mubr.msk.f32.gmra.mrb[110].mxu0 %vm1539_vm14, %v1911_v55  ;;  %3893 = vmatmul.mubr.msk.f32.gmra.mrb[104].mxu1 %vm1539_vm14, %v1915_v6 }
 0x7a5   :  { %3966 = vmatprep.mubr.msk.f32.mxu0 %vm4422_vm1, %v4421_v19  ;;  %3895 = vmatprep.mubr.msk.f32.mxu1 %vm4422_vm1, %v4421_v19 }
 0x7a8   :  { %3967 = vmatmul.mubr.msk.f32.gmra.mrb[112].mxu0 %vm1539_vm14, %v1912_v8  ;;  %3896 = vmatmul.mubr.msk.f32.gmra.mrb[106].mxu1 %vm1539_vm14, %v1916_v51 }
 0x7a9   :  { %3969 = vmatprep.mubr.msk.f32.mxu0 %vm4422_vm1, %v4421_v19  ;;  %3898 = vmatprep.mubr.msk.f32.mxu1 %vm4422_vm1, %v4421_v19 }
 0x7ac   :  { %3970 = vmatmul.mubr.msk.f32.gmra.mrb[114].mxu0 %vm1539_vm14, %v1913_v24  ;;  %3899 = vmatmul.mubr.msk.f32.gmra.mrb[108].mxu1 %vm1539_vm14, %v1917_v40 }
 0x7ad   :  { %3972 = vmatprep.mubr.msk.f32.mxu0 %vm4422_vm1, %v4421_v19  ;;  %3437 = vmatprep.mubr.msk.f32.mxu1 %vm2375_vm0, %v5753_v26 }
 0x7b0   :  { %3973 = vmatmul.mubr.msk.f32.gmra.mrb[116].mxu0 %vm1539_vm14, %v1914_v61 }
 0x7b1   :  { %3975 = vmatprep.mubr.msk.f32.mxu0 %vm4422_vm1, %v4421_v19 }
 0x7b4   :  { %3976 = vmatmul.mubr.msk.f32.gmra.mrb[118].mxu0 %vm1539_vm14, %v1915_v6 }
 0x7b5   :  { %3978 = vmatprep.mubr.msk.f32.mxu0 %vm4422_vm1, %v4421_v19 }
 0x7b8   :  { %3979 = vmatmul.mubr.msk.f32.gmra.mrb[120].mxu0 %vm1539_vm14, %v1916_v51 }
 0x7b9   :  { %3981 = vmatprep.mubr.msk.f32.mxu0 %vm4422_vm1, %v4421_v19  ;;  %vm5804_vm1 = vmpackc.low %vm2375_vm0, %vm2375_vm0 }
 0x7bc   :  { %3982 = vmatmul.mubr.msk.f32.gmra.mrb[122].mxu0 %vm1539_vm14, %v1917_v40 }
 0x7bd   :  { %2986 = vmatprep.mubr.f32.mxu0 %v4421_v19 }
 0x81f   :  { %v2000_v63 = vpop.f32.mrb[70].mxu0  ;;  %v2226_v16 = vpop.f32.mrb[60].mxu1 }
 0x820   :  { %v2004_v59 = vadd.f32 %v2000_v63, %v1918_v34  ;;  %v3806_v33 = vpop.f32.mrb[71].mxu0  ;;  %v3828_v37 = vpop.f32.mrb[61].mxu1 }
 0x822   :  { %v5734_v21 = vrot.slane %v2004_v59, %v4819_v23 }
 0x823   :  { %v2231_v39 = vpop.f32.mrb[62].mxu1 }
 0x824   :  { %v2227_v42 = vadd.f32 %v2226_v16, %v5734_v21  ;;  %v2232_v47 = vadd.f32 %v2231_v39, %v5734_v21  ;;  %v3831_v22 = vpop.f32.mrb[63].mxu1 }
 0x826   :  { %4320 = vtanh.f32 %v2227_v42 }
 0x827   :  { %4322 = vtanh.f32 %v2232_v47  ;;  %v2074_v19 = vpop.f32.mrb[72].mxu0  ;;  %v2236_v46 = vpop.f32.mrb[64].mxu1 }
 0x828   :  { %v3817_v50 = vpop.f32.mrb[73].mxu0  ;;  %v2237_v45 = vadd.f32 %v2236_v46, %v5734_v21  ;;  %v3834_v52 = vpop.f32.mrb[65].mxu1  ;;  %v2078_v56 = vadd.f32 %v2074_v19, %v1918_v34 }
 0x82a   :  { %4324 = vtanh.f32 %v2237_v45  ;;  %v5741_v10 = vrot.slane %v2078_v56, %v4819_v23 }
 0x82b   :  { %v2241_v58 = vpop.f32.mrb[66].mxu1 }
 0x82c   :  { %v2242_v62 = vadd.f32 %v2241_v58, %v5734_v21  ;;  %v3837_v0 = vpop.f32.mrb[67].mxu1 }
 0x82e   :  { %4326 = vtanh.f32 %v2242_v62 }
 0x82f   :  { %v2473_v11 = vpop.f32.mrb[74].mxu0  ;;  %v2246_v13 = vpop.f32.mrb[68].mxu1 }
 0x830   :  { %v4321_v15 = vpop.eup %4320  ;;  %v2474_v29 = vadd.f32 %v2473_v11, %v5741_v10  ;;  %v2247_v30 = vadd.f32 %v2246_v13, %v5734_v21  ;;  %v3911_v31 = vpop.f32.mrb[75].mxu0 }
 0x831   :  { %v3840_v32 = vpop.f32.mrb[69].mxu1  ;;  %v4323_v57 = vpop.eup %4322  ;;  %2376 = vst.msk [vmem:[#allocation5] sm:$0xff] %vm2375_vm0, %v4321_v15 }
 0x832   :  { %2377 = vst.msk [vmem:[#allocation5 + $0x8] sm:$0xff] %vm2375_vm0, %v4323_v57  ;;  %4328 = vtanh.f32 %v2474_v29 }
 0x833   :  { %4330 = vtanh.f32 %v2247_v30  ;;  %v2478_v60 = vpop.f32.mrb[76].mxu0  ;;  %v2251_v23 = vpop.f32.mrb[70].mxu1 }
 0x834   :  { %v4325_v2 = vpop.eup %4324  ;;  %v2479_v3 = vadd.f32 %v2478_v60, %v5741_v10  ;;  %v2252_v4 = vadd.f32 %v2251_v23, %v5734_v21  ;;  %v3914_v5 = vpop.f32.mrb[77].mxu0 }
 0x835   :  { %v3843_v14 = vpop.f32.mrb[71].mxu1  ;;  %2378 = vst.msk [vmem:[#allocation5 + $0x10] sm:$0xff] %vm2375_vm0, %v4325_v2 }
 0x836   :  { %4332 = vtanh.f32 %v2479_v3 }
 0x837   :  { %4334 = vtanh.f32 %v2252_v4  ;;  %v2483_v35 = vpop.f32.mrb[78].mxu0  ;;  %v2256_v20 = vpop.f32.mrb[72].mxu1 }
 0x838   :  { %v4327_v27 = vpop.eup %4326  ;;  %v2484_v48 = vadd.f32 %v2483_v35, %v5741_v10  ;;  %v2257_v12 = vadd.f32 %v2256_v20, %v5734_v21  ;;  %v3917_v28 = vpop.f32.mrb[79].mxu0 }
 0x839   :  { %v3846_v36 = vpop.f32.mrb[73].mxu1  ;;  %2379 = vst.msk [vmem:[#allocation5 + $0x18] sm:$0xff] %vm2375_vm0, %v4327_v27 }
 0x83a   :  { %4336 = vtanh.f32 %v2484_v48 }
 0x83b   :  { %4338 = vtanh.f32 %v2257_v12  ;;  %v2488_v53 = vpop.f32.mrb[80].mxu0  ;;  %v2261_v9 = vpop.f32.mrb[74].mxu1 }
 0x83c   :  { %v4329_v17 = vpop.eup %4328  ;;  %v2489_v43 = vadd.f32 %v2488_v53, %v5741_v10  ;;  %v2262_v54 = vadd.f32 %v2261_v9, %v5734_v21  ;;  %v3920_v7 = vpop.f32.mrb[81].mxu0 }
 0x83d   :  { %v3849_v18 = vpop.f32.mrb[75].mxu1  ;;  %v4331_v1 = vpop.eup %4330  ;;  %2622 = vst.msk [vmem:[#allocation5 + $0xc8] sm:$0xff] %vm2375_vm0, %v4329_v17 }
 0x83e   :  { %2380 = vst.msk [vmem:[#allocation5 + $0x20] sm:$0xff] %vm2375_vm0, %v4331_v1  ;;  %4340 = vtanh.f32 %v2489_v43 }
 0x83f   :  { %4342 = vtanh.f32 %v2262_v54  ;;  %v2493_v38 = vpop.f32.mrb[82].mxu0  ;;  %v2266_v41 = vpop.f32.mrb[76].mxu1 }
 0x840   :  { %v4333_v49 = vpop.eup %4332  ;;  %v2494_v25 = vadd.f32 %v2493_v38, %v5741_v10  ;;  %v2267_v55 = vadd.f32 %v2266_v41, %v5734_v21  ;;  %v3923_v8 = vpop.f32.mrb[83].mxu0 }
 0x841   :  { %v3852_v24 = vpop.f32.mrb[77].mxu1  ;;  %v4335_v61 = vpop.eup %4334  ;;  %2623 = vst.msk [vmem:[#allocation5 + $0xd0] sm:$0xff] %vm2375_vm0, %v4333_v49 }
 0x842   :  { %2381 = vst.msk [vmem:[#allocation5 + $0x28] sm:$0xff] %vm2375_vm0, %v4335_v61  ;;  %4344 = vtanh.f32 %v2494_v25 }
 0x843   :  { %4346 = vtanh.f32 %v2267_v55  ;;  %v2498_v6 = vpop.f32.mrb[84].mxu0  ;;  %v2271_v51 = vpop.f32.mrb[78].mxu1 }
 0x844   :  { %v4337_v40 = vpop.eup %4336  ;;  %v2499_v34 = vadd.f32 %v2498_v6, %v5741_v10  ;;  %v2272_v63 = vadd.f32 %v2271_v51, %v5734_v21  ;;  %v3926_v16 = vpop.f32.mrb[85].mxu0 }
 0x845   :  { %v3855_v59 = vpop.f32.mrb[79].mxu1  ;;  %v4339_v33 = vpop.eup %4338  ;;  %2624 = vst.msk [vmem:[#allocation5 + $0xd8] sm:$0xff] %vm2375_vm0, %v4337_v40 }
 0x846   :  { %2382 = vst.msk [vmem:[#allocation5 + $0x30] sm:$0xff] %vm2375_vm0, %v4339_v33  ;;  %4348 = vtanh.f32 %v2499_v34 }
 0x847   :  { %4350 = vtanh.f32 %v2272_v63  ;;  %v2503_v37 = vpop.f32.mrb[86].mxu0  ;;  %v2276_v39 = vpop.f32.mrb[80].mxu1 }
 0x848   :  { %v4341_v42 = vpop.eup %4340  ;;  %v2504_v47 = vadd.f32 %v2503_v37, %v5741_v10  ;;  %v2277_v22 = vadd.f32 %v2276_v39, %v5734_v21  ;;  %v3929_v19 = vpop.f32.mrb[87].mxu0 }
 0x849   :  { %v3858_v46 = vpop.f32.mrb[81].mxu1  ;;  %v4343_v50 = vpop.eup %4342  ;;  %2625 = vst.msk [vmem:[#allocation5 + $0xe0] sm:$0xff] %vm2375_vm0, %v4341_v42 }
 0x84a   :  { %2383 = vst.msk [vmem:[#allocation5 + $0x38] sm:$0xff] %vm2375_vm0, %v4343_v50  ;;  %4352 = vtanh.f32 %v2504_v47 }
 0x84b   :  { %4354 = vtanh.f32 %v2277_v22  ;;  %v2508_v45 = vpop.f32.mrb[88].mxu0  ;;  %v2281_v52 = vpop.f32.mrb[82].mxu1 }
 0x84c   :  { %v4345_v56 = vpop.eup %4344  ;;  %v2509_v58 = vadd.f32 %v2508_v45, %v5741_v10  ;;  %v2282_v62 = vadd.f32 %v2281_v52, %v5734_v21  ;;  %v3932_v0 = vpop.f32.mrb[89].mxu0 }
 0x84d   :  { %v3861_v11 = vpop.f32.mrb[83].mxu1  ;;  %v4347_v13 = vpop.eup %4346  ;;  %2626 = vst.msk [vmem:[#allocation5 + $0xe8] sm:$0xff] %vm2375_vm0, %v4345_v56 }
 0x84e   :  { %2384 = vst.msk [vmem:[#allocation5 + $0x40] sm:$0xff] %vm2375_vm0, %v4347_v13  ;;  %4356 = vtanh.f32 %v2509_v58 }
 0x84f   :  { %4358 = vtanh.f32 %v2282_v62  ;;  %v2513_v15 = vpop.f32.mrb[90].mxu0  ;;  %v2286_v29 = vpop.f32.mrb[84].mxu1 }
 0x850   :  { %v4349_v30 = vpop.eup %4348  ;;  %v2514_v31 = vadd.f32 %v2513_v15, %v5741_v10  ;;  %v2287_v32 = vadd.f32 %v2286_v29, %v5734_v21  ;;  %v3935_v57 = vpop.f32.mrb[91].mxu0 }
 0x851   :  { %v3864_v60 = vpop.f32.mrb[85].mxu1  ;;  %v4351_v23 = vpop.eup %4350  ;;  %2627 = vst.msk [vmem:[#allocation5 + $0xf0] sm:$0xff] %vm2375_vm0, %v4349_v30 }
 0x852   :  { %2385 = vst.msk [vmem:[#allocation5 + $0x48] sm:$0xff] %vm2375_vm0, %v4351_v23  ;;  %4360 = vtanh.f32 %v2514_v31 }
 0x853   :  { %4362 = vtanh.f32 %v2287_v32  ;;  %v2518_v2 = vpop.f32.mrb[92].mxu0  ;;  %v2291_v3 = vpop.f32.mrb[86].mxu1 }
 0x854   :  { %v4353_v4 = vpop.eup %4352  ;;  %v2519_v5 = vadd.f32 %v2518_v2, %v5741_v10  ;;  %v2292_v14 = vadd.f32 %v2291_v3, %v5734_v21  ;;  %v3938_v35 = vpop.f32.mrb[93].mxu0 }
 0x855   :  { %v3867_v20 = vpop.f32.mrb[87].mxu1  ;;  %v4355_v27 = vpop.eup %4354  ;;  %2628 = vst.msk [vmem:[#allocation5 + $0xf8] sm:$0xff] %vm2375_vm0, %v4353_v4 }
 0x856   :  { %2386 = vst.msk [vmem:[#allocation5 + $0x50] sm:$0xff] %vm2375_vm0, %v4355_v27  ;;  %4364 = vtanh.f32 %v2519_v5 }
 0x857   :  { %4366 = vtanh.f32 %v2292_v14  ;;  %v2523_v48 = vpop.f32.mrb[94].mxu0  ;;  %v2296_v12 = vpop.f32.mrb[88].mxu1 }
 0x858   :  { %v4357_v28 = vpop.eup %4356  ;;  %v2524_v36 = vadd.f32 %v2523_v48, %v5741_v10  ;;  %v2297_v53 = vadd.f32 %v2296_v12, %v5734_v21  ;;  %v3941_v9 = vpop.f32.mrb[95].mxu0 }
 0x859   :  { %v3870_v17 = vpop.f32.mrb[89].mxu1  ;;  %v4359_v43 = vpop.eup %4358  ;;  %2629 = vst.msk [vmem:[#allocation5 + $0x100] sm:$0xff] %vm2375_vm0, %v4357_v28 }
 0x85a   :  { %2387 = vst.msk [vmem:[#allocation5 + $0x58] sm:$0xff] %vm2375_vm0, %v4359_v43  ;;  %4368 = vtanh.f32 %v2524_v36 }
 0x85b   :  { %4370 = vtanh.f32 %v2297_v53  ;;  %v2528_v54 = vpop.f32.mrb[96].mxu0  ;;  %v2301_v7 = vpop.f32.mrb[90].mxu1 }
 0x85c   :  { %v4361_v18 = vpop.eup %4360  ;;  %v2529_v1 = vadd.f32 %v2528_v54, %v5741_v10  ;;  %v2302_v38 = vadd.f32 %v2301_v7, %v5734_v21  ;;  %v3944_v41 = vpop.f32.mrb[97].mxu0 }
 0x85d   :  { %v3873_v49 = vpop.f32.mrb[91].mxu1  ;;  %v4363_v25 = vpop.eup %4362  ;;  %2630 = vst.msk [vmem:[#allocation5 + $0x108] sm:$0xff] %vm2375_vm0, %v4361_v18 }
 0x85e   :  { %2388 = vst.msk [vmem:[#allocation5 + $0x60] sm:$0xff] %vm2375_vm0, %v4363_v25  ;;  %4372 = vtanh.f32 %v2529_v1 }
 0x85f   :  { %4374 = vtanh.f32 %v2302_v38  ;;  %v2533_v55 = vpop.f32.mrb[98].mxu0  ;;  %v2306_v8 = vpop.f32.mrb[92].mxu1 }
 0x860   :  { %v4365_v24 = vpop.eup %4364  ;;  %v2534_v61 = vadd.f32 %v2533_v55, %v5741_v10  ;;  %v2307_v6 = vadd.f32 %v2306_v8, %v5734_v21  ;;  %v3947_v51 = vpop.f32.mrb[99].mxu0  ;;  %v2680_v47 = vld [vmem:[#allocation5 + $0x100] sm:$0xff] }
 0x861   :  { %v3876_v40 = vpop.f32.mrb[93].mxu1  ;;  %v4367_v34 = vpop.eup %4366  ;;  %2631 = vst.msk [vmem:[#allocation5 + $0x110] sm:$0xff] %vm2375_vm0, %v4365_v24  ;;  %v2648_v51 = vld [vmem:[#allocation5] sm:$0xff] }
 0x862   :  { %2389 = vst.msk [vmem:[#allocation5 + $0x68] sm:$0xff] %vm2375_vm0, %v4367_v34  ;;  %4376 = vtanh.f32 %v2534_v61  ;;  %v2649_v40 = vld [vmem:[#allocation5 + $0x8] sm:$0xff] }
 0x863   :  { %4378 = vtanh.f32 %v2307_v6  ;;  %v2538_v63 = vpop.f32.mrb[100].mxu0  ;;  %v2311_v16 = vpop.f32.mrb[94].mxu1 }
 0x864   :  { %v4369_v59 = vpop.eup %4368  ;;  %v2539_v33 = vadd.f32 %v2538_v63, %v5741_v10  ;;  %v2312_v37 = vadd.f32 %v2311_v16, %v5734_v21  ;;  %v3950_v39 = vpop.f32.mrb[101].mxu0  ;;  %v2681_v22 = vld [vmem:[#allocation5 + $0x108] sm:$0xff] }
 0x865   :  { %v3879_v42 = vpop.f32.mrb[95].mxu1  ;;  %v4371_v46 = vpop.eup %4370  ;;  %2632 = vst.msk [vmem:[#allocation5 + $0x118] sm:$0xff] %vm2375_vm0, %v4369_v59  ;;  %v4172_v50 = vpack.c.bf16 %v2681_v22, %v2680_v47  ;;  %v4126_v39 = vpack.c.bf16 %v2649_v40, %v2648_v51 }
 0x866   :  { %2390 = vst.msk [vmem:[#allocation5 + $0x70] sm:$0xff] %vm2375_vm0, %v4371_v46  ;;  %4380 = vtanh.f32 %v2539_v33 }
 0x867   :  { %4382 = vtanh.f32 %v2312_v37  ;;  %v2543_v45 = vpop.f32.mrb[102].mxu0  ;;  %4174 = vmatpush1.bf16.xpose.msk.msra.mxu0 %vm5804_vm1, %v4172_v50  ;;  %v2316_v52 = vpop.f32.mrb[96].mxu1 }
 0x868   :  { %v4373_v56 = vpop.eup %4372  ;;  %v2544_v58 = vadd.f32 %v2543_v45, %v5741_v10  ;;  %v2317_v62 = vadd.f32 %v2316_v52, %v5734_v21  ;;  %v3953_v0 = vpop.f32.mrb[103].mxu0  ;;  %4175 = vmatprep.subr.bf16.mxu0 %v4423_v44  ;;  %v2682_v23 = vld [vmem:[#allocation5 + $0x110] sm:$0xff] }
 0x869   :  { %v3882_v11 = vpop.f32.mrb[97].mxu1  ;;  %v4375_v13 = vpop.eup %4374  ;;  %2633 = vst.msk [vmem:[#allocation5 + $0x120] sm:$0xff] %vm2375_vm0, %v4373_v56 }
 0x86a   :  { %2391 = vst.msk [vmem:[#allocation5 + $0x78] sm:$0xff] %vm2375_vm0, %v4375_v13  ;;  %4384 = vtanh.f32 %v2544_v58 }
 0x86b   :  { %4386 = vtanh.f32 %v2317_v62  ;;  %v2548_v15 = vpop.f32.mrb[104].mxu0  ;;  %v2321_v29 = vpop.f32.mrb[98].mxu1 }
 0x86c   :  { %v4377_v30 = vpop.eup %4376  ;;  %v2549_v31 = vadd.f32 %v2548_v15, %v5741_v10  ;;  %v2322_v32 = vadd.f32 %v2321_v29, %v5734_v21  ;;  %v3956_v57 = vpop.f32.mrb[105].mxu0  ;;  %v2683_v2 = vld [vmem:[#allocation5 + $0x118] sm:$0xff] }
 0x86d   :  { %v3885_v60 = vpop.f32.mrb[99].mxu1  ;;  %v4379_v3 = vpop.eup %4378  ;;  %2634 = vst.msk [vmem:[#allocation5 + $0x128] sm:$0xff] %vm2375_vm0, %v4377_v30  ;;  %v4176_v4 = vpack.c.bf16 %v2683_v2, %v2682_v23  ;;  %v2650_v2 = vld [vmem:[#allocation5 + $0x10] sm:$0xff] }
 0x86e   :  { %2392 = vst.msk [vmem:[#allocation5 + $0x80] sm:$0xff] %vm2375_vm0, %v4379_v3  ;;  %4388 = vtanh.f32 %v2549_v31  ;;  %v2651_v31 = vld [vmem:[#allocation5 + $0x18] sm:$0xff] }
 0x86f   :  { %4390 = vtanh.f32 %v2322_v32  ;;  %v2553_v5 = vpop.f32.mrb[106].mxu0  ;;  %4178 = vmatpush1.bf16.xpose.msk.msra.mxu0 %vm5804_vm1, %v4176_v4  ;;  %v2326_v14 = vpop.f32.mrb[100].mxu1  ;;  %v4132_v4 = vpack.c.bf16 %v2651_v31, %v2650_v2  ;;  %v2676_v2 = vld [vmem:[#allocation5 + $0xe0] sm:$0xff] }
 0x870   :  { %v4381_v35 = vpop.eup %4380  ;;  %v2554_v20 = vadd.f32 %v2553_v5, %v5741_v10  ;;  %v2327_v27 = vadd.f32 %v2326_v14, %v5734_v21  ;;  %v3959_v48 = vpop.f32.mrb[107].mxu0  ;;  %4179 = vmatprep.subr.bf16.mxu0 %v4423_v44  ;;  %v2684_v18 = vld [vmem:[#allocation5 + $0x120] sm:$0xff] }
 0x871   :  { %v3888_v12 = vpop.f32.mrb[101].mxu1  ;;  %v4383_v28 = vpop.eup %4382  ;;  %2635 = vst.msk [vmem:[#allocation5 + $0x130] sm:$0xff] %vm2375_vm0, %v4381_v35 }
 0x872   :  { %2393 = vst.msk [vmem:[#allocation5 + $0x88] sm:$0xff] %vm2375_vm0, %v4383_v28  ;;  %4392 = vtanh.f32 %v2554_v20 }
 0x873   :  { %4394 = vtanh.f32 %v2327_v27  ;;  %v2558_v36 = vpop.f32.mrb[108].mxu0  ;;  %v2331_v53 = vpop.f32.mrb[102].mxu1 }
 0x874   :  { %v4385_v9 = vpop.eup %4384  ;;  %v2559_v17 = vadd.f32 %v2558_v36, %v5741_v10  ;;  %v2332_v43 = vadd.f32 %v2331_v53, %v5734_v21  ;;  %v3962_v54 = vpop.f32.mrb[109].mxu0  ;;  %v2685_v1 = vld [vmem:[#allocation5 + $0x128] sm:$0xff] }
 0x875   :  { %v3891_v7 = vpop.f32.mrb[103].mxu1  ;;  %v4387_v38 = vpop.eup %4386  ;;  %2636 = vst.msk [vmem:[#allocation5 + $0x138] sm:$0xff] %vm2375_vm0, %v4385_v9  ;;  %v4180_v41 = vpack.c.bf16 %v2685_v1, %v2684_v18  ;;  %v2664_v63 = vld [vmem:[#allocation5 + $0x80] sm:$0xff]  ;;  %v2653_v9 = vld [vmem:[#allocation5 + $0x28] sm:$0xff] }
 0x876   :  { %2394 = vst.msk [vmem:[#allocation5 + $0x90] sm:$0xff] %vm2375_vm0, %v4387_v38  ;;  %4396 = vtanh.f32 %v2559_v17  ;;  %v2652_v18 = vld [vmem:[#allocation5 + $0x20] sm:$0xff] }
 0x877   :  { %4398 = vtanh.f32 %v2332_v43  ;;  %v2563_v49 = vpop.f32.mrb[110].mxu0  ;;  %4182 = vmatpush1.bf16.xpose.msk.msra.mxu0 %vm5804_vm1, %v4180_v41  ;;  %v2336_v25 = vpop.f32.mrb[104].mxu1  ;;  %v4138_v38 = vpack.c.bf16 %v2653_v9, %v2652_v18 }
 0x878   :  { %v4389_v55 = vpop.eup %4388  ;;  %v2564_v8 = vadd.f32 %v2563_v49, %v5741_v10  ;;  %v2337_v24 = vadd.f32 %v2336_v25, %v5734_v21  ;;  %v3965_v61 = vpop.f32.mrb[111].mxu0  ;;  %4183 = vmatprep.subr.bf16.mxu0 %v4423_v44  ;;  %v2686_v45 = vld [vmem:[#allocation5 + $0x130] sm:$0xff] }
 0x879   :  { %v3894_v6 = vpop.f32.mrb[105].mxu1  ;;  %v4391_v34 = vpop.eup %4390  ;;  %2637 = vst.msk [vmem:[#allocation5 + $0x140] sm:$0xff] %vm2375_vm0, %v4389_v55  ;;  %v2665_v16 = vld [vmem:[#allocation5 + $0x88] sm:$0xff] }
 0x87a   :  { %2395 = vst.msk [vmem:[#allocation5 + $0x98] sm:$0xff] %vm2375_vm0, %v4391_v34  ;;  %4400 = vtanh.f32 %v2564_v8  ;;  %v4123_v59 = vpack.c.bf16 %v2665_v16, %v2664_v63  ;;  %v2655_v63 = vld [vmem:[#allocation5 + $0x38] sm:$0xff] }
 0x87b   :  { %4402 = vtanh.f32 %v2337_v24  ;;  %v2568_v33 = vpop.f32.mrb[112].mxu0  ;;  %v2341_v37 = vpop.f32.mrb[106].mxu1 }
 0x87c   :  { %v4393_v42 = vpop.eup %4392  ;;  %v2569_v47 = vadd.f32 %v2568_v33, %v5741_v10  ;;  %v2342_v22 = vadd.f32 %v2341_v37, %v5734_v21  ;;  %v3968_v46 = vpop.f32.mrb[113].mxu0  ;;  %4125 = vmatprep.subr.msk.bf16.mxu1 %vm5804_vm1, %v4123_v59  ;;  %v2687_v52 = vld [vmem:[#allocation5 + $0x138] sm:$0xff]  ;;  %v2654_v37 = vld [vmem:[#allocation5 + $0x30] sm:$0xff] }
 0x87d   :  { %v3897_v50 = vpop.f32.mrb[107].mxu1  ;;  %v4395_v56 = vpop.eup %4394  ;;  %2638 = vst.msk [vmem:[#allocation5 + $0x148] sm:$0xff] %vm2375_vm0, %v4393_v42  ;;  %4128 = vmatpush3.bf16.xpose.msk.msra.mxu1 %vm5804_vm1, %v4126_v39  ;;  %v4184_v58 = vpack.c.bf16 %v2687_v52, %v2686_v45  ;;  %v2666_v57 = vld [vmem:[#allocation5 + $0x90] sm:$0xff]  ;;  %v4144_v39 = vpack.c.bf16 %v2655_v63, %v2654_v37 }
 0x87e   :  { %2396 = vst.msk [vmem:[#allocation5 + $0xa0] sm:$0xff] %vm2375_vm0, %v4395_v56  ;;  %4404 = vtanh.f32 %v2569_v47  ;;  %v2673_v50 = vld [vmem:[#allocation5 + $0xc8] sm:$0xff] }
 0x87f   :  { %4406 = vtanh.f32 %v2342_v22  ;;  %v2573_v62 = vpop.f32.mrb[114].mxu0  ;;  %4186 = vmatpush1.bf16.xpose.msk.msra.mxu0 %vm5804_vm1, %v4184_v58  ;;  %v2346_v0 = vpop.f32.mrb[108].mxu1  ;;  %v2657_v56 = vld [vmem:[#allocation5 + $0x48] sm:$0xff]  ;;  %v2675_v58 = vld [vmem:[#allocation5 + $0xd8] sm:$0xff] }
 0x880   :  { %v4397_v11 = vpop.eup %4396  ;;  %v2574_v13 = vadd.f32 %v2573_v62, %v5741_v10  ;;  %v2347_v15 = vadd.f32 %v2346_v0, %v5734_v21  ;;  %v3971_v29 = vpop.f32.mrb[115].mxu0  ;;  %4187 = vmatprep.subr.bf16.mxu0 %v4423_v44  ;;  %v2688_v35 = vld [vmem:[#allocation5 + $0x140] sm:$0xff] }
 0x881   :  { %v3900_v30 = vpop.f32.mrb[109].mxu1  ;;  %v4399_v32 = vpop.eup %4398  ;;  %2639 = vst.msk [vmem:[#allocation5 + $0x150] sm:$0xff] %vm2375_vm0, %v4397_v11  ;;  %v2667_v60 = vld [vmem:[#allocation5 + $0x98] sm:$0xff]  ;;  %v2656_v62 = vld [vmem:[#allocation5 + $0x40] sm:$0xff]  ;;  %v2674_v11 = vld [vmem:[#allocation5 + $0xd0] sm:$0xff] }
 0x882   :  { %2397 = vst.msk [vmem:[#allocation5 + $0xa8] sm:$0xff] %vm2375_vm0, %v4399_v32  ;;  %4408 = vtanh.f32 %v2574_v13  ;;  %v4129_v23 = vpack.c.bf16 %v2667_v60, %v2666_v57  ;;  %v4150_v0 = vpack.c.bf16 %v2657_v56, %v2656_v62  ;;  %v2659_v32 = vld [vmem:[#allocation5 + $0x58] sm:$0xff]  ;;  %v2677_v57 = vld [vmem:[#allocation5 + $0xe8] sm:$0xff]  ;;  %v2658_v60 = vld [vmem:[#allocation5 + $0x50] sm:$0xff] }
 0x883   :  { %4410 = vtanh.f32 %v2347_v15  ;;  %v2578_v3 = vpop.f32.mrb[116].mxu0  ;;  %v4153_v15 = vpack.c.bf16 %v2675_v58, %v2674_v11 }
 0x884   :  { %v4401_v5 = vpop.eup %4400  ;;  %v2579_v21 = vadd.f32 %v2578_v3, %v5741_v10  ;;  %v3974_v14 = vpop.f32.mrb[117].mxu0  ;;  %4131 = vmatprep.subr.msk.bf16.mxu1 %vm5804_vm1, %v4129_v23  ;;  %v2689_v20 = vld [vmem:[#allocation5 + $0x148] sm:$0xff]  ;;  %v4156_v23 = vpack.c.bf16 %v2659_v32, %v2658_v60  ;;  %v4159_v3 = vpack.c.bf16 %v2677_v57, %v2676_v2 }
 0x885   :  { %v4403_v27 = vpop.eup %4402  ;;  %2640 = vst.msk [vmem:[#allocation5 + $0x158] sm:$0xff] %vm2375_vm0, %v4401_v5  ;;  %4134 = vmatpush3.bf16.xpose.msk.msra.mxu1 %vm5804_vm1, %v4132_v4  ;;  %v4188_v48 = vpack.c.bf16 %v2689_v20, %v2688_v35  ;;  %v2668_v43 = vld [vmem:[#allocation5 + $0xa0] sm:$0xff]  ;;  %v2661_v14 = vld [vmem:[#allocation5 + $0x68] sm:$0xff]  ;;  %v2679_v35 = vld [vmem:[#allocation5 + $0xf8] sm:$0xff] }
 0x886   :  { %2398 = vst.msk [vmem:[#allocation5 + $0xb0] sm:$0xff] %vm2375_vm0, %v4403_v27  ;;  %4412 = vtanh.f32 %v2579_v21  ;;  %v2678_v27 = vld [vmem:[#allocation5 + $0xf0] sm:$0xff] }
 0x887   :  { %v2583_v12 = vpop.f32.mrb[118].mxu0  ;;  %4190 = vmatpush1.bf16.xpose.msk.msra.mxu0 %vm5804_vm1, %v4188_v48  ;;  %v4165_v48 = vpack.c.bf16 %v2679_v35, %v2678_v27 }
 0x888   :  { %v4405_v28 = vpop.eup %4404  ;;  %v2584_v36 = vadd.f32 %v2583_v12, %v5741_v10  ;;  %v3977_v53 = vpop.f32.mrb[119].mxu0  ;;  %4191 = vmatprep.subr.bf16.mxu0 %v4423_v44  ;;  %v2690_v55 = vld [vmem:[#allocation5 + $0x150] sm:$0xff]  ;;  %v2663_v12 = vld [vmem:[#allocation5 + $0x78] sm:$0xff] }
 0x889   :  { %v4407_v17 = vpop.eup %4406  ;;  %2641 = vst.msk [vmem:[#allocation5 + $0x160] sm:$0xff] %vm2375_vm0, %v4405_v28  ;;  %v2669_v54 = vld [vmem:[#allocation5 + $0xa8] sm:$0xff]  ;;  %v2662_v28 = vld [vmem:[#allocation5 + $0x70] sm:$0xff] }
 0x88a   :  { %2399 = vst.msk [vmem:[#allocation5 + $0xb8] sm:$0xff] %vm2375_vm0, %v4407_v17  ;;  %4414 = vtanh.f32 %v2584_v36  ;;  %v4135_v7 = vpack.c.bf16 %v2669_v54, %v2668_v43  ;;  %v4168_v36 = vpack.c.bf16 %v2663_v12, %v2662_v28 }
 0x88b   :  { %v2588_v1 = vpop.f32.mrb[120].mxu0 }
 0x88c   :  { %v4409_v41 = vpop.eup %4408  ;;  %v2589_v49 = vadd.f32 %v2588_v1, %v5741_v10  ;;  %v3980_v25 = vpop.f32.mrb[121].mxu0  ;;  %4137 = vmatprep.subr.msk.bf16.mxu1 %vm5804_vm1, %v4135_v7  ;;  %v2691_v8 = vld [vmem:[#allocation5 + $0x158] sm:$0xff] }
 0x88d   :  { %v4411_v24 = vpop.eup %4410  ;;  %2642 = vst.msk [vmem:[#allocation5 + $0x168] sm:$0xff] %vm2375_vm0, %v4409_v41  ;;  %4140 = vmatpush3.bf16.xpose.msk.msra.mxu1 %vm5804_vm1, %v4138_v38  ;;  %v4192_v61 = vpack.c.bf16 %v2691_v8, %v2690_v55  ;;  %v2670_v16 = vld [vmem:[#allocation5 + $0xb0] sm:$0xff] }
 0x88e   :  { %2400 = vst.msk [vmem:[#allocation5 + $0xc0] sm:$0xff] %vm2375_vm0, %v4411_v24  ;;  %4416 = vtanh.f32 %v2589_v49 }
 0x88f   :  { %v2593_v6 = vpop.f32.mrb[122].mxu0  ;;  %4194 = vmatpush1.bf16.xpose.msk.msra.mxu0 %vm5804_vm1, %v4192_v61 }
 0x890   :  { %v4413_v51 = vpop.eup %4412  ;;  %v2594_v40 = vadd.f32 %v2593_v6, %v5741_v10  ;;  %v3983_v34 = vpop.f32.mrb[123].mxu0  ;;  %4195 = vmatprep.subr.bf16.mxu0 %v4423_v44  ;;  %v2692_v47 = vld [vmem:[#allocation5 + $0x160] sm:$0xff] }
 0x891   :  { %2643 = vst.msk [vmem:[#allocation5 + $0x170] sm:$0xff] %vm2375_vm0, %v4413_v51  ;;  %v2671_v59 = vld [vmem:[#allocation5 + $0xb8] sm:$0xff] }
 0x892   :  { %4418 = vtanh.f32 %v2594_v40  ;;  %v4141_v33 = vpack.c.bf16 %v2671_v59, %v2670_v16 }
 0x894   :  { %v4415_v42 = vpop.eup %4414  ;;  %4143 = vmatprep.subr.msk.bf16.mxu1 %vm5804_vm1, %v4141_v33  ;;  %v2693_v22 = vld [vmem:[#allocation5 + $0x168] sm:$0xff] }
 0x895   :  { %2644 = vst.msk [vmem:[#allocation5 + $0x178] sm:$0xff] %vm2375_vm0, %v4415_v42  ;;  %4146 = vmatpush3.bf16.xpose.msk.msra.mxu1 %vm5804_vm1, %v4144_v39  ;;  %v4196_v10 = vpack.c.bf16 %v2693_v22, %v2692_v47  ;;  %v2672_v46 = vld [vmem:[#allocation5 + $0xc0] sm:$0xff] }
 0x896   :  { %v4147_v45 = vpack.c.bf16 %v2673_v50, %v2672_v46 }
 0x897   :  { %4198 = vmatpush1.bf16.xpose.msk.msra.mxu0 %vm5804_vm1, %v4196_v10 }
 0x898   :  { %v4417_v52 = vpop.eup %4416  ;;  %4149 = vmatprep.subr.msk.bf16.mxu1 %vm5804_vm1, %v4147_v45  ;;  %4199 = vmatprep.subr.bf16.mxu0 %v4423_v44  ;;  %v2694_v29 = vld [vmem:[#allocation5 + $0x170] sm:$0xff] }
 0x899   :  { %2645 = vst.msk [vmem:[#allocation5 + $0x180] sm:$0xff] %vm2375_vm0, %v4417_v52 }
 0x89c   :  { %v4419_v13 = vpop.eup %4418  ;;  %v2695_v30 = vld [vmem:[#allocation5 + $0x178] sm:$0xff] }
 0x89d   :  { %2646 = vst.msk [vmem:[#allocation5 + $0x188] sm:$0xff] %vm2375_vm0, %v4419_v13  ;;  %4152 = vmatpush3.bf16.xpose.msk.msra.mxu1 %vm5804_vm1, %v4150_v0  ;;  %v4200_v31 = vpack.c.bf16 %v2695_v30, %v2694_v29 }
 0x89e   :  { %4155 = vmatprep.subr.msk.bf16.mxu1 %vm5804_vm1, %v4153_v15 }
 0x89f   :  { %4202 = vmatpush1.bf16.xpose.msk.msra.mxu0 %vm5804_vm1, %v4200_v31 }
 0x8a0   :  { %4203 = vmatprep.subr.bf16.mxu0 %v4423_v44  ;;  %v2696_v4 = vld [vmem:[#allocation5 + $0x180] sm:$0xff] }
 0x8a1   :  { %v2660_v44 = vld [vmem:[#allocation5 + $0x60] sm:$0xff] }
 0x8a2   :  { %v4162_v20 = vpack.c.bf16 %v2661_v14, %v2660_v44 }
 0x8a4   :  { %v2697_v5 = vld [vmem:[#allocation5 + $0x188] sm:$0xff] }
 0x8a5   :  { %4158 = vmatpush3.bf16.xpose.msk.msra.mxu1 %vm5804_vm1, %v4156_v23  ;;  %v4204_v21 = vpack.c.bf16 %v2697_v5, %v2696_v4 }
 0x8a6   :  { %4161 = vmatprep.subr.msk.bf16.mxu1 %vm5804_vm1, %v4159_v3 }
 0x8a7   :  { %4206 = vmatpush1.bf16.xpose.msk.msra.mxu0 %vm5804_vm1, %v4204_v21 }
 0x8ad   :  { %4164 = vmatpush3.bf16.xpose.msk.msra.mxu1 %vm5804_vm1, %v4162_v20 }
 0x8ae   :  { %4167 = vmatprep.subr.msk.bf16.mxu1 %vm5804_vm1, %v4165_v48  ;;  %3190 = vmatmul.mubr.msk.f32.vlgmr.msra.gmra.mrb[124].mxu0 %vm2375_vm0, %v5753_v26 }
 0x8b5   :  { %4170 = vmatpush3.bf16.xpose.msk.msra.mxu1 %vm5804_vm1, %v4168_v36 }
 0x8bc   :  { %3438 = vmatmul.mubr.msk.f32.vlgmr.msra.gmra.mrb[110].mxu1 %vm2375_vm0, %v5753_v26 }
 0x981   :  { %v2988_v53 = vpop.f32.mrb[124].mxu0 }
 0x982   :  { %v2990_v9 = vpop.f32.mrb[125].mxu0 }
 0x983   :  { %v2998_v17 = vcombine.low %v2988_v53, %v2990_v9 }
 0x985   :  { %3005 = vst.msk [vmem:[%s5944_s24 + $0x8] sm:$0x77] %vm3004_vm4, %v2998_v17 }
 0x98f   :  { %v2917_v43 = vpop.f32.mrb[110].mxu1 }
 0x990   :  { %v2919_v54 = vpop.f32.mrb[111].mxu1 }
 0x991   :  { %v2997_v7 = vcombine.low %v2917_v43, %v2919_v54 }
 0x993   :  { %3001 = vst [vmem:[%s5944_s24] sm:$0x77] %v2997_v7 }

</bundles_post_ra>
